<compile_context>
chip_gen: v6e
topology: v6e:2x2x1
jax: 0.10.0
libtpu: 0.0.40
codegen_flags: <defaults>
</compile_context>

<pallas_src>
import jax
import jax.numpy as jnp
from jax.experimental import pallas as pl

# --------------------------------------------------------------------------
# config
# --------------------------------------------------------------------------
B = 2          # batch
S = 8          # sequence length
VOCAB = 32     # token vocab for the BERT stub
D_MODEL = 32   # "768" in the real module
HIDDEN = 16    # "400" in the real module (per direction)
NUM_TAGS = 8   # label_vocab.max_n_words


# --------------------------------------------------------------------------
# fused forward kernel: BERT-stub projection -> BiLSTM -> emissions -> CRF
# --------------------------------------------------------------------------
def _fused_forward_kernel(emb_ref, w_bert_ref, b_bert_ref,
                          w_ih_ref, w_hh_ref, b_lstm_ref,
                          w_emit_ref, b_emit_ref,
                          trans_t_ref, start_ref, end_ref,
                          onehot_ref, mask_ref,
                          logz_ref, gold_ref, cls_ref):
    f32 = jnp.float32

    # ---- BERT stub projection: one (S*B, D) x (D, D) matmul + tanh ----
    bert = jnp.tanh(
        jnp.dot(emb_ref[...], w_bert_ref[...], preferred_element_type=f32)
        + b_bert_ref[...])                              # (S*B, D), row = t*B + b
    cls_ref[...] = bert[0:B, :]                         # rows with t == 0

    # ---- hoisted LSTM input projections: all timesteps, per gate/direction ----
    pre = [[jnp.dot(bert, w_ih_ref[d, g], preferred_element_type=f32)
            + b_lstm_ref[d, g]
            for g in range(4)]
           for d in range(2)]                           # each (S*B, H)

    # recurrent weights loaded once (hoisted out of the time loop)
    w_hh = [[w_hh_ref[d, g] for g in range(4)] for d in range(2)]

    def lstm_cell(d, row0, h, c):
        gates = [pre[d][g][row0:row0 + B, :]
                 + jnp.dot(h, w_hh[d][g], preferred_element_type=f32)
                 for g in range(4)]
        i_g = jax.nn.sigmoid(gates[0])
        f_g = jax.nn.sigmoid(gates[1])
        g_g = jnp.tanh(gates[2])
        o_g = jax.nn.sigmoid(gates[3])
        c_new = f_g * c + i_g * g_g
        h_new = o_g * jnp.tanh(c_new)
        return h_new, c_new

    # ---- BiLSTM recurrence, fwd+bwd in the same (statically unrolled) loop ----
    zeros_h = jnp.zeros((B, HIDDEN), f32)
    h_f, c_f = zeros_h, zeros_h
    h_b, c_b = zeros_h, zeros_h
    hf_steps = [None] * S
    hb_steps = [None] * S
    for t in range(S):
        h_f, c_f = lstm_cell(0, t * B, h_f, c_f)
        hf_steps[t] = h_f
        tb = S - 1 - t
        h_b, c_b = lstm_cell(1, tb * B, h_b, c_b)
        hb_steps[tb] = h_b

    h_fwd_all = jnp.concatenate(hf_steps, axis=0)       # (S*B, H)
    h_bwd_all = jnp.concatenate(hb_steps, axis=0)       # (S*B, H)

    # ---- CRF emission projection fused (per-direction weights, no 2H slicing) ----
    emit_all = (jnp.dot(h_fwd_all, w_emit_ref[0], preferred_element_type=f32)
                + jnp.dot(h_bwd_all, w_emit_ref[1], preferred_element_type=f32)
                + b_emit_ref[...])                      # (S*B, T)

    # ---- CRF forward algorithm + gold-path score (unrolled over time) ----
    trans_t = trans_t_ref[...]                          # (T, T): [next, prev]
    start = start_ref[...]                              # (1, T)
    end = end_ref[...]                                  # (1, T)

    emit0 = emit_all[0:B, :]
    oh0 = onehot_ref[0]                                 # (B, T)
    m0 = mask_ref[0]                                    # (B, 1)
    alpha = start + emit0
    score = jnp.sum(alpha * oh0, axis=-1, keepdims=True) * m0
    prev_oh = oh0

    for t in range(1, S):
        emit_t = emit_all[t * B:(t + 1) * B, :]
        oh_t = onehot_ref[t]
        m_t = mask_ref[t]

        # logsumexp over previous tag, reduced along the last (lane) axis
        scores = alpha[:, None, :] + trans_t[None, :, :]   # (B, next, prev)
        smax = jnp.max(scores, axis=-1, keepdims=True)
        lse = smax[:, :, 0] + jnp.log(jnp.sum(jnp.exp(scores - smax), axis=-1))
        new_alpha = lse + emit_t
        alpha = jnp.where(m_t > 0.0, new_alpha, alpha)

        # gold-path accumulation: (oh_t @ trans_T)[b, prev] = trans[prev, cur_b]
        e_score = jnp.sum(emit_t * oh_t, axis=-1, keepdims=True)
        t_score = jnp.sum(
            jnp.dot(oh_t, trans_t, preferred_element_type=f32) * prev_oh,
            axis=-1, keepdims=True)
        score = score + (e_score + t_score) * m_t
        prev_oh = jnp.where(m_t > 0.0, oh_t, prev_oh)

    final = alpha + end
    fmax = jnp.max(final, axis=-1, keepdims=True)
    logz_ref[...] = fmax + jnp.log(
        jnp.sum(jnp.exp(final - fmax), axis=-1, keepdims=True))
    gold_ref[...] = score + jnp.sum(end * prev_oh, axis=-1, keepdims=True)


# --------------------------------------------------------------------------
# parameters (deterministic synthetic init — no checkpoint loading)
# --------------------------------------------------------------------------
def init_params(key):
    keys = jax.random.split(key, 8)
    sc = 0.1
    return {
        # BERT stub
        "emb":    sc * jax.random.normal(keys[0], (VOCAB, D_MODEL), jnp.float32),
        "w_bert": sc * jax.random.normal(keys[1], (D_MODEL, D_MODEL), jnp.float32),
        "b_bert": jnp.zeros((D_MODEL,), jnp.float32),
        # BiLSTM: [direction, gate(i,f,g,o), ...]
        "w_ih":   sc * jax.random.normal(keys[2], (2, 4, D_MODEL, HIDDEN), jnp.float32),
        "w_hh":   sc * jax.random.normal(keys[3], (2, 4, HIDDEN, HIDDEN), jnp.float32),
        "b_lstm": jnp.zeros((2, 4, 1, HIDDEN), jnp.float32),
        # CRF: per-direction emission projection + transition scores
        "w_emit": sc * jax.random.normal(keys[4], (2, HIDDEN, NUM_TAGS), jnp.float32),
        "b_emit": jnp.zeros((NUM_TAGS,), jnp.float32),
        "trans":  sc * jax.random.normal(keys[5], (NUM_TAGS, NUM_TAGS), jnp.float32),
        "start":  sc * jax.random.normal(keys[6], (1, NUM_TAGS), jnp.float32),
        "end":    sc * jax.random.normal(keys[7], (1, NUM_TAGS), jnp.float32),
    }


# --------------------------------------------------------------------------
# BaseModel.forward(seqs, mask, labels, finetune=False)
# --------------------------------------------------------------------------
def base_model_forward(params, seqs, mask, labels):
    b, s = seqs.shape

    # ----- self.bert(seqs) -----
    # TODO(synk): a pretrained BERT encoder cannot be reproduced in-script;
    # stubbed as an embedding lookup (plain-JAX gather glue) + in-kernel
    # dense+tanh projection.
    emb = params["emb"][seqs]                                        # (B, S, D)
    emb_tm = jnp.transpose(emb, (1, 0, 2)).reshape(s * b, D_MODEL)   # row = t*B+b

    # CRF label / mask prep (tiny glue)
    onehot_tm = jax.nn.one_hot(labels.T, NUM_TAGS, dtype=jnp.float32)  # (S,B,T)
    mask_tm = mask.T.astype(jnp.float32)[:, :, None]                   # (S,B,1)

    flops = (2 * s * b * D_MODEL * D_MODEL
             + 2 * 2 * 4 * s * b * D_MODEL * HIDDEN
             + 2 * 2 * 4 * s * b * HIDDEN * HIDDEN
             + 2 * 2 * s * b * HIDDEN * NUM_TAGS
             + 6 * s * b * NUM_TAGS * NUM_TAGS)
    transcendentals = (s * b * D_MODEL + 2 * 5 * s * b * HIDDEN
                       + 2 * s * b * NUM_TAGS * NUM_TAGS)
    bytes_accessed = 4 * (s * b * D_MODEL + D_MODEL * D_MODEL + D_MODEL
                          + 8 * D_MODEL * HIDDEN + 8 * HIDDEN * HIDDEN
                          + 8 * HIDDEN + 2 * HIDDEN * NUM_TAGS + NUM_TAGS
                          + 3 * NUM_TAGS * NUM_TAGS
                          + s * b * NUM_TAGS + s * b
                          + b * (2 + D_MODEL))

    logz, gold, bert_cls = pl.pallas_call(
        _fused_forward_kernel,
        out_shape=(jax.ShapeDtypeStruct((b, 1), jnp.float32),       # log Z
                   jax.ShapeDtypeStruct((b, 1), jnp.float32),       # gold score
                   jax.ShapeDtypeStruct((b, D_MODEL), jnp.float32)),  # bert CLS
        cost_estimate=pl.CostEstimate(flops=flops,
                                      transcendentals=transcendentals,
                                      bytes_accessed=bytes_accessed),
    )(emb_tm,
      params["w_bert"], params["b_bert"].reshape(1, D_MODEL),
      params["w_ih"], params["w_hh"], params["b_lstm"],
      params["w_emit"], params["b_emit"].reshape(1, NUM_TAGS),
      params["trans"].T,           # pass transposed: [next, prev] for lane-reduce
      params["start"], params["end"],
      onehot_tm, mask_tm)

    # TODO(synk): finetune=False detaches bert_outs before the LSTM (and RNN
    # dropout(0.2) is an inference no-op); both are backward/training-only
    # concerns and do not change forward values.
    nll = logz - gold                                                 # (B, 1)
    return {
        "loss": jnp.mean(nll),
        "logZ": logz[:, 0],
        "gold_score": gold[:, 0],
        "bert_cls": bert_cls,
    }


# --------------------------------------------------------------------------
# pure-JAX reference (numerics check of the fused kernel)
# --------------------------------------------------------------------------
def _reference_forward(params, seqs, mask, labels):
    b, s = seqs.shape
    emb = params["emb"][seqs]                                       # (B, S, D)
    bert = jnp.tanh(emb @ params["w_bert"] + params["b_bert"])      # (B, S, D)
    bert_cls = bert[:, 0, :]

    def lstm_dir(x_bm, d):
        w_ih, w_hh, bias = params["w_ih"][d], params["w_hh"][d], params["b_lstm"][d]
        x_tm = jnp.transpose(x_bm, (1, 0, 2))
        if d == 1:
            x_tm = x_tm[::-1]

        def step(carry, x_t):
            h, c = carry
            g = [x_t @ w_ih[k] + h @ w_hh[k] + bias[k] for k in range(4)]
            i = jax.nn.sigmoid(g[0]); f = jax.nn.sigmoid(g[1])
            gg = jnp.tanh(g[2]); o = jax.nn.sigmoid(g[3])
            c = f * c + i * gg
            h = o * jnp.tanh(c)
            return (h, c), h

        h0 = jnp.zeros((b, HIDDEN), jnp.float32)
        _, hs = jax.lax.scan(step, (h0, h0), x_tm)
        return hs[::-1] if d == 1 else hs                           # (S, B, H)

    h_f = lstm_dir(bert, 0)
    h_b = lstm_dir(bert, 1)
    emit = (h_f @ params["w_emit"][0] + h_b @ params["w_emit"][1]
            + params["b_emit"])                                     # (S, B, T)

    trans, start, end = params["trans"], params["start"], params["end"]
    oh = jax.nn.one_hot(labels.T, NUM_TAGS, dtype=jnp.float32)      # (S, B, T)
    m = mask.T.astype(jnp.float32)[:, :, None]                      # (S, B, 1)

    alpha = start + emit[0]
    score = jnp.sum(alpha * oh[0], axis=-1, keepdims=True) * m[0]
    prev_oh = oh[0]
    for t in range(1, s):
        scores = alpha[:, :, None] + trans[None, :, :]              # (B, prev, next)
        new_alpha = jax.nn.logsumexp(scores, axis=1) + emit[t]
        alpha = jnp.where(m[t] > 0, new_alpha, alpha)
        e = jnp.sum(emit[t] * oh[t], axis=-1, keepdims=True)
        tr = jnp.sum((prev_oh @ trans) * oh[t], axis=-1, keepdims=True)
        score = score + (e + tr) * m[t]
        prev_oh = jnp.where(m[t] > 0, oh[t], prev_oh)
    logz = jax.nn.logsumexp(alpha + end, axis=-1, keepdims=True)
    gold = score + jnp.sum(end * prev_oh, axis=-1, keepdims=True)
    nll = logz - gold
    return {"loss": jnp.mean(nll), "logZ": logz[:, 0],
            "gold_score": gold[:, 0], "bert_cls": bert_cls}


# --------------------------------------------------------------------------
if __name__ == "__main__":
    key = jax.random.PRNGKey(0)
    k_param, k_seq, k_lab = jax.random.split(key, 3)

    params = init_params(k_param)

    seqs = jax.random.randint(k_seq, (B, S), 0, VOCAB, dtype=jnp.int32)
    labels = jax.random.randint(k_lab, (B, S), 0, NUM_TAGS, dtype=jnp.int32)
    lengths = jnp.array([S, S - 3], dtype=jnp.int32)
    mask = jnp.arange(S)[None, :] < lengths[:, None]   # (B, S) bool, True=valid

    fwd = jax.jit(base_model_forward)
    res = fwd(params, seqs, mask, labels)
    jax.block_until_ready(res)

    ref = jax.jit(_reference_forward)(params, seqs, mask, labels)
    jax.block_until_ready(ref)

    assert res["loss"].shape == ()
    assert res["logZ"].shape == (B,)
    assert res["bert_cls"].shape == (B, D_MODEL)
    assert bool(jnp.isfinite(res["loss"]))
    for name in ("loss", "logZ", "gold_score", "bert_cls"):
        assert bool(jnp.allclose(res[name], ref[name], rtol=1e-4, atol=1e-4)), name
    print("KERNEL_OK")
</pallas_src>

<mosaic_0001>
module attributes {stable_mosaic.version = 11 : i64} {
  func.func @_fused_forward_kernel(%arg0: memref<16x32xf32, #tpu.memory_space<vmem>>, %arg1: memref<32x32xf32, #tpu.memory_space<vmem>>, %arg2: memref<1x32xf32, #tpu.memory_space<vmem>>, %arg3: memref<2x4x32x16xf32, #tpu.memory_space<vmem>>, %arg4: memref<2x4x16x16xf32, #tpu.memory_space<vmem>>, %arg5: memref<2x4x1x16xf32, #tpu.memory_space<vmem>>, %arg6: memref<2x16x8xf32, #tpu.memory_space<vmem>>, %arg7: memref<1x8xf32, #tpu.memory_space<vmem>>, %arg8: memref<8x8xf32, #tpu.memory_space<vmem>>, %arg9: memref<1x8xf32, #tpu.memory_space<vmem>>, %arg10: memref<1x8xf32, #tpu.memory_space<vmem>>, %arg11: memref<8x2x8xf32, #tpu.memory_space<vmem>>, %arg12: memref<8x2x1xf32, #tpu.memory_space<vmem>>, %arg13: memref<2x1xf32, #tpu.memory_space<vmem>>, %arg14: memref<2x1xf32, #tpu.memory_space<vmem>>, %arg15: memref<2x32xf32, #tpu.memory_space<vmem>>) attributes {dimension_semantics = [], scalar_prefetch = 0 : i64, scratch_operands = 0 : i64, tpu.core_type = #tpu.core_type<tc>} {
    %c0 = arith.constant 0 : index
    %c0_0 = arith.constant 0 : index
    %0 = vector.load %arg0[%c0, %c0_0] : memref<16x32xf32, #tpu.memory_space<vmem>>, vector<16x32xf32>
    %c0_1 = arith.constant 0 : index
    %c0_2 = arith.constant 0 : index
    %1 = vector.load %arg1[%c0_1, %c0_2] : memref<32x32xf32, #tpu.memory_space<vmem>>, vector<32x32xf32>
    %cst = arith.constant dense<0.000000e+00> : vector<16x32xf32>
    %2 = tpu.matmul %0, %1, %cst {dimension_numbers = #tpu.dot_dimension_numbers<[1], [0], [0], [1], [0, 0, 1, 1], [], []>} : vector<16x32xf32>, vector<32x32xf32>, vector<16x32xf32> -> vector<16x32xf32>
    %c0_3 = arith.constant 0 : index
    %c0_4 = arith.constant 0 : index
    %3 = vector.load %arg2[%c0_3, %c0_4] : memref<1x32xf32, #tpu.memory_space<vmem>>, vector<1x32xf32>
    %4 = vector.broadcast %3 : vector<1x32xf32> to vector<16x32xf32>
    %5 = arith.addf %2, %4 : vector<16x32xf32>
    %6 = math.tanh %5 : vector<16x32xf32>
    %7 = vector.extract_strided_slice %6 {offsets = [0, 0], sizes = [2, 32], strides = [1, 1]} : vector<16x32xf32> to vector<2x32xf32>
    %c0_5 = arith.constant 0 : index
    %c0_6 = arith.constant 0 : index
    %8 = vector.load %arg15[%c0_5, %c0_6] : memref<2x32xf32, #tpu.memory_space<vmem>>, vector<2x32xf32>
    tpu.vector_store %arg15[%c0_5, %c0_6], %7 {strides = array<i32>} : memref<2x32xf32, #tpu.memory_space<vmem>>, vector<2x32xf32>,
    %c0_7 = arith.constant 0 : index
    %c0_8 = arith.constant 0 : index
    %c0_9 = arith.constant 0 : index
    %c0_10 = arith.constant 0 : index
    %9 = vector.load %arg3[%c0_7, %c0_8, %c0_9, %c0_10] : memref<2x4x32x16xf32, #tpu.memory_space<vmem>>, vector<1x1x32x16xf32>
    %10 = vector.shape_cast %9 : vector<1x1x32x16xf32> to vector<32x16xf32>
    %cst_11 = arith.constant dense<0.000000e+00> : vector<16x16xf32>
    %11 = tpu.matmul %6, %10, %cst_11 {dimension_numbers = #tpu.dot_dimension_numbers<[1], [0], [0], [1], [0, 0, 1, 1], [], []>} : vector<16x32xf32>, vector<32x16xf32>, vector<16x16xf32> -> vector<16x16xf32>
    %c0_12 = arith.constant 0 : index
    %c0_13 = arith.constant 0 : index
    %c0_14 = arith.constant 0 : index
    %c0_15 = arith.constant 0 : index
    %12 = vector.load %arg5[%c0_12, %c0_13, %c0_14, %c0_15] : memref<2x4x1x16xf32, #tpu.memory_space<vmem>>, vector<1x1x1x16xf32>
    %13 = vector.shape_cast %12 : vector<1x1x1x16xf32> to vector<1x16xf32>
    %14 = vector.broadcast %13 : vector<1x16xf32> to vector<16x16xf32>
    %15 = arith.addf %11, %14 : vector<16x16xf32>
    %c0_16 = arith.constant 0 : index
    %c1 = arith.constant 1 : index
    %c0_17 = arith.constant 0 : index
    %c0_18 = arith.constant 0 : index
    %16 = vector.load %arg3[%c0_16, %c1, %c0_17, %c0_18] : memref<2x4x32x16xf32, #tpu.memory_space<vmem>>, vector<1x1x32x16xf32>
    %17 = vector.shape_cast %16 : vector<1x1x32x16xf32> to vector<32x16xf32>
    %cst_19 = arith.constant dense<0.000000e+00> : vector<16x16xf32>
    %18 = tpu.matmul %6, %17, %cst_19 {dimension_numbers = #tpu.dot_dimension_numbers<[1], [0], [0], [1], [0, 0, 1, 1], [], []>} : vector<16x32xf32>, vector<32x16xf32>, vector<16x16xf32> -> vector<16x16xf32>
    %c0_20 = arith.constant 0 : index
    %c1_21 = arith.constant 1 : index
    %c0_22 = arith.constant 0 : index
    %c0_23 = arith.constant 0 : index
    %19 = vector.load %arg5[%c0_20, %c1_21, %c0_22, %c0_23] : memref<2x4x1x16xf32, #tpu.memory_space<vmem>>, vector<1x1x1x16xf32>
    %20 = vector.shape_cast %19 : vector<1x1x1x16xf32> to vector<1x16xf32>
    %21 = vector.broadcast %20 : vector<1x16xf32> to vector<16x16xf32>
    %22 = arith.addf %18, %21 : vector<16x16xf32>
    %c0_24 = arith.constant 0 : index
    %c2 = arith.constant 2 : index
    %c0_25 = arith.constant 0 : index
    %c0_26 = arith.constant 0 : index
    %23 = vector.load %arg3[%c0_24, %c2, %c0_25, %c0_26] : memref<2x4x32x16xf32, #tpu.memory_space<vmem>>, vector<1x1x32x16xf32>
    %24 = vector.shape_cast %23 : vector<1x1x32x16xf32> to vector<32x16xf32>
    %cst_27 = arith.constant dense<0.000000e+00> : vector<16x16xf32>
    %25 = tpu.matmul %6, %24, %cst_27 {dimension_numbers = #tpu.dot_dimension_numbers<[1], [0], [0], [1], [0, 0, 1, 1], [], []>} : vector<16x32xf32>, vector<32x16xf32>, vector<16x16xf32> -> vector<16x16xf32>
    %c0_28 = arith.constant 0 : index
    %c2_29 = arith.constant 2 : index
    %c0_30 = arith.constant 0 : index
    %c0_31 = arith.constant 0 : index
    %26 = vector.load %arg5[%c0_28, %c2_29, %c0_30, %c0_31] : memref<2x4x1x16xf32, #tpu.memory_space<vmem>>, vector<1x1x1x16xf32>
    %27 = vector.shape_cast %26 : vector<1x1x1x16xf32> to vector<1x16xf32>
    %28 = vector.broadcast %27 : vector<1x16xf32> to vector<16x16xf32>
    %29 = arith.addf %25, %28 : vector<16x16xf32>
    %c0_32 = arith.constant 0 : index
    %c3 = arith.constant 3 : index
    %c0_33 = arith.constant 0 : index
    %c0_34 = arith.constant 0 : index
    %30 = vector.load %arg3[%c0_32, %c3, %c0_33, %c0_34] : memref<2x4x32x16xf32, #tpu.memory_space<vmem>>, vector<1x1x32x16xf32>
    %31 = vector.shape_cast %30 : vector<1x1x32x16xf32> to vector<32x16xf32>
    %cst_35 = arith.constant dense<0.000000e+00> : vector<16x16xf32>
    %32 = tpu.matmul %6, %31, %cst_35 {dimension_numbers = #tpu.dot_dimension_numbers<[1], [0], [0], [1], [0, 0, 1, 1], [], []>} : vector<16x32xf32>, vector<32x16xf32>, vector<16x16xf32> -> vector<16x16xf32>
    %c0_36 = arith.constant 0 : index
    %c3_37 = arith.constant 3 : index
    %c0_38 = arith.constant 0 : index
    %c0_39 = arith.constant 0 : index
    %33 = vector.load %arg5[%c0_36, %c3_37, %c0_38, %c0_39] : memref<2x4x1x16xf32, #tpu.memory_space<vmem>>, vector<1x1x1x16xf32>
    %34 = vector.shape_cast %33 : vector<1x1x1x16xf32> to vector<1x16xf32>
    %35 = vector.broadcast %34 : vector<1x16xf32> to vector<16x16xf32>
    %36 = arith.addf %32, %35 : vector<16x16xf32>
    %c1_40 = arith.constant 1 : index
    %c0_41 = arith.constant 0 : index
    %c0_42 = arith.constant 0 : index
    %c0_43 = arith.constant 0 : index
    %37 = vector.load %arg3[%c1_40, %c0_41, %c0_42, %c0_43] : memref<2x4x32x16xf32, #tpu.memory_space<vmem>>, vector<1x1x32x16xf32>
    %38 = vector.shape_cast %37 : vector<1x1x32x16xf32> to vector<32x16xf32>
    %cst_44 = arith.constant dense<0.000000e+00> : vector<16x16xf32>
    %39 = tpu.matmul %6, %38, %cst_44 {dimension_numbers = #tpu.dot_dimension_numbers<[1], [0], [0], [1], [0, 0, 1, 1], [], []>} : vector<16x32xf32>, vector<32x16xf32>, vector<16x16xf32> -> vector<16x16xf32>
    %c1_45 = arith.constant 1 : index
    %c0_46 = arith.constant 0 : index
    %c0_47 = arith.constant 0 : index
    %c0_48 = arith.constant 0 : index
    %40 = vector.load %arg5[%c1_45, %c0_46, %c0_47, %c0_48] : memref<2x4x1x16xf32, #tpu.memory_space<vmem>>, vector<1x1x1x16xf32>
    %41 = vector.shape_cast %40 : vector<1x1x1x16xf32> to vector<1x16xf32>
    %42 = vector.broadcast %41 : vector<1x16xf32> to vector<16x16xf32>
    %43 = arith.addf %39, %42 : vector<16x16xf32>
    %c1_49 = arith.constant 1 : index
    %c1_50 = arith.constant 1 : index
    %c0_51 = arith.constant 0 : index
    %c0_52 = arith.constant 0 : index
    %44 = vector.load %arg3[%c1_49, %c1_50, %c0_51, %c0_52] : memref<2x4x32x16xf32, #tpu.memory_space<vmem>>, vector<1x1x32x16xf32>
    %45 = vector.shape_cast %44 : vector<1x1x32x16xf32> to vector<32x16xf32>
    %cst_53 = arith.constant dense<0.000000e+00> : vector<16x16xf32>
    %46 = tpu.matmul %6, %45, %cst_53 {dimension_numbers = #tpu.dot_dimension_numbers<[1], [0], [0], [1], [0, 0, 1, 1], [], []>} : vector<16x32xf32>, vector<32x16xf32>, vector<16x16xf32> -> vector<16x16xf32>
    %c1_54 = arith.constant 1 : index
    %c1_55 = arith.constant 1 : index
    %c0_56 = arith.constant 0 : index
    %c0_57 = arith.constant 0 : index
    %47 = vector.load %arg5[%c1_54, %c1_55, %c0_56, %c0_57] : memref<2x4x1x16xf32, #tpu.memory_space<vmem>>, vector<1x1x1x16xf32>
    %48 = vector.shape_cast %47 : vector<1x1x1x16xf32> to vector<1x16xf32>
    %49 = vector.broadcast %48 : vector<1x16xf32> to vector<16x16xf32>
    %50 = arith.addf %46, %49 : vector<16x16xf32>
    %c1_58 = arith.constant 1 : index
    %c2_59 = arith.constant 2 : index
    %c0_60 = arith.constant 0 : index
    %c0_61 = arith.constant 0 : index
    %51 = vector.load %arg3[%c1_58, %c2_59, %c0_60, %c0_61] : memref<2x4x32x16xf32, #tpu.memory_space<vmem>>, vector<1x1x32x16xf32>
    %52 = vector.shape_cast %51 : vector<1x1x32x16xf32> to vector<32x16xf32>
    %cst_62 = arith.constant dense<0.000000e+00> : vector<16x16xf32>
    %53 = tpu.matmul %6, %52, %cst_62 {dimension_numbers = #tpu.dot_dimension_numbers<[1], [0], [0], [1], [0, 0, 1, 1], [], []>} : vector<16x32xf32>, vector<32x16xf32>, vector<16x16xf32> -> vector<16x16xf32>
    %c1_63 = arith.constant 1 : index
    %c2_64 = arith.constant 2 : index
    %c0_65 = arith.constant 0 : index
    %c0_66 = arith.constant 0 : index
    %54 = vector.load %arg5[%c1_63, %c2_64, %c0_65, %c0_66] : memref<2x4x1x16xf32, #tpu.memory_space<vmem>>, vector<1x1x1x16xf32>
    %55 = vector.shape_cast %54 : vector<1x1x1x16xf32> to vector<1x16xf32>
    %56 = vector.broadcast %55 : vector<1x16xf32> to vector<16x16xf32>
    %57 = arith.addf %53, %56 : vector<16x16xf32>
    %c1_67 = arith.constant 1 : index
    %c3_68 = arith.constant 3 : index
    %c0_69 = arith.constant 0 : index
    %c0_70 = arith.constant 0 : index
    %58 = vector.load %arg3[%c1_67, %c3_68, %c0_69, %c0_70] : memref<2x4x32x16xf32, #tpu.memory_space<vmem>>, vector<1x1x32x16xf32>
    %59 = vector.shape_cast %58 : vector<1x1x32x16xf32> to vector<32x16xf32>
    %cst_71 = arith.constant dense<0.000000e+00> : vector<16x16xf32>
    %60 = tpu.matmul %6, %59, %cst_71 {dimension_numbers = #tpu.dot_dimension_numbers<[1], [0], [0], [1], [0, 0, 1, 1], [], []>} : vector<16x32xf32>, vector<32x16xf32>, vector<16x16xf32> -> vector<16x16xf32>
    %c1_72 = arith.constant 1 : index
    %c3_73 = arith.constant 3 : index
    %c0_74 = arith.constant 0 : index
    %c0_75 = arith.constant 0 : index
    %61 = vector.load %arg5[%c1_72, %c3_73, %c0_74, %c0_75] : memref<2x4x1x16xf32, #tpu.memory_space<vmem>>, vector<1x1x1x16xf32>
    %62 = vector.shape_cast %61 : vector<1x1x1x16xf32> to vector<1x16xf32>
    %63 = vector.broadcast %62 : vector<1x16xf32> to vector<16x16xf32>
    %64 = arith.addf %60, %63 : vector<16x16xf32>
    %c0_76 = arith.constant 0 : index
    %c0_77 = arith.constant 0 : index
    %c0_78 = arith.constant 0 : index
    %c0_79 = arith.constant 0 : index
    %65 = vector.load %arg4[%c0_76, %c0_77, %c0_78, %c0_79] : memref<2x4x16x16xf32, #tpu.memory_space<vmem>>, vector<1x1x16x16xf32>
    %66 = vector.shape_cast %65 : vector<1x1x16x16xf32> to vector<16x16xf32>
    %c0_80 = arith.constant 0 : index
    %c1_81 = arith.constant 1 : index
    %c0_82 = arith.constant 0 : index
    %c0_83 = arith.constant 0 : index
    %67 = vector.load %arg4[%c0_80, %c1_81, %c0_82, %c0_83] : memref<2x4x16x16xf32, #tpu.memory_space<vmem>>, vector<1x1x16x16xf32>
    %68 = vector.shape_cast %67 : vector<1x1x16x16xf32> to vector<16x16xf32>
    %c0_84 = arith.constant 0 : index
    %c2_85 = arith.constant 2 : index
    %c0_86 = arith.constant 0 : index
    %c0_87 = arith.constant 0 : index
    %69 = vector.load %arg4[%c0_84, %c2_85, %c0_86, %c0_87] : memref<2x4x16x16xf32, #tpu.memory_space<vmem>>, vector<1x1x16x16xf32>
    %70 = vector.shape_cast %69 : vector<1x1x16x16xf32> to vector<16x16xf32>
    %c0_88 = arith.constant 0 : index
    %c3_89 = arith.constant 3 : index
    %c0_90 = arith.constant 0 : index
    %c0_91 = arith.constant 0 : index
    %71 = vector.load %arg4[%c0_88, %c3_89, %c0_90, %c0_91] : memref<2x4x16x16xf32, #tpu.memory_space<vmem>>, vector<1x1x16x16xf32>
    %72 = vector.shape_cast %71 : vector<1x1x16x16xf32> to vector<16x16xf32>
    %c1_92 = arith.constant 1 : index
    %c0_93 = arith.constant 0 : index
    %c0_94 = arith.constant 0 : index
    %c0_95 = arith.constant 0 : index
    %73 = vector.load %arg4[%c1_92, %c0_93, %c0_94, %c0_95] : memref<2x4x16x16xf32, #tpu.memory_space<vmem>>, vector<1x1x16x16xf32>
    %74 = vector.shape_cast %73 : vector<1x1x16x16xf32> to vector<16x16xf32>
    %c1_96 = arith.constant 1 : index
    %c1_97 = arith.constant 1 : index
    %c0_98 = arith.constant 0 : index
    %c0_99 = arith.constant 0 : index
    %75 = vector.load %arg4[%c1_96, %c1_97, %c0_98, %c0_99] : memref<2x4x16x16xf32, #tpu.memory_space<vmem>>, vector<1x1x16x16xf32>
    %76 = vector.shape_cast %75 : vector<1x1x16x16xf32> to vector<16x16xf32>
    %c1_100 = arith.constant 1 : index
    %c2_101 = arith.constant 2 : index
    %c0_102 = arith.constant 0 : index
    %c0_103 = arith.constant 0 : index
    %77 = vector.load %arg4[%c1_100, %c2_101, %c0_102, %c0_103] : memref<2x4x16x16xf32, #tpu.memory_space<vmem>>, vector<1x1x16x16xf32>
    %78 = vector.shape_cast %77 : vector<1x1x16x16xf32> to vector<16x16xf32>
    %c1_104 = arith.constant 1 : index
    %c3_105 = arith.constant 3 : index
    %c0_106 = arith.constant 0 : index
    %c0_107 = arith.constant 0 : index
    %79 = vector.load %arg4[%c1_104, %c3_105, %c0_106, %c0_107] : memref<2x4x16x16xf32, #tpu.memory_space<vmem>>, vector<1x1x16x16xf32>
    %80 = vector.shape_cast %79 : vector<1x1x16x16xf32> to vector<16x16xf32>
    %cst_108 = arith.constant 0.000000e+00 : f32
    %81 = vector.broadcast %cst_108 : f32 to vector<2x16xf32>
    %82 = vector.extract_strided_slice %15 {offsets = [0, 0], sizes = [2, 16], strides = [1, 1]} : vector<16x16xf32> to vector<2x16xf32>
    %cst_109 = arith.constant dense<0.000000e+00> : vector<2x16xf32>
    %83 = tpu.matmul %81, %66, %cst_109 {dimension_numbers = #tpu.dot_dimension_numbers<[1], [0], [0], [1], [0, 0, 1, 1], [], []>} : vector<2x16xf32>, vector<16x16xf32>, vector<2x16xf32> -> vector<2x16xf32>
    %84 = arith.addf %82, %83 : vector<2x16xf32>
    %85 = vector.extract_strided_slice %22 {offsets = [0, 0], sizes = [2, 16], strides = [1, 1]} : vector<16x16xf32> to vector<2x16xf32>
    %cst_110 = arith.constant dense<0.000000e+00> : vector<2x16xf32>
    %86 = tpu.matmul %81, %68, %cst_110 {dimension_numbers = #tpu.dot_dimension_numbers<[1], [0], [0], [1], [0, 0, 1, 1], [], []>} : vector<2x16xf32>, vector<16x16xf32>, vector<2x16xf32> -> vector<2x16xf32>
    %87 = arith.addf %85, %86 : vector<2x16xf32>
    %88 = vector.extract_strided_slice %29 {offsets = [0, 0], sizes = [2, 16], strides = [1, 1]} : vector<16x16xf32> to vector<2x16xf32>
    %cst_111 = arith.constant dense<0.000000e+00> : vector<2x16xf32>
    %89 = tpu.matmul %81, %70, %cst_111 {dimension_numbers = #tpu.dot_dimension_numbers<[1], [0], [0], [1], [0, 0, 1, 1], [], []>} : vector<2x16xf32>, vector<16x16xf32>, vector<2x16xf32> -> vector<2x16xf32>
    %90 = arith.addf %88, %89 : vector<2x16xf32>
    %91 = vector.extract_strided_slice %36 {offsets = [0, 0], sizes = [2, 16], strides = [1, 1]} : vector<16x16xf32> to vector<2x16xf32>
    %cst_112 = arith.constant dense<0.000000e+00> : vector<2x16xf32>
    %92 = tpu.matmul %81, %72, %cst_112 {dimension_numbers = #tpu.dot_dimension_numbers<[1], [0], [0], [1], [0, 0, 1, 1], [], []>} : vector<2x16xf32>, vector<16x16xf32>, vector<2x16xf32> -> vector<2x16xf32>
    %93 = arith.addf %91, %92 : vector<2x16xf32>
    %94 = arith.negf %84 : vector<2x16xf32>
    %95 = math.exp %94 : vector<2x16xf32>
    %cst_113 = arith.constant 1.000000e+00 : f32
    %96 = vector.broadcast %cst_113 : f32 to vector<2x16xf32>
    %97 = arith.addf %96, %95 : vector<2x16xf32>
    %98 = arith.divf %96, %97 : vector<2x16xf32>
    %99 = arith.negf %87 : vector<2x16xf32>
    %100 = math.exp %99 : vector<2x16xf32>
    %cst_114 = arith.constant 1.000000e+00 : f32
    %101 = vector.broadcast %cst_114 : f32 to vector<2x16xf32>
    %102 = arith.addf %101, %100 : vector<2x16xf32>
    %103 = arith.divf %101, %102 : vector<2x16xf32>
    %104 = math.tanh %90 : vector<2x16xf32>
    %105 = arith.negf %93 : vector<2x16xf32>
    %106 = math.exp %105 : vector<2x16xf32>
    %cst_115 = arith.constant 1.000000e+00 : f32
    %107 = vector.broadcast %cst_115 : f32 to vector<2x16xf32>
    %108 = arith.addf %107, %106 : vector<2x16xf32>
    %109 = arith.divf %107, %108 : vector<2x16xf32>
    %110 = arith.mulf %103, %81 : vector<2x16xf32>
    %111 = arith.mulf %98, %104 : vector<2x16xf32>
    %112 = arith.addf %110, %111 : vector<2x16xf32>
    %113 = math.tanh %112 : vector<2x16xf32>
    %114 = arith.mulf %109, %113 : vector<2x16xf32>
    %115 = vector.extract_strided_slice %43 {offsets = [14, 0], sizes = [2, 16], strides = [1, 1]} : vector<16x16xf32> to vector<2x16xf32>
    %cst_116 = arith.constant dense<0.000000e+00> : vector<2x16xf32>
    %116 = tpu.matmul %81, %74, %cst_116 {dimension_numbers = #tpu.dot_dimension_numbers<[1], [0], [0], [1], [0, 0, 1, 1], [], []>} : vector<2x16xf32>, vector<16x16xf32>, vector<2x16xf32> -> vector<2x16xf32>
    %117 = arith.addf %115, %116 : vector<2x16xf32>
    %118 = vector.extract_strided_slice %50 {offsets = [14, 0], sizes = [2, 16], strides = [1, 1]} : vector<16x16xf32> to vector<2x16xf32>
    %cst_117 = arith.constant dense<0.000000e+00> : vector<2x16xf32>
    %119 = tpu.matmul %81, %76, %cst_117 {dimension_numbers = #tpu.dot_dimension_numbers<[1], [0], [0], [1], [0, 0, 1, 1], [], []>} : vector<2x16xf32>, vector<16x16xf32>, vector<2x16xf32> -> vector<2x16xf32>
    %120 = arith.addf %118, %119 : vector<2x16xf32>
    %121 = vector.extract_strided_slice %57 {offsets = [14, 0], sizes = [2, 16], strides = [1, 1]} : vector<16x16xf32> to vector<2x16xf32>
    %cst_118 = arith.constant dense<0.000000e+00> : vector<2x16xf32>
    %122 = tpu.matmul %81, %78, %cst_118 {dimension_numbers = #tpu.dot_dimension_numbers<[1], [0], [0], [1], [0, 0, 1, 1], [], []>} : vector<2x16xf32>, vector<16x16xf32>, vector<2x16xf32> -> vector<2x16xf32>
    %123 = arith.addf %121, %122 : vector<2x16xf32>
    %124 = vector.extract_strided_slice %64 {offsets = [14, 0], sizes = [2, 16], strides = [1, 1]} : vector<16x16xf32> to vector<2x16xf32>
    %cst_119 = arith.constant dense<0.000000e+00> : vector<2x16xf32>
    %125 = tpu.matmul %81, %80, %cst_119 {dimension_numbers = #tpu.dot_dimension_numbers<[1], [0], [0], [1], [0, 0, 1, 1], [], []>} : vector<2x16xf32>, vector<16x16xf32>, vector<2x16xf32> -> vector<2x16xf32>
    %126 = arith.addf %124, %125 : vector<2x16xf32>
    %127 = arith.negf %117 : vector<2x16xf32>
    %128 = math.exp %127 : vector<2x16xf32>
    %cst_120 = arith.constant 1.000000e+00 : f32
    %129 = vector.broadcast %cst_120 : f32 to vector<2x16xf32>
    %130 = arith.addf %129, %128 : vector<2x16xf32>
    %131 = arith.divf %129, %130 : vector<2x16xf32>
    %132 = arith.negf %120 : vector<2x16xf32>
    %133 = math.exp %132 : vector<2x16xf32>
    %cst_121 = arith.constant 1.000000e+00 : f32
    %134 = vector.broadcast %cst_121 : f32 to vector<2x16xf32>
    %135 = arith.addf %134, %133 : vector<2x16xf32>
    %136 = arith.divf %134, %135 : vector<2x16xf32>
    %137 = math.tanh %123 : vector<2x16xf32>
    %138 = arith.negf %126 : vector<2x16xf32>
    %139 = math.exp %138 : vector<2x16xf32>
    %cst_122 = arith.constant 1.000000e+00 : f32
    %140 = vector.broadcast %cst_122 : f32 to vector<2x16xf32>
    %141 = arith.addf %140, %139 : vector<2x16xf32>
    %142 = arith.divf %140, %141 : vector<2x16xf32>
    %143 = arith.mulf %136, %81 : vector<2x16xf32>
    %144 = arith.mulf %131, %137 : vector<2x16xf32>
    %145 = arith.addf %143, %144 : vector<2x16xf32>
    %146 = math.tanh %145 : vector<2x16xf32>
    %147 = arith.mulf %142, %146 : vector<2x16xf32>
    %148 = vector.extract_strided_slice %15 {offsets = [2, 0], sizes = [2, 16], strides = [1, 1]} : vector<16x16xf32> to vector<2x16xf32>
    %cst_123 = arith.constant dense<0.000000e+00> : vector<2x16xf32>
    %149 = tpu.matmul %114, %66, %cst_123 {dimension_numbers = #tpu.dot_dimension_numbers<[1], [0], [0], [1], [0, 0, 1, 1], [], []>} : vector<2x16xf32>, vector<16x16xf32>, vector<2x16xf32> -> vector<2x16xf32>
    %150 = arith.addf %148, %149 : vector<2x16xf32>
    %151 = vector.extract_strided_slice %22 {offsets = [2, 0], sizes = [2, 16], strides = [1, 1]} : vector<16x16xf32> to vector<2x16xf32>
    %cst_124 = arith.constant dense<0.000000e+00> : vector<2x16xf32>
    %152 = tpu.matmul %114, %68, %cst_124 {dimension_numbers = #tpu.dot_dimension_numbers<[1], [0], [0], [1], [0, 0, 1, 1], [], []>} : vector<2x16xf32>, vector<16x16xf32>, vector<2x16xf32> -> vector<2x16xf32>
    %153 = arith.addf %151, %152 : vector<2x16xf32>
    %154 = vector.extract_strided_slice %29 {offsets = [2, 0], sizes = [2, 16], strides = [1, 1]} : vector<16x16xf32> to vector<2x16xf32>
    %cst_125 = arith.constant dense<0.000000e+00> : vector<2x16xf32>
    %155 = tpu.matmul %114, %70, %cst_125 {dimension_numbers = #tpu.dot_dimension_numbers<[1], [0], [0], [1], [0, 0, 1, 1], [], []>} : vector<2x16xf32>, vector<16x16xf32>, vector<2x16xf32> -> vector<2x16xf32>
    %156 = arith.addf %154, %155 : vector<2x16xf32>
    %157 = vector.extract_strided_slice %36 {offsets = [2, 0], sizes = [2, 16], strides = [1, 1]} : vector<16x16xf32> to vector<2x16xf32>
    %cst_126 = arith.constant dense<0.000000e+00> : vector<2x16xf32>
    %158 = tpu.matmul %114, %72, %cst_126 {dimension_numbers = #tpu.dot_dimension_numbers<[1], [0], [0], [1], [0, 0, 1, 1], [], []>} : vector<2x16xf32>, vector<16x16xf32>, vector<2x16xf32> -> vector<2x16xf32>
    %159 = arith.addf %157, %158 : vector<2x16xf32>
    %160 = arith.negf %150 : vector<2x16xf32>
    %161 = math.exp %160 : vector<2x16xf32>
    %cst_127 = arith.constant 1.000000e+00 : f32
    %162 = vector.broadcast %cst_127 : f32 to vector<2x16xf32>
    %163 = arith.addf %162, %161 : vector<2x16xf32>
    %164 = arith.divf %162, %163 : vector<2x16xf32>
    %165 = arith.negf %153 : vector<2x16xf32>
    %166 = math.exp %165 : vector<2x16xf32>
    %cst_128 = arith.constant 1.000000e+00 : f32
    %167 = vector.broadcast %cst_128 : f32 to vector<2x16xf32>
    %168 = arith.addf %167, %166 : vector<2x16xf32>
    %169 = arith.divf %167, %168 : vector<2x16xf32>
    %170 = math.tanh %156 : vector<2x16xf32>
    %171 = arith.negf %159 : vector<2x16xf32>
    %172 = math.exp %171 : vector<2x16xf32>
    %cst_129 = arith.constant 1.000000e+00 : f32
    %173 = vector.broadcast %cst_129 : f32 to vector<2x16xf32>
    %174 = arith.addf %173, %172 : vector<2x16xf32>
    %175 = arith.divf %173, %174 : vector<2x16xf32>
    %176 = arith.mulf %169, %112 : vector<2x16xf32>
    %177 = arith.mulf %164, %170 : vector<2x16xf32>
    %178 = arith.addf %176, %177 : vector<2x16xf32>
    %179 = math.tanh %178 : vector<2x16xf32>
    %180 = arith.mulf %175, %179 : vector<2x16xf32>
    %181 = vector.extract_strided_slice %43 {offsets = [12, 0], sizes = [2, 16], strides = [1, 1]} : vector<16x16xf32> to vector<2x16xf32>
    %cst_130 = arith.constant dense<0.000000e+00> : vector<2x16xf32>
    %182 = tpu.matmul %147, %74, %cst_130 {dimension_numbers = #tpu.dot_dimension_numbers<[1], [0], [0], [1], [0, 0, 1, 1], [], []>} : vector<2x16xf32>, vector<16x16xf32>, vector<2x16xf32> -> vector<2x16xf32>
    %183 = arith.addf %181, %182 : vector<2x16xf32>
    %184 = vector.extract_strided_slice %50 {offsets = [12, 0], sizes = [2, 16], strides = [1, 1]} : vector<16x16xf32> to vector<2x16xf32>
    %cst_131 = arith.constant dense<0.000000e+00> : vector<2x16xf32>
    %185 = tpu.matmul %147, %76, %cst_131 {dimension_numbers = #tpu.dot_dimension_numbers<[1], [0], [0], [1], [0, 0, 1, 1], [], []>} : vector<2x16xf32>, vector<16x16xf32>, vector<2x16xf32> -> vector<2x16xf32>
    %186 = arith.addf %184, %185 : vector<2x16xf32>
    %187 = vector.extract_strided_slice %57 {offsets = [12, 0], sizes = [2, 16], strides = [1, 1]} : vector<16x16xf32> to vector<2x16xf32>
    %cst_132 = arith.constant dense<0.000000e+00> : vector<2x16xf32>
    %188 = tpu.matmul %147, %78, %cst_132 {dimension_numbers = #tpu.dot_dimension_numbers<[1], [0], [0], [1], [0, 0, 1, 1], [], []>} : vector<2x16xf32>, vector<16x16xf32>, vector<2x16xf32> -> vector<2x16xf32>
    %189 = arith.addf %187, %188 : vector<2x16xf32>
    %190 = vector.extract_strided_slice %64 {offsets = [12, 0], sizes = [2, 16], strides = [1, 1]} : vector<16x16xf32> to vector<2x16xf32>
    %cst_133 = arith.constant dense<0.000000e+00> : vector<2x16xf32>
    %191 = tpu.matmul %147, %80, %cst_133 {dimension_numbers = #tpu.dot_dimension_numbers<[1], [0], [0], [1], [0, 0, 1, 1], [], []>} : vector<2x16xf32>, vector<16x16xf32>, vector<2x16xf32> -> vector<2x16xf32>
    %192 = arith.addf %190, %191 : vector<2x16xf32>
    %193 = arith.negf %183 : vector<2x16xf32>
    %194 = math.exp %193 : vector<2x16xf32>
    %cst_134 = arith.constant 1.000000e+00 : f32
    %195 = vector.broadcast %cst_134 : f32 to vector<2x16xf32>
    %196 = arith.addf %195, %194 : vector<2x16xf32>
    %197 = arith.divf %195, %196 : vector<2x16xf32>
    %198 = arith.negf %186 : vector<2x16xf32>
    %199 = math.exp %198 : vector<2x16xf32>
    %cst_135 = arith.constant 1.000000e+00 : f32
    %200 = vector.broadcast %cst_135 : f32 to vector<2x16xf32>
    %201 = arith.addf %200, %199 : vector<2x16xf32>
    %202 = arith.divf %200, %201 : vector<2x16xf32>
    %203 = math.tanh %189 : vector<2x16xf32>
    %204 = arith.negf %192 : vector<2x16xf32>
    %205 = math.exp %204 : vector<2x16xf32>
    %cst_136 = arith.constant 1.000000e+00 : f32
    %206 = vector.broadcast %cst_136 : f32 to vector<2x16xf32>
    %207 = arith.addf %206, %205 : vector<2x16xf32>
    %208 = arith.divf %206, %207 : vector<2x16xf32>
    %209 = arith.mulf %202, %145 : vector<2x16xf32>
    %210 = arith.mulf %197, %203 : vector<2x16xf32>
    %211 = arith.addf %209, %210 : vector<2x16xf32>
    %212 = math.tanh %211 : vector<2x16xf32>
    %213 = arith.mulf %208, %212 : vector<2x16xf32>
    %214 = vector.extract_strided_slice %15 {offsets = [4, 0], sizes = [2, 16], strides = [1, 1]} : vector<16x16xf32> to vector<2x16xf32>
    %cst_137 = arith.constant dense<0.000000e+00> : vector<2x16xf32>
    %215 = tpu.matmul %180, %66, %cst_137 {dimension_numbers = #tpu.dot_dimension_numbers<[1], [0], [0], [1], [0, 0, 1, 1], [], []>} : vector<2x16xf32>, vector<16x16xf32>, vector<2x16xf32> -> vector<2x16xf32>
    %216 = arith.addf %214, %215 : vector<2x16xf32>
    %217 = vector.extract_strided_slice %22 {offsets = [4, 0], sizes = [2, 16], strides = [1, 1]} : vector<16x16xf32> to vector<2x16xf32>
    %cst_138 = arith.constant dense<0.000000e+00> : vector<2x16xf32>
    %218 = tpu.matmul %180, %68, %cst_138 {dimension_numbers = #tpu.dot_dimension_numbers<[1], [0], [0], [1], [0, 0, 1, 1], [], []>} : vector<2x16xf32>, vector<16x16xf32>, vector<2x16xf32> -> vector<2x16xf32>
    %219 = arith.addf %217, %218 : vector<2x16xf32>
    %220 = vector.extract_strided_slice %29 {offsets = [4, 0], sizes = [2, 16], strides = [1, 1]} : vector<16x16xf32> to vector<2x16xf32>
    %cst_139 = arith.constant dense<0.000000e+00> : vector<2x16xf32>
    %221 = tpu.matmul %180, %70, %cst_139 {dimension_numbers = #tpu.dot_dimension_numbers<[1], [0], [0], [1], [0, 0, 1, 1], [], []>} : vector<2x16xf32>, vector<16x16xf32>, vector<2x16xf32> -> vector<2x16xf32>
    %222 = arith.addf %220, %221 : vector<2x16xf32>
    %223 = vector.extract_strided_slice %36 {offsets = [4, 0], sizes = [2, 16], strides = [1, 1]} : vector<16x16xf32> to vector<2x16xf32>
    %cst_140 = arith.constant dense<0.000000e+00> : vector<2x16xf32>
    %224 = tpu.matmul %180, %72, %cst_140 {dimension_numbers = #tpu.dot_dimension_numbers<[1], [0], [0], [1], [0, 0, 1, 1], [], []>} : vector<2x16xf32>, vector<16x16xf32>, vector<2x16xf32> -> vector<2x16xf32>
    %225 = arith.addf %223, %224 : vector<2x16xf32>
    %226 = arith.negf %216 : vector<2x16xf32>
    %227 = math.exp %226 : vector<2x16xf32>
    %cst_141 = arith.constant 1.000000e+00 : f32
    %228 = vector.broadcast %cst_141 : f32 to vector<2x16xf32>
    %229 = arith.addf %228, %227 : vector<2x16xf32>
    %230 = arith.divf %228, %229 : vector<2x16xf32>
    %231 = arith.negf %219 : vector<2x16xf32>
    %232 = math.exp %231 : vector<2x16xf32>
    %cst_142 = arith.constant 1.000000e+00 : f32
    %233 = vector.broadcast %cst_142 : f32 to vector<2x16xf32>
    %234 = arith.addf %233, %232 : vector<2x16xf32>
    %235 = arith.divf %233, %234 : vector<2x16xf32>
    %236 = math.tanh %222 : vector<2x16xf32>
    %237 = arith.negf %225 : vector<2x16xf32>
    %238 = math.exp %237 : vector<2x16xf32>
    %cst_143 = arith.constant 1.000000e+00 : f32
    %239 = vector.broadcast %cst_143 : f32 to vector<2x16xf32>
    %240 = arith.addf %239, %238 : vector<2x16xf32>
    %241 = arith.divf %239, %240 : vector<2x16xf32>
    %242 = arith.mulf %235, %178 : vector<2x16xf32>
    %243 = arith.mulf %230, %236 : vector<2x16xf32>
    %244 = arith.addf %242, %243 : vector<2x16xf32>
    %245 = math.tanh %244 : vector<2x16xf32>
    %246 = arith.mulf %241, %245 : vector<2x16xf32>
    %247 = vector.extract_strided_slice %43 {offsets = [10, 0], sizes = [2, 16], strides = [1, 1]} : vector<16x16xf32> to vector<2x16xf32>
    %cst_144 = arith.constant dense<0.000000e+00> : vector<2x16xf32>
    %248 = tpu.matmul %213, %74, %cst_144 {dimension_numbers = #tpu.dot_dimension_numbers<[1], [0], [0], [1], [0, 0, 1, 1], [], []>} : vector<2x16xf32>, vector<16x16xf32>, vector<2x16xf32> -> vector<2x16xf32>
    %249 = arith.addf %247, %248 : vector<2x16xf32>
    %250 = vector.extract_strided_slice %50 {offsets = [10, 0], sizes = [2, 16], strides = [1, 1]} : vector<16x16xf32> to vector<2x16xf32>
    %cst_145 = arith.constant dense<0.000000e+00> : vector<2x16xf32>
    %251 = tpu.matmul %213, %76, %cst_145 {dimension_numbers = #tpu.dot_dimension_numbers<[1], [0], [0], [1], [0, 0, 1, 1], [], []>} : vector<2x16xf32>, vector<16x16xf32>, vector<2x16xf32> -> vector<2x16xf32>
    %252 = arith.addf %250, %251 : vector<2x16xf32>
    %253 = vector.extract_strided_slice %57 {offsets = [10, 0], sizes = [2, 16], strides = [1, 1]} : vector<16x16xf32> to vector<2x16xf32>
    %cst_146 = arith.constant dense<0.000000e+00> : vector<2x16xf32>
    %254 = tpu.matmul %213, %78, %cst_146 {dimension_numbers = #tpu.dot_dimension_numbers<[1], [0], [0], [1], [0, 0, 1, 1], [], []>} : vector<2x16xf32>, vector<16x16xf32>, vector<2x16xf32> -> vector<2x16xf32>
    %255 = arith.addf %253, %254 : vector<2x16xf32>
    %256 = vector.extract_strided_slice %64 {offsets = [10, 0], sizes = [2, 16], strides = [1, 1]} : vector<16x16xf32> to vector<2x16xf32>
    %cst_147 = arith.constant dense<0.000000e+00> : vector<2x16xf32>
    %257 = tpu.matmul %213, %80, %cst_147 {dimension_numbers = #tpu.dot_dimension_numbers<[1], [0], [0], [1], [0, 0, 1, 1], [], []>} : vector<2x16xf32>, vector<16x16xf32>, vector<2x16xf32> -> vector<2x16xf32>
    %258 = arith.addf %256, %257 : vector<2x16xf32>
    %259 = arith.negf %249 : vector<2x16xf32>
    %260 = math.exp %259 : vector<2x16xf32>
    %cst_148 = arith.constant 1.000000e+00 : f32
    %261 = vector.broadcast %cst_148 : f32 to vector<2x16xf32>
    %262 = arith.addf %261, %260 : vector<2x16xf32>
    %263 = arith.divf %261, %262 : vector<2x16xf32>
    %264 = arith.negf %252 : vector<2x16xf32>
    %265 = math.exp %264 : vector<2x16xf32>
    %cst_149 = arith.constant 1.000000e+00 : f32
    %266 = vector.broadcast %cst_149 : f32 to vector<2x16xf32>
    %267 = arith.addf %266, %265 : vector<2x16xf32>
    %268 = arith.divf %266, %267 : vector<2x16xf32>
    %269 = math.tanh %255 : vector<2x16xf32>
    %270 = arith.negf %258 : vector<2x16xf32>
    %271 = math.exp %270 : vector<2x16xf32>
    %cst_150 = arith.constant 1.000000e+00 : f32
    %272 = vector.broadcast %cst_150 : f32 to vector<2x16xf32>
    %273 = arith.addf %272, %271 : vector<2x16xf32>
    %274 = arith.divf %272, %273 : vector<2x16xf32>
    %275 = arith.mulf %268, %211 : vector<2x16xf32>
    %276 = arith.mulf %263, %269 : vector<2x16xf32>
    %277 = arith.addf %275, %276 : vector<2x16xf32>
    %278 = math.tanh %277 : vector<2x16xf32>
    %279 = arith.mulf %274, %278 : vector<2x16xf32>
    %280 = vector.extract_strided_slice %15 {offsets = [6, 0], sizes = [2, 16], strides = [1, 1]} : vector<16x16xf32> to vector<2x16xf32>
    %cst_151 = arith.constant dense<0.000000e+00> : vector<2x16xf32>
    %281 = tpu.matmul %246, %66, %cst_151 {dimension_numbers = #tpu.dot_dimension_numbers<[1], [0], [0], [1], [0, 0, 1, 1], [], []>} : vector<2x16xf32>, vector<16x16xf32>, vector<2x16xf32> -> vector<2x16xf32>
    %282 = arith.addf %280, %281 : vector<2x16xf32>
    %283 = vector.extract_strided_slice %22 {offsets = [6, 0], sizes = [2, 16], strides = [1, 1]} : vector<16x16xf32> to vector<2x16xf32>
    %cst_152 = arith.constant dense<0.000000e+00> : vector<2x16xf32>
    %284 = tpu.matmul %246, %68, %cst_152 {dimension_numbers = #tpu.dot_dimension_numbers<[1], [0], [0], [1], [0, 0, 1, 1], [], []>} : vector<2x16xf32>, vector<16x16xf32>, vector<2x16xf32> -> vector<2x16xf32>
    %285 = arith.addf %283, %284 : vector<2x16xf32>
    %286 = vector.extract_strided_slice %29 {offsets = [6, 0], sizes = [2, 16], strides = [1, 1]} : vector<16x16xf32> to vector<2x16xf32>
    %cst_153 = arith.constant dense<0.000000e+00> : vector<2x16xf32>
    %287 = tpu.matmul %246, %70, %cst_153 {dimension_numbers = #tpu.dot_dimension_numbers<[1], [0], [0], [1], [0, 0, 1, 1], [], []>} : vector<2x16xf32>, vector<16x16xf32>, vector<2x16xf32> -> vector<2x16xf32>
    %288 = arith.addf %286, %287 : vector<2x16xf32>
    %289 = vector.extract_strided_slice %36 {offsets = [6, 0], sizes = [2, 16], strides = [1, 1]} : vector<16x16xf32> to vector<2x16xf32>
    %cst_154 = arith.constant dense<0.000000e+00> : vector<2x16xf32>
    %290 = tpu.matmul %246, %72, %cst_154 {dimension_numbers = #tpu.dot_dimension_numbers<[1], [0], [0], [1], [0, 0, 1, 1], [], []>} : vector<2x16xf32>, vector<16x16xf32>, vector<2x16xf32> -> vector<2x16xf32>
    %291 = arith.addf %289, %290 : vector<2x16xf32>
    %292 = arith.negf %282 : vector<2x16xf32>
    %293 = math.exp %292 : vector<2x16xf32>
    %cst_155 = arith.constant 1.000000e+00 : f32
    %294 = vector.broadcast %cst_155 : f32 to vector<2x16xf32>
    %295 = arith.addf %294, %293 : vector<2x16xf32>
    %296 = arith.divf %294, %295 : vector<2x16xf32>
    %297 = arith.negf %285 : vector<2x16xf32>
    %298 = math.exp %297 : vector<2x16xf32>
    %cst_156 = arith.constant 1.000000e+00 : f32
    %299 = vector.broadcast %cst_156 : f32 to vector<2x16xf32>
    %300 = arith.addf %299, %298 : vector<2x16xf32>
    %301 = arith.divf %299, %300 : vector<2x16xf32>
    %302 = math.tanh %288 : vector<2x16xf32>
    %303 = arith.negf %291 : vector<2x16xf32>
    %304 = math.exp %303 : vector<2x16xf32>
    %cst_157 = arith.constant 1.000000e+00 : f32
    %305 = vector.broadcast %cst_157 : f32 to vector<2x16xf32>
    %306 = arith.addf %305, %304 : vector<2x16xf32>
    %307 = arith.divf %305, %306 : vector<2x16xf32>
    %308 = arith.mulf %301, %244 : vector<2x16xf32>
    %309 = arith.mulf %296, %302 : vector<2x16xf32>
    %310 = arith.addf %308, %309 : vector<2x16xf32>
    %311 = math.tanh %310 : vector<2x16xf32>
    %312 = arith.mulf %307, %311 : vector<2x16xf32>
    %313 = vector.extract_strided_slice %43 {offsets = [8, 0], sizes = [2, 16], strides = [1, 1]} : vector<16x16xf32> to vector<2x16xf32>
    %cst_158 = arith.constant dense<0.000000e+00> : vector<2x16xf32>
    %314 = tpu.matmul %279, %74, %cst_158 {dimension_numbers = #tpu.dot_dimension_numbers<[1], [0], [0], [1], [0, 0, 1, 1], [], []>} : vector<2x16xf32>, vector<16x16xf32>, vector<2x16xf32> -> vector<2x16xf32>
    %315 = arith.addf %313, %314 : vector<2x16xf32>
    %316 = vector.extract_strided_slice %50 {offsets = [8, 0], sizes = [2, 16], strides = [1, 1]} : vector<16x16xf32> to vector<2x16xf32>
    %cst_159 = arith.constant dense<0.000000e+00> : vector<2x16xf32>
    %317 = tpu.matmul %279, %76, %cst_159 {dimension_numbers = #tpu.dot_dimension_numbers<[1], [0], [0], [1], [0, 0, 1, 1], [], []>} : vector<2x16xf32>, vector<16x16xf32>, vector<2x16xf32> -> vector<2x16xf32>
    %318 = arith.addf %316, %317 : vector<2x16xf32>
    %319 = vector.extract_strided_slice %57 {offsets = [8, 0], sizes = [2, 16], strides = [1, 1]} : vector<16x16xf32> to vector<2x16xf32>
    %cst_160 = arith.constant dense<0.000000e+00> : vector<2x16xf32>
    %320 = tpu.matmul %279, %78, %cst_160 {dimension_numbers = #tpu.dot_dimension_numbers<[1], [0], [0], [1], [0, 0, 1, 1], [], []>} : vector<2x16xf32>, vector<16x16xf32>, vector<2x16xf32> -> vector<2x16xf32>
    %321 = arith.addf %319, %320 : vector<2x16xf32>
    %322 = vector.extract_strided_slice %64 {offsets = [8, 0], sizes = [2, 16], strides = [1, 1]} : vector<16x16xf32> to vector<2x16xf32>
    %cst_161 = arith.constant dense<0.000000e+00> : vector<2x16xf32>
    %323 = tpu.matmul %279, %80, %cst_161 {dimension_numbers = #tpu.dot_dimension_numbers<[1], [0], [0], [1], [0, 0, 1, 1], [], []>} : vector<2x16xf32>, vector<16x16xf32>, vector<2x16xf32> -> vector<2x16xf32>
    %324 = arith.addf %322, %323 : vector<2x16xf32>
    %325 = arith.negf %315 : vector<2x16xf32>
    %326 = math.exp %325 : vector<2x16xf32>
    %cst_162 = arith.constant 1.000000e+00 : f32
    %327 = vector.broadcast %cst_162 : f32 to vector<2x16xf32>
    %328 = arith.addf %327, %326 : vector<2x16xf32>
    %329 = arith.divf %327, %328 : vector<2x16xf32>
    %330 = arith.negf %318 : vector<2x16xf32>
    %331 = math.exp %330 : vector<2x16xf32>
    %cst_163 = arith.constant 1.000000e+00 : f32
    %332 = vector.broadcast %cst_163 : f32 to vector<2x16xf32>
    %333 = arith.addf %332, %331 : vector<2x16xf32>
    %334 = arith.divf %332, %333 : vector<2x16xf32>
    %335 = math.tanh %321 : vector<2x16xf32>
    %336 = arith.negf %324 : vector<2x16xf32>
    %337 = math.exp %336 : vector<2x16xf32>
    %cst_164 = arith.constant 1.000000e+00 : f32
    %338 = vector.broadcast %cst_164 : f32 to vector<2x16xf32>
    %339 = arith.addf %338, %337 : vector<2x16xf32>
    %340 = arith.divf %338, %339 : vector<2x16xf32>
    %341 = arith.mulf %334, %277 : vector<2x16xf32>
    %342 = arith.mulf %329, %335 : vector<2x16xf32>
    %343 = arith.addf %341, %342 : vector<2x16xf32>
    %344 = math.tanh %343 : vector<2x16xf32>
    %345 = arith.mulf %340, %344 : vector<2x16xf32>
    %346 = vector.extract_strided_slice %15 {offsets = [8, 0], sizes = [2, 16], strides = [1, 1]} : vector<16x16xf32> to vector<2x16xf32>
    %cst_165 = arith.constant dense<0.000000e+00> : vector<2x16xf32>
    %347 = tpu.matmul %312, %66, %cst_165 {dimension_numbers = #tpu.dot_dimension_numbers<[1], [0], [0], [1], [0, 0, 1, 1], [], []>} : vector<2x16xf32>, vector<16x16xf32>, vector<2x16xf32> -> vector<2x16xf32>
    %348 = arith.addf %346, %347 : vector<2x16xf32>
    %349 = vector.extract_strided_slice %22 {offsets = [8, 0], sizes = [2, 16], strides = [1, 1]} : vector<16x16xf32> to vector<2x16xf32>
    %cst_166 = arith.constant dense<0.000000e+00> : vector<2x16xf32>
    %350 = tpu.matmul %312, %68, %cst_166 {dimension_numbers = #tpu.dot_dimension_numbers<[1], [0], [0], [1], [0, 0, 1, 1], [], []>} : vector<2x16xf32>, vector<16x16xf32>, vector<2x16xf32> -> vector<2x16xf32>
    %351 = arith.addf %349, %350 : vector<2x16xf32>
    %352 = vector.extract_strided_slice %29 {offsets = [8, 0], sizes = [2, 16], strides = [1, 1]} : vector<16x16xf32> to vector<2x16xf32>
    %cst_167 = arith.constant dense<0.000000e+00> : vector<2x16xf32>
    %353 = tpu.matmul %312, %70, %cst_167 {dimension_numbers = #tpu.dot_dimension_numbers<[1], [0], [0], [1], [0, 0, 1, 1], [], []>} : vector<2x16xf32>, vector<16x16xf32>, vector<2x16xf32> -> vector<2x16xf32>
    %354 = arith.addf %352, %353 : vector<2x16xf32>
    %355 = vector.extract_strided_slice %36 {offsets = [8, 0], sizes = [2, 16], strides = [1, 1]} : vector<16x16xf32> to vector<2x16xf32>
    %cst_168 = arith.constant dense<0.000000e+00> : vector<2x16xf32>
    %356 = tpu.matmul %312, %72, %cst_168 {dimension_numbers = #tpu.dot_dimension_numbers<[1], [0], [0], [1], [0, 0, 1, 1], [], []>} : vector<2x16xf32>, vector<16x16xf32>, vector<2x16xf32> -> vector<2x16xf32>
    %357 = arith.addf %355, %356 : vector<2x16xf32>
    %358 = arith.negf %348 : vector<2x16xf32>
    %359 = math.exp %358 : vector<2x16xf32>
    %cst_169 = arith.constant 1.000000e+00 : f32
    %360 = vector.broadcast %cst_169 : f32 to vector<2x16xf32>
    %361 = arith.addf %360, %359 : vector<2x16xf32>
    %362 = arith.divf %360, %361 : vector<2x16xf32>
    %363 = arith.negf %351 : vector<2x16xf32>
    %364 = math.exp %363 : vector<2x16xf32>
    %cst_170 = arith.constant 1.000000e+00 : f32
    %365 = vector.broadcast %cst_170 : f32 to vector<2x16xf32>
    %366 = arith.addf %365, %364 : vector<2x16xf32>
    %367 = arith.divf %365, %366 : vector<2x16xf32>
    %368 = math.tanh %354 : vector<2x16xf32>
    %369 = arith.negf %357 : vector<2x16xf32>
    %370 = math.exp %369 : vector<2x16xf32>
    %cst_171 = arith.constant 1.000000e+00 : f32
    %371 = vector.broadcast %cst_171 : f32 to vector<2x16xf32>
    %372 = arith.addf %371, %370 : vector<2x16xf32>
    %373 = arith.divf %371, %372 : vector<2x16xf32>
    %374 = arith.mulf %367, %310 : vector<2x16xf32>
    %375 = arith.mulf %362, %368 : vector<2x16xf32>
    %376 = arith.addf %374, %375 : vector<2x16xf32>
    %377 = math.tanh %376 : vector<2x16xf32>
    %378 = arith.mulf %373, %377 : vector<2x16xf32>
    %379 = vector.extract_strided_slice %43 {offsets = [6, 0], sizes = [2, 16], strides = [1, 1]} : vector<16x16xf32> to vector<2x16xf32>
    %cst_172 = arith.constant dense<0.000000e+00> : vector<2x16xf32>
    %380 = tpu.matmul %345, %74, %cst_172 {dimension_numbers = #tpu.dot_dimension_numbers<[1], [0], [0], [1], [0, 0, 1, 1], [], []>} : vector<2x16xf32>, vector<16x16xf32>, vector<2x16xf32> -> vector<2x16xf32>
    %381 = arith.addf %379, %380 : vector<2x16xf32>
    %382 = vector.extract_strided_slice %50 {offsets = [6, 0], sizes = [2, 16], strides = [1, 1]} : vector<16x16xf32> to vector<2x16xf32>
    %cst_173 = arith.constant dense<0.000000e+00> : vector<2x16xf32>
    %383 = tpu.matmul %345, %76, %cst_173 {dimension_numbers = #tpu.dot_dimension_numbers<[1], [0], [0], [1], [0, 0, 1, 1], [], []>} : vector<2x16xf32>, vector<16x16xf32>, vector<2x16xf32> -> vector<2x16xf32>
    %384 = arith.addf %382, %383 : vector<2x16xf32>
    %385 = vector.extract_strided_slice %57 {offsets = [6, 0], sizes = [2, 16], strides = [1, 1]} : vector<16x16xf32> to vector<2x16xf32>
    %cst_174 = arith.constant dense<0.000000e+00> : vector<2x16xf32>
    %386 = tpu.matmul %345, %78, %cst_174 {dimension_numbers = #tpu.dot_dimension_numbers<[1], [0], [0], [1], [0, 0, 1, 1], [], []>} : vector<2x16xf32>, vector<16x16xf32>, vector<2x16xf32> -> vector<2x16xf32>
    %387 = arith.addf %385, %386 : vector<2x16xf32>
    %388 = vector.extract_strided_slice %64 {offsets = [6, 0], sizes = [2, 16], strides = [1, 1]} : vector<16x16xf32> to vector<2x16xf32>
    %cst_175 = arith.constant dense<0.000000e+00> : vector<2x16xf32>
    %389 = tpu.matmul %345, %80, %cst_175 {dimension_numbers = #tpu.dot_dimension_numbers<[1], [0], [0], [1], [0, 0, 1, 1], [], []>} : vector<2x16xf32>, vector<16x16xf32>, vector<2x16xf32> -> vector<2x16xf32>
    %390 = arith.addf %388, %389 : vector<2x16xf32>
    %391 = arith.negf %381 : vector<2x16xf32>
    %392 = math.exp %391 : vector<2x16xf32>
    %cst_176 = arith.constant 1.000000e+00 : f32
    %393 = vector.broadcast %cst_176 : f32 to vector<2x16xf32>
    %394 = arith.addf %393, %392 : vector<2x16xf32>
    %395 = arith.divf %393, %394 : vector<2x16xf32>
    %396 = arith.negf %384 : vector<2x16xf32>
    %397 = math.exp %396 : vector<2x16xf32>
    %cst_177 = arith.constant 1.000000e+00 : f32
    %398 = vector.broadcast %cst_177 : f32 to vector<2x16xf32>
    %399 = arith.addf %398, %397 : vector<2x16xf32>
    %400 = arith.divf %398, %399 : vector<2x16xf32>
    %401 = math.tanh %387 : vector<2x16xf32>
    %402 = arith.negf %390 : vector<2x16xf32>
    %403 = math.exp %402 : vector<2x16xf32>
    %cst_178 = arith.constant 1.000000e+00 : f32
    %404 = vector.broadcast %cst_178 : f32 to vector<2x16xf32>
    %405 = arith.addf %404, %403 : vector<2x16xf32>
    %406 = arith.divf %404, %405 : vector<2x16xf32>
    %407 = arith.mulf %400, %343 : vector<2x16xf32>
    %408 = arith.mulf %395, %401 : vector<2x16xf32>
    %409 = arith.addf %407, %408 : vector<2x16xf32>
    %410 = math.tanh %409 : vector<2x16xf32>
    %411 = arith.mulf %406, %410 : vector<2x16xf32>
    %412 = vector.extract_strided_slice %15 {offsets = [10, 0], sizes = [2, 16], strides = [1, 1]} : vector<16x16xf32> to vector<2x16xf32>
    %cst_179 = arith.constant dense<0.000000e+00> : vector<2x16xf32>
    %413 = tpu.matmul %378, %66, %cst_179 {dimension_numbers = #tpu.dot_dimension_numbers<[1], [0], [0], [1], [0, 0, 1, 1], [], []>} : vector<2x16xf32>, vector<16x16xf32>, vector<2x16xf32> -> vector<2x16xf32>
    %414 = arith.addf %412, %413 : vector<2x16xf32>
    %415 = vector.extract_strided_slice %22 {offsets = [10, 0], sizes = [2, 16], strides = [1, 1]} : vector<16x16xf32> to vector<2x16xf32>
    %cst_180 = arith.constant dense<0.000000e+00> : vector<2x16xf32>
    %416 = tpu.matmul %378, %68, %cst_180 {dimension_numbers = #tpu.dot_dimension_numbers<[1], [0], [0], [1], [0, 0, 1, 1], [], []>} : vector<2x16xf32>, vector<16x16xf32>, vector<2x16xf32> -> vector<2x16xf32>
    %417 = arith.addf %415, %416 : vector<2x16xf32>
    %418 = vector.extract_strided_slice %29 {offsets = [10, 0], sizes = [2, 16], strides = [1, 1]} : vector<16x16xf32> to vector<2x16xf32>
    %cst_181 = arith.constant dense<0.000000e+00> : vector<2x16xf32>
    %419 = tpu.matmul %378, %70, %cst_181 {dimension_numbers = #tpu.dot_dimension_numbers<[1], [0], [0], [1], [0, 0, 1, 1], [], []>} : vector<2x16xf32>, vector<16x16xf32>, vector<2x16xf32> -> vector<2x16xf32>
    %420 = arith.addf %418, %419 : vector<2x16xf32>
    %421 = vector.extract_strided_slice %36 {offsets = [10, 0], sizes = [2, 16], strides = [1, 1]} : vector<16x16xf32> to vector<2x16xf32>
    %cst_182 = arith.constant dense<0.000000e+00> : vector<2x16xf32>
    %422 = tpu.matmul %378, %72, %cst_182 {dimension_numbers = #tpu.dot_dimension_numbers<[1], [0], [0], [1], [0, 0, 1, 1], [], []>} : vector<2x16xf32>, vector<16x16xf32>, vector<2x16xf32> -> vector<2x16xf32>
    %423 = arith.addf %421, %422 : vector<2x16xf32>
    %424 = arith.negf %414 : vector<2x16xf32>
    %425 = math.exp %424 : vector<2x16xf32>
    %cst_183 = arith.constant 1.000000e+00 : f32
    %426 = vector.broadcast %cst_183 : f32 to vector<2x16xf32>
    %427 = arith.addf %426, %425 : vector<2x16xf32>
    %428 = arith.divf %426, %427 : vector<2x16xf32>
    %429 = arith.negf %417 : vector<2x16xf32>
    %430 = math.exp %429 : vector<2x16xf32>
    %cst_184 = arith.constant 1.000000e+00 : f32
    %431 = vector.broadcast %cst_184 : f32 to vector<2x16xf32>
    %432 = arith.addf %431, %430 : vector<2x16xf32>
    %433 = arith.divf %431, %432 : vector<2x16xf32>
    %434 = math.tanh %420 : vector<2x16xf32>
    %435 = arith.negf %423 : vector<2x16xf32>
    %436 = math.exp %435 : vector<2x16xf32>
    %cst_185 = arith.constant 1.000000e+00 : f32
    %437 = vector.broadcast %cst_185 : f32 to vector<2x16xf32>
    %438 = arith.addf %437, %436 : vector<2x16xf32>
    %439 = arith.divf %437, %438 : vector<2x16xf32>
    %440 = arith.mulf %433, %376 : vector<2x16xf32>
    %441 = arith.mulf %428, %434 : vector<2x16xf32>
    %442 = arith.addf %440, %441 : vector<2x16xf32>
    %443 = math.tanh %442 : vector<2x16xf32>
    %444 = arith.mulf %439, %443 : vector<2x16xf32>
    %445 = vector.extract_strided_slice %43 {offsets = [4, 0], sizes = [2, 16], strides = [1, 1]} : vector<16x16xf32> to vector<2x16xf32>
    %cst_186 = arith.constant dense<0.000000e+00> : vector<2x16xf32>
    %446 = tpu.matmul %411, %74, %cst_186 {dimension_numbers = #tpu.dot_dimension_numbers<[1], [0], [0], [1], [0, 0, 1, 1], [], []>} : vector<2x16xf32>, vector<16x16xf32>, vector<2x16xf32> -> vector<2x16xf32>
    %447 = arith.addf %445, %446 : vector<2x16xf32>
    %448 = vector.extract_strided_slice %50 {offsets = [4, 0], sizes = [2, 16], strides = [1, 1]} : vector<16x16xf32> to vector<2x16xf32>
    %cst_187 = arith.constant dense<0.000000e+00> : vector<2x16xf32>
    %449 = tpu.matmul %411, %76, %cst_187 {dimension_numbers = #tpu.dot_dimension_numbers<[1], [0], [0], [1], [0, 0, 1, 1], [], []>} : vector<2x16xf32>, vector<16x16xf32>, vector<2x16xf32> -> vector<2x16xf32>
    %450 = arith.addf %448, %449 : vector<2x16xf32>
    %451 = vector.extract_strided_slice %57 {offsets = [4, 0], sizes = [2, 16], strides = [1, 1]} : vector<16x16xf32> to vector<2x16xf32>
    %cst_188 = arith.constant dense<0.000000e+00> : vector<2x16xf32>
    %452 = tpu.matmul %411, %78, %cst_188 {dimension_numbers = #tpu.dot_dimension_numbers<[1], [0], [0], [1], [0, 0, 1, 1], [], []>} : vector<2x16xf32>, vector<16x16xf32>, vector<2x16xf32> -> vector<2x16xf32>
    %453 = arith.addf %451, %452 : vector<2x16xf32>
    %454 = vector.extract_strided_slice %64 {offsets = [4, 0], sizes = [2, 16], strides = [1, 1]} : vector<16x16xf32> to vector<2x16xf32>
    %cst_189 = arith.constant dense<0.000000e+00> : vector<2x16xf32>
    %455 = tpu.matmul %411, %80, %cst_189 {dimension_numbers = #tpu.dot_dimension_numbers<[1], [0], [0], [1], [0, 0, 1, 1], [], []>} : vector<2x16xf32>, vector<16x16xf32>, vector<2x16xf32> -> vector<2x16xf32>
    %456 = arith.addf %454, %455 : vector<2x16xf32>
    %457 = arith.negf %447 : vector<2x16xf32>
    %458 = math.exp %457 : vector<2x16xf32>
    %cst_190 = arith.constant 1.000000e+00 : f32
    %459 = vector.broadcast %cst_190 : f32 to vector<2x16xf32>
    %460 = arith.addf %459, %458 : vector<2x16xf32>
    %461 = arith.divf %459, %460 : vector<2x16xf32>
    %462 = arith.negf %450 : vector<2x16xf32>
    %463 = math.exp %462 : vector<2x16xf32>
    %cst_191 = arith.constant 1.000000e+00 : f32
    %464 = vector.broadcast %cst_191 : f32 to vector<2x16xf32>
    %465 = arith.addf %464, %463 : vector<2x16xf32>
    %466 = arith.divf %464, %465 : vector<2x16xf32>
    %467 = math.tanh %453 : vector<2x16xf32>
    %468 = arith.negf %456 : vector<2x16xf32>
    %469 = math.exp %468 : vector<2x16xf32>
    %cst_192 = arith.constant 1.000000e+00 : f32
    %470 = vector.broadcast %cst_192 : f32 to vector<2x16xf32>
    %471 = arith.addf %470, %469 : vector<2x16xf32>
    %472 = arith.divf %470, %471 : vector<2x16xf32>
    %473 = arith.mulf %466, %409 : vector<2x16xf32>
    %474 = arith.mulf %461, %467 : vector<2x16xf32>
    %475 = arith.addf %473, %474 : vector<2x16xf32>
    %476 = math.tanh %475 : vector<2x16xf32>
    %477 = arith.mulf %472, %476 : vector<2x16xf32>
    %478 = vector.extract_strided_slice %15 {offsets = [12, 0], sizes = [2, 16], strides = [1, 1]} : vector<16x16xf32> to vector<2x16xf32>
    %cst_193 = arith.constant dense<0.000000e+00> : vector<2x16xf32>
    %479 = tpu.matmul %444, %66, %cst_193 {dimension_numbers = #tpu.dot_dimension_numbers<[1], [0], [0], [1], [0, 0, 1, 1], [], []>} : vector<2x16xf32>, vector<16x16xf32>, vector<2x16xf32> -> vector<2x16xf32>
    %480 = arith.addf %478, %479 : vector<2x16xf32>
    %481 = vector.extract_strided_slice %22 {offsets = [12, 0], sizes = [2, 16], strides = [1, 1]} : vector<16x16xf32> to vector<2x16xf32>
    %cst_194 = arith.constant dense<0.000000e+00> : vector<2x16xf32>
    %482 = tpu.matmul %444, %68, %cst_194 {dimension_numbers = #tpu.dot_dimension_numbers<[1], [0], [0], [1], [0, 0, 1, 1], [], []>} : vector<2x16xf32>, vector<16x16xf32>, vector<2x16xf32> -> vector<2x16xf32>
    %483 = arith.addf %481, %482 : vector<2x16xf32>
    %484 = vector.extract_strided_slice %29 {offsets = [12, 0], sizes = [2, 16], strides = [1, 1]} : vector<16x16xf32> to vector<2x16xf32>
    %cst_195 = arith.constant dense<0.000000e+00> : vector<2x16xf32>
    %485 = tpu.matmul %444, %70, %cst_195 {dimension_numbers = #tpu.dot_dimension_numbers<[1], [0], [0], [1], [0, 0, 1, 1], [], []>} : vector<2x16xf32>, vector<16x16xf32>, vector<2x16xf32> -> vector<2x16xf32>
    %486 = arith.addf %484, %485 : vector<2x16xf32>
    %487 = vector.extract_strided_slice %36 {offsets = [12, 0], sizes = [2, 16], strides = [1, 1]} : vector<16x16xf32> to vector<2x16xf32>
    %cst_196 = arith.constant dense<0.000000e+00> : vector<2x16xf32>
    %488 = tpu.matmul %444, %72, %cst_196 {dimension_numbers = #tpu.dot_dimension_numbers<[1], [0], [0], [1], [0, 0, 1, 1], [], []>} : vector<2x16xf32>, vector<16x16xf32>, vector<2x16xf32> -> vector<2x16xf32>
    %489 = arith.addf %487, %488 : vector<2x16xf32>
    %490 = arith.negf %480 : vector<2x16xf32>
    %491 = math.exp %490 : vector<2x16xf32>
    %cst_197 = arith.constant 1.000000e+00 : f32
    %492 = vector.broadcast %cst_197 : f32 to vector<2x16xf32>
    %493 = arith.addf %492, %491 : vector<2x16xf32>
    %494 = arith.divf %492, %493 : vector<2x16xf32>
    %495 = arith.negf %483 : vector<2x16xf32>
    %496 = math.exp %495 : vector<2x16xf32>
    %cst_198 = arith.constant 1.000000e+00 : f32
    %497 = vector.broadcast %cst_198 : f32 to vector<2x16xf32>
    %498 = arith.addf %497, %496 : vector<2x16xf32>
    %499 = arith.divf %497, %498 : vector<2x16xf32>
    %500 = math.tanh %486 : vector<2x16xf32>
    %501 = arith.negf %489 : vector<2x16xf32>
    %502 = math.exp %501 : vector<2x16xf32>
    %cst_199 = arith.constant 1.000000e+00 : f32
    %503 = vector.broadcast %cst_199 : f32 to vector<2x16xf32>
    %504 = arith.addf %503, %502 : vector<2x16xf32>
    %505 = arith.divf %503, %504 : vector<2x16xf32>
    %506 = arith.mulf %499, %442 : vector<2x16xf32>
    %507 = arith.mulf %494, %500 : vector<2x16xf32>
    %508 = arith.addf %506, %507 : vector<2x16xf32>
    %509 = math.tanh %508 : vector<2x16xf32>
    %510 = arith.mulf %505, %509 : vector<2x16xf32>
    %511 = vector.extract_strided_slice %43 {offsets = [2, 0], sizes = [2, 16], strides = [1, 1]} : vector<16x16xf32> to vector<2x16xf32>
    %cst_200 = arith.constant dense<0.000000e+00> : vector<2x16xf32>
    %512 = tpu.matmul %477, %74, %cst_200 {dimension_numbers = #tpu.dot_dimension_numbers<[1], [0], [0], [1], [0, 0, 1, 1], [], []>} : vector<2x16xf32>, vector<16x16xf32>, vector<2x16xf32> -> vector<2x16xf32>
    %513 = arith.addf %511, %512 : vector<2x16xf32>
    %514 = vector.extract_strided_slice %50 {offsets = [2, 0], sizes = [2, 16], strides = [1, 1]} : vector<16x16xf32> to vector<2x16xf32>
    %cst_201 = arith.constant dense<0.000000e+00> : vector<2x16xf32>
    %515 = tpu.matmul %477, %76, %cst_201 {dimension_numbers = #tpu.dot_dimension_numbers<[1], [0], [0], [1], [0, 0, 1, 1], [], []>} : vector<2x16xf32>, vector<16x16xf32>, vector<2x16xf32> -> vector<2x16xf32>
    %516 = arith.addf %514, %515 : vector<2x16xf32>
    %517 = vector.extract_strided_slice %57 {offsets = [2, 0], sizes = [2, 16], strides = [1, 1]} : vector<16x16xf32> to vector<2x16xf32>
    %cst_202 = arith.constant dense<0.000000e+00> : vector<2x16xf32>
    %518 = tpu.matmul %477, %78, %cst_202 {dimension_numbers = #tpu.dot_dimension_numbers<[1], [0], [0], [1], [0, 0, 1, 1], [], []>} : vector<2x16xf32>, vector<16x16xf32>, vector<2x16xf32> -> vector<2x16xf32>
    %519 = arith.addf %517, %518 : vector<2x16xf32>
    %520 = vector.extract_strided_slice %64 {offsets = [2, 0], sizes = [2, 16], strides = [1, 1]} : vector<16x16xf32> to vector<2x16xf32>
    %cst_203 = arith.constant dense<0.000000e+00> : vector<2x16xf32>
    %521 = tpu.matmul %477, %80, %cst_203 {dimension_numbers = #tpu.dot_dimension_numbers<[1], [0], [0], [1], [0, 0, 1, 1], [], []>} : vector<2x16xf32>, vector<16x16xf32>, vector<2x16xf32> -> vector<2x16xf32>
    %522 = arith.addf %520, %521 : vector<2x16xf32>
    %523 = arith.negf %513 : vector<2x16xf32>
    %524 = math.exp %523 : vector<2x16xf32>
    %cst_204 = arith.constant 1.000000e+00 : f32
    %525 = vector.broadcast %cst_204 : f32 to vector<2x16xf32>
    %526 = arith.addf %525, %524 : vector<2x16xf32>
    %527 = arith.divf %525, %526 : vector<2x16xf32>
    %528 = arith.negf %516 : vector<2x16xf32>
    %529 = math.exp %528 : vector<2x16xf32>
    %cst_205 = arith.constant 1.000000e+00 : f32
    %530 = vector.broadcast %cst_205 : f32 to vector<2x16xf32>
    %531 = arith.addf %530, %529 : vector<2x16xf32>
    %532 = arith.divf %530, %531 : vector<2x16xf32>
    %533 = math.tanh %519 : vector<2x16xf32>
    %534 = arith.negf %522 : vector<2x16xf32>
    %535 = math.exp %534 : vector<2x16xf32>
    %cst_206 = arith.constant 1.000000e+00 : f32
    %536 = vector.broadcast %cst_206 : f32 to vector<2x16xf32>
    %537 = arith.addf %536, %535 : vector<2x16xf32>
    %538 = arith.divf %536, %537 : vector<2x16xf32>
    %539 = arith.mulf %532, %475 : vector<2x16xf32>
    %540 = arith.mulf %527, %533 : vector<2x16xf32>
    %541 = arith.addf %539, %540 : vector<2x16xf32>
    %542 = math.tanh %541 : vector<2x16xf32>
    %543 = arith.mulf %538, %542 : vector<2x16xf32>
    %544 = vector.extract_strided_slice %15 {offsets = [14, 0], sizes = [2, 16], strides = [1, 1]} : vector<16x16xf32> to vector<2x16xf32>
    %cst_207 = arith.constant dense<0.000000e+00> : vector<2x16xf32>
    %545 = tpu.matmul %510, %66, %cst_207 {dimension_numbers = #tpu.dot_dimension_numbers<[1], [0], [0], [1], [0, 0, 1, 1], [], []>} : vector<2x16xf32>, vector<16x16xf32>, vector<2x16xf32> -> vector<2x16xf32>
    %546 = arith.addf %544, %545 : vector<2x16xf32>
    %547 = vector.extract_strided_slice %22 {offsets = [14, 0], sizes = [2, 16], strides = [1, 1]} : vector<16x16xf32> to vector<2x16xf32>
    %cst_208 = arith.constant dense<0.000000e+00> : vector<2x16xf32>
    %548 = tpu.matmul %510, %68, %cst_208 {dimension_numbers = #tpu.dot_dimension_numbers<[1], [0], [0], [1], [0, 0, 1, 1], [], []>} : vector<2x16xf32>, vector<16x16xf32>, vector<2x16xf32> -> vector<2x16xf32>
    %549 = arith.addf %547, %548 : vector<2x16xf32>
    %550 = vector.extract_strided_slice %29 {offsets = [14, 0], sizes = [2, 16], strides = [1, 1]} : vector<16x16xf32> to vector<2x16xf32>
    %cst_209 = arith.constant dense<0.000000e+00> : vector<2x16xf32>
    %551 = tpu.matmul %510, %70, %cst_209 {dimension_numbers = #tpu.dot_dimension_numbers<[1], [0], [0], [1], [0, 0, 1, 1], [], []>} : vector<2x16xf32>, vector<16x16xf32>, vector<2x16xf32> -> vector<2x16xf32>
    %552 = arith.addf %550, %551 : vector<2x16xf32>
    %553 = vector.extract_strided_slice %36 {offsets = [14, 0], sizes = [2, 16], strides = [1, 1]} : vector<16x16xf32> to vector<2x16xf32>
    %cst_210 = arith.constant dense<0.000000e+00> : vector<2x16xf32>
    %554 = tpu.matmul %510, %72, %cst_210 {dimension_numbers = #tpu.dot_dimension_numbers<[1], [0], [0], [1], [0, 0, 1, 1], [], []>} : vector<2x16xf32>, vector<16x16xf32>, vector<2x16xf32> -> vector<2x16xf32>
    %555 = arith.addf %553, %554 : vector<2x16xf32>
    %556 = arith.negf %546 : vector<2x16xf32>
    %557 = math.exp %556 : vector<2x16xf32>
    %cst_211 = arith.constant 1.000000e+00 : f32
    %558 = vector.broadcast %cst_211 : f32 to vector<2x16xf32>
    %559 = arith.addf %558, %557 : vector<2x16xf32>
    %560 = arith.divf %558, %559 : vector<2x16xf32>
    %561 = arith.negf %549 : vector<2x16xf32>
    %562 = math.exp %561 : vector<2x16xf32>
    %cst_212 = arith.constant 1.000000e+00 : f32
    %563 = vector.broadcast %cst_212 : f32 to vector<2x16xf32>
    %564 = arith.addf %563, %562 : vector<2x16xf32>
    %565 = arith.divf %563, %564 : vector<2x16xf32>
    %566 = math.tanh %552 : vector<2x16xf32>
    %567 = arith.negf %555 : vector<2x16xf32>
    %568 = math.exp %567 : vector<2x16xf32>
    %cst_213 = arith.constant 1.000000e+00 : f32
    %569 = vector.broadcast %cst_213 : f32 to vector<2x16xf32>
    %570 = arith.addf %569, %568 : vector<2x16xf32>
    %571 = arith.divf %569, %570 : vector<2x16xf32>
    %572 = arith.mulf %565, %508 : vector<2x16xf32>
    %573 = arith.mulf %560, %566 : vector<2x16xf32>
    %574 = arith.addf %572, %573 : vector<2x16xf32>
    %575 = math.tanh %574 : vector<2x16xf32>
    %576 = arith.mulf %571, %575 : vector<2x16xf32>
    %577 = vector.extract_strided_slice %43 {offsets = [0, 0], sizes = [2, 16], strides = [1, 1]} : vector<16x16xf32> to vector<2x16xf32>
    %cst_214 = arith.constant dense<0.000000e+00> : vector<2x16xf32>
    %578 = tpu.matmul %543, %74, %cst_214 {dimension_numbers = #tpu.dot_dimension_numbers<[1], [0], [0], [1], [0, 0, 1, 1], [], []>} : vector<2x16xf32>, vector<16x16xf32>, vector<2x16xf32> -> vector<2x16xf32>
    %579 = arith.addf %577, %578 : vector<2x16xf32>
    %580 = vector.extract_strided_slice %50 {offsets = [0, 0], sizes = [2, 16], strides = [1, 1]} : vector<16x16xf32> to vector<2x16xf32>
    %cst_215 = arith.constant dense<0.000000e+00> : vector<2x16xf32>
    %581 = tpu.matmul %543, %76, %cst_215 {dimension_numbers = #tpu.dot_dimension_numbers<[1], [0], [0], [1], [0, 0, 1, 1], [], []>} : vector<2x16xf32>, vector<16x16xf32>, vector<2x16xf32> -> vector<2x16xf32>
    %582 = arith.addf %580, %581 : vector<2x16xf32>
    %583 = vector.extract_strided_slice %57 {offsets = [0, 0], sizes = [2, 16], strides = [1, 1]} : vector<16x16xf32> to vector<2x16xf32>
    %cst_216 = arith.constant dense<0.000000e+00> : vector<2x16xf32>
    %584 = tpu.matmul %543, %78, %cst_216 {dimension_numbers = #tpu.dot_dimension_numbers<[1], [0], [0], [1], [0, 0, 1, 1], [], []>} : vector<2x16xf32>, vector<16x16xf32>, vector<2x16xf32> -> vector<2x16xf32>
    %585 = arith.addf %583, %584 : vector<2x16xf32>
    %586 = vector.extract_strided_slice %64 {offsets = [0, 0], sizes = [2, 16], strides = [1, 1]} : vector<16x16xf32> to vector<2x16xf32>
    %cst_217 = arith.constant dense<0.000000e+00> : vector<2x16xf32>
    %587 = tpu.matmul %543, %80, %cst_217 {dimension_numbers = #tpu.dot_dimension_numbers<[1], [0], [0], [1], [0, 0, 1, 1], [], []>} : vector<2x16xf32>, vector<16x16xf32>, vector<2x16xf32> -> vector<2x16xf32>
    %588 = arith.addf %586, %587 : vector<2x16xf32>
    %589 = arith.negf %579 : vector<2x16xf32>
    %590 = math.exp %589 : vector<2x16xf32>
    %cst_218 = arith.constant 1.000000e+00 : f32
    %591 = vector.broadcast %cst_218 : f32 to vector<2x16xf32>
    %592 = arith.addf %591, %590 : vector<2x16xf32>
    %593 = arith.divf %591, %592 : vector<2x16xf32>
    %594 = arith.negf %582 : vector<2x16xf32>
    %595 = math.exp %594 : vector<2x16xf32>
    %cst_219 = arith.constant 1.000000e+00 : f32
    %596 = vector.broadcast %cst_219 : f32 to vector<2x16xf32>
    %597 = arith.addf %596, %595 : vector<2x16xf32>
    %598 = arith.divf %596, %597 : vector<2x16xf32>
    %599 = math.tanh %585 : vector<2x16xf32>
    %600 = arith.negf %588 : vector<2x16xf32>
    %601 = math.exp %600 : vector<2x16xf32>
    %cst_220 = arith.constant 1.000000e+00 : f32
    %602 = vector.broadcast %cst_220 : f32 to vector<2x16xf32>
    %603 = arith.addf %602, %601 : vector<2x16xf32>
    %604 = arith.divf %602, %603 : vector<2x16xf32>
    %605 = arith.mulf %598, %541 : vector<2x16xf32>
    %606 = arith.mulf %593, %599 : vector<2x16xf32>
    %607 = arith.addf %605, %606 : vector<2x16xf32>
    %608 = math.tanh %607 : vector<2x16xf32>
    %609 = arith.mulf %604, %608 : vector<2x16xf32>
    %610 = tpu.concatenate %114, %180, %246, %312, %378, %444, %510, %576 in 0 : vector<2x16xf32>, vector<2x16xf32>, vector<2x16xf32>, vector<2x16xf32>, vector<2x16xf32>, vector<2x16xf32>, vector<2x16xf32>, vector<2x16xf32> -> vector<16x16xf32>
    %611 = tpu.concatenate %609, %543, %477, %411, %345, %279, %213, %147 in 0 : vector<2x16xf32>, vector<2x16xf32>, vector<2x16xf32>, vector<2x16xf32>, vector<2x16xf32>, vector<2x16xf32>, vector<2x16xf32>, vector<2x16xf32> -> vector<16x16xf32>
    %c0_221 = arith.constant 0 : index
    %c0_222 = arith.constant 0 : index
    %c0_223 = arith.constant 0 : index
    %612 = vector.load %arg6[%c0_221, %c0_222, %c0_223] : memref<2x16x8xf32, #tpu.memory_space<vmem>>, vector<1x16x8xf32>
    %613 = vector.shape_cast %612 : vector<1x16x8xf32> to vector<16x8xf32>
    %cst_224 = arith.constant dense<0.000000e+00> : vector<16x8xf32>
    %614 = tpu.matmul %610, %613, %cst_224 {dimension_numbers = #tpu.dot_dimension_numbers<[1], [0], [0], [1], [0, 0, 1, 1], [], []>} : vector<16x16xf32>, vector<16x8xf32>, vector<16x8xf32> -> vector<16x8xf32>
    %c1_225 = arith.constant 1 : index
    %c0_226 = arith.constant 0 : index
    %c0_227 = arith.constant 0 : index
    %615 = vector.load %arg6[%c1_225, %c0_226, %c0_227] : memref<2x16x8xf32, #tpu.memory_space<vmem>>, vector<1x16x8xf32>
    %616 = vector.shape_cast %615 : vector<1x16x8xf32> to vector<16x8xf32>
    %cst_228 = arith.constant dense<0.000000e+00> : vector<16x8xf32>
    %617 = tpu.matmul %611, %616, %cst_228 {dimension_numbers = #tpu.dot_dimension_numbers<[1], [0], [0], [1], [0, 0, 1, 1], [], []>} : vector<16x16xf32>, vector<16x8xf32>, vector<16x8xf32> -> vector<16x8xf32>
    %618 = arith.addf %614, %617 : vector<16x8xf32>
    %c0_229 = arith.constant 0 : index
    %c0_230 = arith.constant 0 : index
    %619 = vector.load %arg7[%c0_229, %c0_230] : memref<1x8xf32, #tpu.memory_space<vmem>>, vector<1x8xf32>
    %620 = vector.broadcast %619 : vector<1x8xf32> to vector<16x8xf32>
    %621 = arith.addf %618, %620 : vector<16x8xf32>
    %c0_231 = arith.constant 0 : index
    %c0_232 = arith.constant 0 : index
    %622 = vector.load %arg8[%c0_231, %c0_232] : memref<8x8xf32, #tpu.memory_space<vmem>>, vector<8x8xf32>
    %c0_233 = arith.constant 0 : index
    %c0_234 = arith.constant 0 : index
    %623 = vector.load %arg9[%c0_233, %c0_234] : memref<1x8xf32, #tpu.memory_space<vmem>>, vector<1x8xf32>
    %c0_235 = arith.constant 0 : index
    %c0_236 = arith.constant 0 : index
    %624 = vector.load %arg10[%c0_235, %c0_236] : memref<1x8xf32, #tpu.memory_space<vmem>>, vector<1x8xf32>
    %625 = vector.extract_strided_slice %621 {offsets = [0, 0], sizes = [2, 8], strides = [1, 1]} : vector<16x8xf32> to vector<2x8xf32>
    %c0_237 = arith.constant 0 : index
    %c0_238 = arith.constant 0 : index
    %c0_239 = arith.constant 0 : index
    %626 = vector.load %arg11[%c0_237, %c0_238, %c0_239] : memref<8x2x8xf32, #tpu.memory_space<vmem>>, vector<1x2x8xf32>
    %627 = vector.shape_cast %626 : vector<1x2x8xf32> to vector<2x8xf32>
    %c0_240 = arith.constant 0 : index
    %c0_241 = arith.constant 0 : index
    %c0_242 = arith.constant 0 : index
    %628 = vector.load %arg12[%c0_240, %c0_241, %c0_242] : memref<8x2x1xf32, #tpu.memory_space<vmem>>, vector<1x2x1xf32>
    %629 = vector.shape_cast %628 : vector<1x2x1xf32> to vector<2x1xf32>
    %630 = vector.broadcast %623 : vector<1x8xf32> to vector<2x8xf32>
    %631 = arith.addf %630, %625 : vector<2x8xf32>
    %632 = arith.mulf %631, %627 : vector<2x8xf32>
    %cst_243 = arith.constant dense<0.000000e+00> : vector<2xf32>
    %633 = vector.multi_reduction <add>, %632, %cst_243 [1] : vector<2x8xf32> to vector<2xf32>
    %634 = vector.shape_cast %633 : vector<2xf32> to vector<2x1xf32>
    %635 = arith.mulf %634, %629 : vector<2x1xf32>
    %636 = vector.extract_strided_slice %621 {offsets = [2, 0], sizes = [2, 8], strides = [1, 1]} : vector<16x8xf32> to vector<2x8xf32>
    %c1_244 = arith.constant 1 : index
    %c0_245 = arith.constant 0 : index
    %c0_246 = arith.constant 0 : index
    %637 = vector.load %arg11[%c1_244, %c0_245, %c0_246] : memref<8x2x8xf32, #tpu.memory_space<vmem>>, vector<1x2x8xf32>
    %638 = vector.shape_cast %637 : vector<1x2x8xf32> to vector<2x8xf32>
    %c1_247 = arith.constant 1 : index
    %c0_248 = arith.constant 0 : index
    %c0_249 = arith.constant 0 : index
    %639 = vector.load %arg12[%c1_247, %c0_248, %c0_249] : memref<8x2x1xf32, #tpu.memory_space<vmem>>, vector<1x2x1xf32>
    %640 = vector.shape_cast %639 : vector<1x2x1xf32> to vector<2x1xf32>
    %641 = vector.shape_cast %631 : vector<2x8xf32> to vector<2x1x8xf32>
    %642 = vector.shape_cast %622 : vector<8x8xf32> to vector<1x8x8xf32>
    %643 = vector.broadcast %641 : vector<2x1x8xf32> to vector<2x8x8xf32>
    %644 = vector.broadcast %642 : vector<1x8x8xf32> to vector<2x8x8xf32>
    %645 = arith.addf %643, %644 : vector<2x8x8xf32>
    %cst_250 = arith.constant dense<0xFF800000> : vector<2x8xf32>
    %646 = vector.multi_reduction <maximumf>, %645, %cst_250 [2] : vector<2x8x8xf32> to vector<2x8xf32>
    %647 = vector.shape_cast %646 : vector<2x8xf32> to vector<2x8x1xf32>
    %648 = vector.shape_cast %647 : vector<2x8x1xf32> to vector<2x8xf32>
    %649 = vector.broadcast %647 : vector<2x8x1xf32> to vector<2x8x8xf32>
    %650 = arith.subf %645, %649 : vector<2x8x8xf32>
    %651 = math.exp %650 : vector<2x8x8xf32>
    %cst_251 = arith.constant dense<0.000000e+00> : vector<2x8xf32>
    %652 = vector.multi_reduction <add>, %651, %cst_251 [2] : vector<2x8x8xf32> to vector<2x8xf32>
    %653 = math.log %652 : vector<2x8xf32>
    %654 = arith.addf %648, %653 : vector<2x8xf32>
    %655 = arith.addf %654, %636 : vector<2x8xf32>
    %cst_252 = arith.constant 0.000000e+00 : f32
    %656 = vector.broadcast %cst_252 : f32 to vector<2x1xf32>
    %657 = arith.cmpf ogt, %640, %656 : vector<2x1xf32>
    %658 = vector.shape_cast %657 : vector<2x1xi1> to vector<2x1xi1>
    %659 = vector.broadcast %658 : vector<2x1xi1> to vector<2x8xi1>
    %660 = arith.select %659, %655, %631 : vector<2x8xi1>, vector<2x8xf32>
    %661 = arith.mulf %636, %638 : vector<2x8xf32>
    %cst_253 = arith.constant dense<0.000000e+00> : vector<2xf32>
    %662 = vector.multi_reduction <add>, %661, %cst_253 [1] : vector<2x8xf32> to vector<2xf32>
    %663 = vector.shape_cast %662 : vector<2xf32> to vector<2x1xf32>
    %cst_254 = arith.constant dense<0.000000e+00> : vector<2x8xf32>
    %664 = tpu.matmul %638, %622, %cst_254 {dimension_numbers = #tpu.dot_dimension_numbers<[1], [0], [0], [1], [0, 0, 1, 1], [], []>} : vector<2x8xf32>, vector<8x8xf32>, vector<2x8xf32> -> vector<2x8xf32>
    %665 = arith.mulf %664, %627 : vector<2x8xf32>
    %cst_255 = arith.constant dense<0.000000e+00> : vector<2xf32>
    %666 = vector.multi_reduction <add>, %665, %cst_255 [1] : vector<2x8xf32> to vector<2xf32>
    %667 = vector.shape_cast %666 : vector<2xf32> to vector<2x1xf32>
    %668 = arith.addf %663, %667 : vector<2x1xf32>
    %669 = arith.mulf %668, %640 : vector<2x1xf32>
    %670 = arith.addf %635, %669 : vector<2x1xf32>
    %cst_256 = arith.constant 0.000000e+00 : f32
    %671 = vector.broadcast %cst_256 : f32 to vector<2x1xf32>
    %672 = arith.cmpf ogt, %640, %671 : vector<2x1xf32>
    %673 = vector.shape_cast %672 : vector<2x1xi1> to vector<2x1xi1>
    %674 = vector.broadcast %673 : vector<2x1xi1> to vector<2x8xi1>
    %675 = arith.select %674, %638, %627 : vector<2x8xi1>, vector<2x8xf32>
    %676 = vector.extract_strided_slice %621 {offsets = [4, 0], sizes = [2, 8], strides = [1, 1]} : vector<16x8xf32> to vector<2x8xf32>
    %c2_257 = arith.constant 2 : index
    %c0_258 = arith.constant 0 : index
    %c0_259 = arith.constant 0 : index
    %677 = vector.load %arg11[%c2_257, %c0_258, %c0_259] : memref<8x2x8xf32, #tpu.memory_space<vmem>>, vector<1x2x8xf32>
    %678 = vector.shape_cast %677 : vector<1x2x8xf32> to vector<2x8xf32>
    %c2_260 = arith.constant 2 : index
    %c0_261 = arith.constant 0 : index
    %c0_262 = arith.constant 0 : index
    %679 = vector.load %arg12[%c2_260, %c0_261, %c0_262] : memref<8x2x1xf32, #tpu.memory_space<vmem>>, vector<1x2x1xf32>
    %680 = vector.shape_cast %679 : vector<1x2x1xf32> to vector<2x1xf32>
    %681 = vector.shape_cast %660 : vector<2x8xf32> to vector<2x1x8xf32>
    %682 = vector.shape_cast %622 : vector<8x8xf32> to vector<1x8x8xf32>
    %683 = vector.broadcast %681 : vector<2x1x8xf32> to vector<2x8x8xf32>
    %684 = vector.broadcast %682 : vector<1x8x8xf32> to vector<2x8x8xf32>
    %685 = arith.addf %683, %684 : vector<2x8x8xf32>
    %cst_263 = arith.constant dense<0xFF800000> : vector<2x8xf32>
    %686 = vector.multi_reduction <maximumf>, %685, %cst_263 [2] : vector<2x8x8xf32> to vector<2x8xf32>
    %687 = vector.shape_cast %686 : vector<2x8xf32> to vector<2x8x1xf32>
    %688 = vector.shape_cast %687 : vector<2x8x1xf32> to vector<2x8xf32>
    %689 = vector.broadcast %687 : vector<2x8x1xf32> to vector<2x8x8xf32>
    %690 = arith.subf %685, %689 : vector<2x8x8xf32>
    %691 = math.exp %690 : vector<2x8x8xf32>
    %cst_264 = arith.constant dense<0.000000e+00> : vector<2x8xf32>
    %692 = vector.multi_reduction <add>, %691, %cst_264 [2] : vector<2x8x8xf32> to vector<2x8xf32>
    %693 = math.log %692 : vector<2x8xf32>
    %694 = arith.addf %688, %693 : vector<2x8xf32>
    %695 = arith.addf %694, %676 : vector<2x8xf32>
    %cst_265 = arith.constant 0.000000e+00 : f32
    %696 = vector.broadcast %cst_265 : f32 to vector<2x1xf32>
    %697 = arith.cmpf ogt, %680, %696 : vector<2x1xf32>
    %698 = vector.shape_cast %697 : vector<2x1xi1> to vector<2x1xi1>
    %699 = vector.broadcast %698 : vector<2x1xi1> to vector<2x8xi1>
    %700 = arith.select %699, %695, %660 : vector<2x8xi1>, vector<2x8xf32>
    %701 = arith.mulf %676, %678 : vector<2x8xf32>
    %cst_266 = arith.constant dense<0.000000e+00> : vector<2xf32>
    %702 = vector.multi_reduction <add>, %701, %cst_266 [1] : vector<2x8xf32> to vector<2xf32>
    %703 = vector.shape_cast %702 : vector<2xf32> to vector<2x1xf32>
    %cst_267 = arith.constant dense<0.000000e+00> : vector<2x8xf32>
    %704 = tpu.matmul %678, %622, %cst_267 {dimension_numbers = #tpu.dot_dimension_numbers<[1], [0], [0], [1], [0, 0, 1, 1], [], []>} : vector<2x8xf32>, vector<8x8xf32>, vector<2x8xf32> -> vector<2x8xf32>
    %705 = arith.mulf %704, %675 : vector<2x8xf32>
    %cst_268 = arith.constant dense<0.000000e+00> : vector<2xf32>
    %706 = vector.multi_reduction <add>, %705, %cst_268 [1] : vector<2x8xf32> to vector<2xf32>
    %707 = vector.shape_cast %706 : vector<2xf32> to vector<2x1xf32>
    %708 = arith.addf %703, %707 : vector<2x1xf32>
    %709 = arith.mulf %708, %680 : vector<2x1xf32>
    %710 = arith.addf %670, %709 : vector<2x1xf32>
    %cst_269 = arith.constant 0.000000e+00 : f32
    %711 = vector.broadcast %cst_269 : f32 to vector<2x1xf32>
    %712 = arith.cmpf ogt, %680, %711 : vector<2x1xf32>
    %713 = vector.shape_cast %712 : vector<2x1xi1> to vector<2x1xi1>
    %714 = vector.broadcast %713 : vector<2x1xi1> to vector<2x8xi1>
    %715 = arith.select %714, %678, %675 : vector<2x8xi1>, vector<2x8xf32>
    %716 = vector.extract_strided_slice %621 {offsets = [6, 0], sizes = [2, 8], strides = [1, 1]} : vector<16x8xf32> to vector<2x8xf32>
    %c3_270 = arith.constant 3 : index
    %c0_271 = arith.constant 0 : index
    %c0_272 = arith.constant 0 : index
    %717 = vector.load %arg11[%c3_270, %c0_271, %c0_272] : memref<8x2x8xf32, #tpu.memory_space<vmem>>, vector<1x2x8xf32>
    %718 = vector.shape_cast %717 : vector<1x2x8xf32> to vector<2x8xf32>
    %c3_273 = arith.constant 3 : index
    %c0_274 = arith.constant 0 : index
    %c0_275 = arith.constant 0 : index
    %719 = vector.load %arg12[%c3_273, %c0_274, %c0_275] : memref<8x2x1xf32, #tpu.memory_space<vmem>>, vector<1x2x1xf32>
    %720 = vector.shape_cast %719 : vector<1x2x1xf32> to vector<2x1xf32>
    %721 = vector.shape_cast %700 : vector<2x8xf32> to vector<2x1x8xf32>
    %722 = vector.shape_cast %622 : vector<8x8xf32> to vector<1x8x8xf32>
    %723 = vector.broadcast %721 : vector<2x1x8xf32> to vector<2x8x8xf32>
    %724 = vector.broadcast %722 : vector<1x8x8xf32> to vector<2x8x8xf32>
    %725 = arith.addf %723, %724 : vector<2x8x8xf32>
    %cst_276 = arith.constant dense<0xFF800000> : vector<2x8xf32>
    %726 = vector.multi_reduction <maximumf>, %725, %cst_276 [2] : vector<2x8x8xf32> to vector<2x8xf32>
    %727 = vector.shape_cast %726 : vector<2x8xf32> to vector<2x8x1xf32>
    %728 = vector.shape_cast %727 : vector<2x8x1xf32> to vector<2x8xf32>
    %729 = vector.broadcast %727 : vector<2x8x1xf32> to vector<2x8x8xf32>
    %730 = arith.subf %725, %729 : vector<2x8x8xf32>
    %731 = math.exp %730 : vector<2x8x8xf32>
    %cst_277 = arith.constant dense<0.000000e+00> : vector<2x8xf32>
    %732 = vector.multi_reduction <add>, %731, %cst_277 [2] : vector<2x8x8xf32> to vector<2x8xf32>
    %733 = math.log %732 : vector<2x8xf32>
    %734 = arith.addf %728, %733 : vector<2x8xf32>
    %735 = arith.addf %734, %716 : vector<2x8xf32>
    %cst_278 = arith.constant 0.000000e+00 : f32
    %736 = vector.broadcast %cst_278 : f32 to vector<2x1xf32>
    %737 = arith.cmpf ogt, %720, %736 : vector<2x1xf32>
    %738 = vector.shape_cast %737 : vector<2x1xi1> to vector<2x1xi1>
    %739 = vector.broadcast %738 : vector<2x1xi1> to vector<2x8xi1>
    %740 = arith.select %739, %735, %700 : vector<2x8xi1>, vector<2x8xf32>
    %741 = arith.mulf %716, %718 : vector<2x8xf32>
    %cst_279 = arith.constant dense<0.000000e+00> : vector<2xf32>
    %742 = vector.multi_reduction <add>, %741, %cst_279 [1] : vector<2x8xf32> to vector<2xf32>
    %743 = vector.shape_cast %742 : vector<2xf32> to vector<2x1xf32>
    %cst_280 = arith.constant dense<0.000000e+00> : vector<2x8xf32>
    %744 = tpu.matmul %718, %622, %cst_280 {dimension_numbers = #tpu.dot_dimension_numbers<[1], [0], [0], [1], [0, 0, 1, 1], [], []>} : vector<2x8xf32>, vector<8x8xf32>, vector<2x8xf32> -> vector<2x8xf32>
    %745 = arith.mulf %744, %715 : vector<2x8xf32>
    %cst_281 = arith.constant dense<0.000000e+00> : vector<2xf32>
    %746 = vector.multi_reduction <add>, %745, %cst_281 [1] : vector<2x8xf32> to vector<2xf32>
    %747 = vector.shape_cast %746 : vector<2xf32> to vector<2x1xf32>
    %748 = arith.addf %743, %747 : vector<2x1xf32>
    %749 = arith.mulf %748, %720 : vector<2x1xf32>
    %750 = arith.addf %710, %749 : vector<2x1xf32>
    %cst_282 = arith.constant 0.000000e+00 : f32
    %751 = vector.broadcast %cst_282 : f32 to vector<2x1xf32>
    %752 = arith.cmpf ogt, %720, %751 : vector<2x1xf32>
    %753 = vector.shape_cast %752 : vector<2x1xi1> to vector<2x1xi1>
    %754 = vector.broadcast %753 : vector<2x1xi1> to vector<2x8xi1>
    %755 = arith.select %754, %718, %715 : vector<2x8xi1>, vector<2x8xf32>
    %756 = vector.extract_strided_slice %621 {offsets = [8, 0], sizes = [2, 8], strides = [1, 1]} : vector<16x8xf32> to vector<2x8xf32>
    %c4 = arith.constant 4 : index
    %c0_283 = arith.constant 0 : index
    %c0_284 = arith.constant 0 : index
    %757 = vector.load %arg11[%c4, %c0_283, %c0_284] : memref<8x2x8xf32, #tpu.memory_space<vmem>>, vector<1x2x8xf32>
    %758 = vector.shape_cast %757 : vector<1x2x8xf32> to vector<2x8xf32>
    %c4_285 = arith.constant 4 : index
    %c0_286 = arith.constant 0 : index
    %c0_287 = arith.constant 0 : index
    %759 = vector.load %arg12[%c4_285, %c0_286, %c0_287] : memref<8x2x1xf32, #tpu.memory_space<vmem>>, vector<1x2x1xf32>
    %760 = vector.shape_cast %759 : vector<1x2x1xf32> to vector<2x1xf32>
    %761 = vector.shape_cast %740 : vector<2x8xf32> to vector<2x1x8xf32>
    %762 = vector.shape_cast %622 : vector<8x8xf32> to vector<1x8x8xf32>
    %763 = vector.broadcast %761 : vector<2x1x8xf32> to vector<2x8x8xf32>
    %764 = vector.broadcast %762 : vector<1x8x8xf32> to vector<2x8x8xf32>
    %765 = arith.addf %763, %764 : vector<2x8x8xf32>
    %cst_288 = arith.constant dense<0xFF800000> : vector<2x8xf32>
    %766 = vector.multi_reduction <maximumf>, %765, %cst_288 [2] : vector<2x8x8xf32> to vector<2x8xf32>
    %767 = vector.shape_cast %766 : vector<2x8xf32> to vector<2x8x1xf32>
    %768 = vector.shape_cast %767 : vector<2x8x1xf32> to vector<2x8xf32>
    %769 = vector.broadcast %767 : vector<2x8x1xf32> to vector<2x8x8xf32>
    %770 = arith.subf %765, %769 : vector<2x8x8xf32>
    %771 = math.exp %770 : vector<2x8x8xf32>
    %cst_289 = arith.constant dense<0.000000e+00> : vector<2x8xf32>
    %772 = vector.multi_reduction <add>, %771, %cst_289 [2] : vector<2x8x8xf32> to vector<2x8xf32>
    %773 = math.log %772 : vector<2x8xf32>
    %774 = arith.addf %768, %773 : vector<2x8xf32>
    %775 = arith.addf %774, %756 : vector<2x8xf32>
    %cst_290 = arith.constant 0.000000e+00 : f32
    %776 = vector.broadcast %cst_290 : f32 to vector<2x1xf32>
    %777 = arith.cmpf ogt, %760, %776 : vector<2x1xf32>
    %778 = vector.shape_cast %777 : vector<2x1xi1> to vector<2x1xi1>
    %779 = vector.broadcast %778 : vector<2x1xi1> to vector<2x8xi1>
    %780 = arith.select %779, %775, %740 : vector<2x8xi1>, vector<2x8xf32>
    %781 = arith.mulf %756, %758 : vector<2x8xf32>
    %cst_291 = arith.constant dense<0.000000e+00> : vector<2xf32>
    %782 = vector.multi_reduction <add>, %781, %cst_291 [1] : vector<2x8xf32> to vector<2xf32>
    %783 = vector.shape_cast %782 : vector<2xf32> to vector<2x1xf32>
    %cst_292 = arith.constant dense<0.000000e+00> : vector<2x8xf32>
    %784 = tpu.matmul %758, %622, %cst_292 {dimension_numbers = #tpu.dot_dimension_numbers<[1], [0], [0], [1], [0, 0, 1, 1], [], []>} : vector<2x8xf32>, vector<8x8xf32>, vector<2x8xf32> -> vector<2x8xf32>
    %785 = arith.mulf %784, %755 : vector<2x8xf32>
    %cst_293 = arith.constant dense<0.000000e+00> : vector<2xf32>
    %786 = vector.multi_reduction <add>, %785, %cst_293 [1] : vector<2x8xf32> to vector<2xf32>
    %787 = vector.shape_cast %786 : vector<2xf32> to vector<2x1xf32>
    %788 = arith.addf %783, %787 : vector<2x1xf32>
    %789 = arith.mulf %788, %760 : vector<2x1xf32>
    %790 = arith.addf %750, %789 : vector<2x1xf32>
    %cst_294 = arith.constant 0.000000e+00 : f32
    %791 = vector.broadcast %cst_294 : f32 to vector<2x1xf32>
    %792 = arith.cmpf ogt, %760, %791 : vector<2x1xf32>
    %793 = vector.shape_cast %792 : vector<2x1xi1> to vector<2x1xi1>
    %794 = vector.broadcast %793 : vector<2x1xi1> to vector<2x8xi1>
    %795 = arith.select %794, %758, %755 : vector<2x8xi1>, vector<2x8xf32>
    %796 = vector.extract_strided_slice %621 {offsets = [10, 0], sizes = [2, 8], strides = [1, 1]} : vector<16x8xf32> to vector<2x8xf32>
    %c5 = arith.constant 5 : index
    %c0_295 = arith.constant 0 : index
    %c0_296 = arith.constant 0 : index
    %797 = vector.load %arg11[%c5, %c0_295, %c0_296] : memref<8x2x8xf32, #tpu.memory_space<vmem>>, vector<1x2x8xf32>
    %798 = vector.shape_cast %797 : vector<1x2x8xf32> to vector<2x8xf32>
    %c5_297 = arith.constant 5 : index
    %c0_298 = arith.constant 0 : index
    %c0_299 = arith.constant 0 : index
    %799 = vector.load %arg12[%c5_297, %c0_298, %c0_299] : memref<8x2x1xf32, #tpu.memory_space<vmem>>, vector<1x2x1xf32>
    %800 = vector.shape_cast %799 : vector<1x2x1xf32> to vector<2x1xf32>
    %801 = vector.shape_cast %780 : vector<2x8xf32> to vector<2x1x8xf32>
    %802 = vector.shape_cast %622 : vector<8x8xf32> to vector<1x8x8xf32>
    %803 = vector.broadcast %801 : vector<2x1x8xf32> to vector<2x8x8xf32>
    %804 = vector.broadcast %802 : vector<1x8x8xf32> to vector<2x8x8xf32>
    %805 = arith.addf %803, %804 : vector<2x8x8xf32>
    %cst_300 = arith.constant dense<0xFF800000> : vector<2x8xf32>
    %806 = vector.multi_reduction <maximumf>, %805, %cst_300 [2] : vector<2x8x8xf32> to vector<2x8xf32>
    %807 = vector.shape_cast %806 : vector<2x8xf32> to vector<2x8x1xf32>
    %808 = vector.shape_cast %807 : vector<2x8x1xf32> to vector<2x8xf32>
    %809 = vector.broadcast %807 : vector<2x8x1xf32> to vector<2x8x8xf32>
    %810 = arith.subf %805, %809 : vector<2x8x8xf32>
    %811 = math.exp %810 : vector<2x8x8xf32>
    %cst_301 = arith.constant dense<0.000000e+00> : vector<2x8xf32>
    %812 = vector.multi_reduction <add>, %811, %cst_301 [2] : vector<2x8x8xf32> to vector<2x8xf32>
    %813 = math.log %812 : vector<2x8xf32>
    %814 = arith.addf %808, %813 : vector<2x8xf32>
    %815 = arith.addf %814, %796 : vector<2x8xf32>
    %cst_302 = arith.constant 0.000000e+00 : f32
    %816 = vector.broadcast %cst_302 : f32 to vector<2x1xf32>
    %817 = arith.cmpf ogt, %800, %816 : vector<2x1xf32>
    %818 = vector.shape_cast %817 : vector<2x1xi1> to vector<2x1xi1>
    %819 = vector.broadcast %818 : vector<2x1xi1> to vector<2x8xi1>
    %820 = arith.select %819, %815, %780 : vector<2x8xi1>, vector<2x8xf32>
    %821 = arith.mulf %796, %798 : vector<2x8xf32>
    %cst_303 = arith.constant dense<0.000000e+00> : vector<2xf32>
    %822 = vector.multi_reduction <add>, %821, %cst_303 [1] : vector<2x8xf32> to vector<2xf32>
    %823 = vector.shape_cast %822 : vector<2xf32> to vector<2x1xf32>
    %cst_304 = arith.constant dense<0.000000e+00> : vector<2x8xf32>
    %824 = tpu.matmul %798, %622, %cst_304 {dimension_numbers = #tpu.dot_dimension_numbers<[1], [0], [0], [1], [0, 0, 1, 1], [], []>} : vector<2x8xf32>, vector<8x8xf32>, vector<2x8xf32> -> vector<2x8xf32>
    %825 = arith.mulf %824, %795 : vector<2x8xf32>
    %cst_305 = arith.constant dense<0.000000e+00> : vector<2xf32>
    %826 = vector.multi_reduction <add>, %825, %cst_305 [1] : vector<2x8xf32> to vector<2xf32>
    %827 = vector.shape_cast %826 : vector<2xf32> to vector<2x1xf32>
    %828 = arith.addf %823, %827 : vector<2x1xf32>
    %829 = arith.mulf %828, %800 : vector<2x1xf32>
    %830 = arith.addf %790, %829 : vector<2x1xf32>
    %cst_306 = arith.constant 0.000000e+00 : f32
    %831 = vector.broadcast %cst_306 : f32 to vector<2x1xf32>
    %832 = arith.cmpf ogt, %800, %831 : vector<2x1xf32>
    %833 = vector.shape_cast %832 : vector<2x1xi1> to vector<2x1xi1>
    %834 = vector.broadcast %833 : vector<2x1xi1> to vector<2x8xi1>
    %835 = arith.select %834, %798, %795 : vector<2x8xi1>, vector<2x8xf32>
    %836 = vector.extract_strided_slice %621 {offsets = [12, 0], sizes = [2, 8], strides = [1, 1]} : vector<16x8xf32> to vector<2x8xf32>
    %c6 = arith.constant 6 : index
    %c0_307 = arith.constant 0 : index
    %c0_308 = arith.constant 0 : index
    %837 = vector.load %arg11[%c6, %c0_307, %c0_308] : memref<8x2x8xf32, #tpu.memory_space<vmem>>, vector<1x2x8xf32>
    %838 = vector.shape_cast %837 : vector<1x2x8xf32> to vector<2x8xf32>
    %c6_309 = arith.constant 6 : index
    %c0_310 = arith.constant 0 : index
    %c0_311 = arith.constant 0 : index
    %839 = vector.load %arg12[%c6_309, %c0_310, %c0_311] : memref<8x2x1xf32, #tpu.memory_space<vmem>>, vector<1x2x1xf32>
    %840 = vector.shape_cast %839 : vector<1x2x1xf32> to vector<2x1xf32>
    %841 = vector.shape_cast %820 : vector<2x8xf32> to vector<2x1x8xf32>
    %842 = vector.shape_cast %622 : vector<8x8xf32> to vector<1x8x8xf32>
    %843 = vector.broadcast %841 : vector<2x1x8xf32> to vector<2x8x8xf32>
    %844 = vector.broadcast %842 : vector<1x8x8xf32> to vector<2x8x8xf32>
    %845 = arith.addf %843, %844 : vector<2x8x8xf32>
    %cst_312 = arith.constant dense<0xFF800000> : vector<2x8xf32>
    %846 = vector.multi_reduction <maximumf>, %845, %cst_312 [2] : vector<2x8x8xf32> to vector<2x8xf32>
    %847 = vector.shape_cast %846 : vector<2x8xf32> to vector<2x8x1xf32>
    %848 = vector.shape_cast %847 : vector<2x8x1xf32> to vector<2x8xf32>
    %849 = vector.broadcast %847 : vector<2x8x1xf32> to vector<2x8x8xf32>
    %850 = arith.subf %845, %849 : vector<2x8x8xf32>
    %851 = math.exp %850 : vector<2x8x8xf32>
    %cst_313 = arith.constant dense<0.000000e+00> : vector<2x8xf32>
    %852 = vector.multi_reduction <add>, %851, %cst_313 [2] : vector<2x8x8xf32> to vector<2x8xf32>
    %853 = math.log %852 : vector<2x8xf32>
    %854 = arith.addf %848, %853 : vector<2x8xf32>
    %855 = arith.addf %854, %836 : vector<2x8xf32>
    %cst_314 = arith.constant 0.000000e+00 : f32
    %856 = vector.broadcast %cst_314 : f32 to vector<2x1xf32>
    %857 = arith.cmpf ogt, %840, %856 : vector<2x1xf32>
    %858 = vector.shape_cast %857 : vector<2x1xi1> to vector<2x1xi1>
    %859 = vector.broadcast %858 : vector<2x1xi1> to vector<2x8xi1>
    %860 = arith.select %859, %855, %820 : vector<2x8xi1>, vector<2x8xf32>
    %861 = arith.mulf %836, %838 : vector<2x8xf32>
    %cst_315 = arith.constant dense<0.000000e+00> : vector<2xf32>
    %862 = vector.multi_reduction <add>, %861, %cst_315 [1] : vector<2x8xf32> to vector<2xf32>
    %863 = vector.shape_cast %862 : vector<2xf32> to vector<2x1xf32>
    %cst_316 = arith.constant dense<0.000000e+00> : vector<2x8xf32>
    %864 = tpu.matmul %838, %622, %cst_316 {dimension_numbers = #tpu.dot_dimension_numbers<[1], [0], [0], [1], [0, 0, 1, 1], [], []>} : vector<2x8xf32>, vector<8x8xf32>, vector<2x8xf32> -> vector<2x8xf32>
    %865 = arith.mulf %864, %835 : vector<2x8xf32>
    %cst_317 = arith.constant dense<0.000000e+00> : vector<2xf32>
    %866 = vector.multi_reduction <add>, %865, %cst_317 [1] : vector<2x8xf32> to vector<2xf32>
    %867 = vector.shape_cast %866 : vector<2xf32> to vector<2x1xf32>
    %868 = arith.addf %863, %867 : vector<2x1xf32>
    %869 = arith.mulf %868, %840 : vector<2x1xf32>
    %870 = arith.addf %830, %869 : vector<2x1xf32>
    %cst_318 = arith.constant 0.000000e+00 : f32
    %871 = vector.broadcast %cst_318 : f32 to vector<2x1xf32>
    %872 = arith.cmpf ogt, %840, %871 : vector<2x1xf32>
    %873 = vector.shape_cast %872 : vector<2x1xi1> to vector<2x1xi1>
    %874 = vector.broadcast %873 : vector<2x1xi1> to vector<2x8xi1>
    %875 = arith.select %874, %838, %835 : vector<2x8xi1>, vector<2x8xf32>
    %876 = vector.extract_strided_slice %621 {offsets = [14, 0], sizes = [2, 8], strides = [1, 1]} : vector<16x8xf32> to vector<2x8xf32>
    %c7 = arith.constant 7 : index
    %c0_319 = arith.constant 0 : index
    %c0_320 = arith.constant 0 : index
    %877 = vector.load %arg11[%c7, %c0_319, %c0_320] : memref<8x2x8xf32, #tpu.memory_space<vmem>>, vector<1x2x8xf32>
    %878 = vector.shape_cast %877 : vector<1x2x8xf32> to vector<2x8xf32>
    %c7_321 = arith.constant 7 : index
    %c0_322 = arith.constant 0 : index
    %c0_323 = arith.constant 0 : index
    %879 = vector.load %arg12[%c7_321, %c0_322, %c0_323] : memref<8x2x1xf32, #tpu.memory_space<vmem>>, vector<1x2x1xf32>
    %880 = vector.shape_cast %879 : vector<1x2x1xf32> to vector<2x1xf32>
    %881 = vector.shape_cast %860 : vector<2x8xf32> to vector<2x1x8xf32>
    %882 = vector.shape_cast %622 : vector<8x8xf32> to vector<1x8x8xf32>
    %883 = vector.broadcast %881 : vector<2x1x8xf32> to vector<2x8x8xf32>
    %884 = vector.broadcast %882 : vector<1x8x8xf32> to vector<2x8x8xf32>
    %885 = arith.addf %883, %884 : vector<2x8x8xf32>
    %cst_324 = arith.constant dense<0xFF800000> : vector<2x8xf32>
    %886 = vector.multi_reduction <maximumf>, %885, %cst_324 [2] : vector<2x8x8xf32> to vector<2x8xf32>
    %887 = vector.shape_cast %886 : vector<2x8xf32> to vector<2x8x1xf32>
    %888 = vector.shape_cast %887 : vector<2x8x1xf32> to vector<2x8xf32>
    %889 = vector.broadcast %887 : vector<2x8x1xf32> to vector<2x8x8xf32>
    %890 = arith.subf %885, %889 : vector<2x8x8xf32>
    %891 = math.exp %890 : vector<2x8x8xf32>
    %cst_325 = arith.constant dense<0.000000e+00> : vector<2x8xf32>
    %892 = vector.multi_reduction <add>, %891, %cst_325 [2] : vector<2x8x8xf32> to vector<2x8xf32>
    %893 = math.log %892 : vector<2x8xf32>
    %894 = arith.addf %888, %893 : vector<2x8xf32>
    %895 = arith.addf %894, %876 : vector<2x8xf32>
    %cst_326 = arith.constant 0.000000e+00 : f32
    %896 = vector.broadcast %cst_326 : f32 to vector<2x1xf32>
    %897 = arith.cmpf ogt, %880, %896 : vector<2x1xf32>
    %898 = vector.shape_cast %897 : vector<2x1xi1> to vector<2x1xi1>
    %899 = vector.broadcast %898 : vector<2x1xi1> to vector<2x8xi1>
    %900 = arith.select %899, %895, %860 : vector<2x8xi1>, vector<2x8xf32>
    %901 = arith.mulf %876, %878 : vector<2x8xf32>
    %cst_327 = arith.constant dense<0.000000e+00> : vector<2xf32>
    %902 = vector.multi_reduction <add>, %901, %cst_327 [1] : vector<2x8xf32> to vector<2xf32>
    %903 = vector.shape_cast %902 : vector<2xf32> to vector<2x1xf32>
    %cst_328 = arith.constant dense<0.000000e+00> : vector<2x8xf32>
    %904 = tpu.matmul %878, %622, %cst_328 {dimension_numbers = #tpu.dot_dimension_numbers<[1], [0], [0], [1], [0, 0, 1, 1], [], []>} : vector<2x8xf32>, vector<8x8xf32>, vector<2x8xf32> -> vector<2x8xf32>
    %905 = arith.mulf %904, %875 : vector<2x8xf32>
    %cst_329 = arith.constant dense<0.000000e+00> : vector<2xf32>
    %906 = vector.multi_reduction <add>, %905, %cst_329 [1] : vector<2x8xf32> to vector<2xf32>
    %907 = vector.shape_cast %906 : vector<2xf32> to vector<2x1xf32>
    %908 = arith.addf %903, %907 : vector<2x1xf32>
    %909 = arith.mulf %908, %880 : vector<2x1xf32>
    %910 = arith.addf %870, %909 : vector<2x1xf32>
    %cst_330 = arith.constant 0.000000e+00 : f32
    %911 = vector.broadcast %cst_330 : f32 to vector<2x1xf32>
    %912 = arith.cmpf ogt, %880, %911 : vector<2x1xf32>
    %913 = vector.shape_cast %912 : vector<2x1xi1> to vector<2x1xi1>
    %914 = vector.broadcast %913 : vector<2x1xi1> to vector<2x8xi1>
    %915 = arith.select %914, %878, %875 : vector<2x8xi1>, vector<2x8xf32>
    %916 = vector.broadcast %624 : vector<1x8xf32> to vector<2x8xf32>
    %917 = arith.addf %900, %916 : vector<2x8xf32>
    %cst_331 = arith.constant dense<0xFF800000> : vector<2xf32>
    %918 = vector.multi_reduction <maximumf>, %917, %cst_331 [1] : vector<2x8xf32> to vector<2xf32>
    %919 = vector.shape_cast %918 : vector<2xf32> to vector<2x1xf32>
    %920 = vector.broadcast %919 : vector<2x1xf32> to vector<2x8xf32>
    %921 = arith.subf %917, %920 : vector<2x8xf32>
    %922 = math.exp %921 : vector<2x8xf32>
    %cst_332 = arith.constant dense<0.000000e+00> : vector<2xf32>
    %923 = vector.multi_reduction <add>, %922, %cst_332 [1] : vector<2x8xf32> to vector<2xf32>
    %924 = vector.shape_cast %923 : vector<2xf32> to vector<2x1xf32>
    %925 = math.log %924 : vector<2x1xf32>
    %926 = arith.addf %919, %925 : vector<2x1xf32>
    %c0_333 = arith.constant 0 : index
    %c0_334 = arith.constant 0 : index
    %927 = vector.load %arg13[%c0_333, %c0_334] : memref<2x1xf32, #tpu.memory_space<vmem>>, vector<2x1xf32>
    tpu.vector_store %arg13[%c0_333, %c0_334], %926 {strides = array<i32>} : memref<2x1xf32, #tpu.memory_space<vmem>>, vector<2x1xf32>,
    %928 = vector.broadcast %624 : vector<1x8xf32> to vector<2x8xf32>
    %929 = arith.mulf %928, %915 : vector<2x8xf32>
    %cst_335 = arith.constant dense<0.000000e+00> : vector<2xf32>
    %930 = vector.multi_reduction <add>, %929, %cst_335 [1] : vector<2x8xf32> to vector<2xf32>
    %931 = vector.shape_cast %930 : vector<2xf32> to vector<2x1xf32>
    %932 = arith.addf %910, %931 : vector<2x1xf32>
    %c0_336 = arith.constant 0 : index
    %c0_337 = arith.constant 0 : index
    %933 = vector.load %arg14[%c0_336, %c0_337] : memref<2x1xf32, #tpu.memory_space<vmem>>, vector<2x1xf32>
    tpu.vector_store %arg14[%c0_336, %c0_337], %932 {strides = array<i32>} : memref<2x1xf32, #tpu.memory_space<vmem>>, vector<2x1xf32>,
    return
  }
}

</mosaic_0001>

<bundles_post_ra>
// kernel: base_model_forward.1
= control target key start
LH: loop header
LB: loop body
LE: loop exit
PB: predicated region body
PF: predicated region fallthrough
CT: control target
= control target key end

     0   :  { %vm61_vm0 = vcmask 261120   ;;  %s10768_s0 = inlined_call_operand.vmem [shape: f32[16,32], index: 0, kind: input, shape index: {}]   ;;  %s10769_s1 = inlined_call_operand.vmem [shape: f32[32,32], index: 1, kind: input, shape index: {}]   ;;  %s10770_s2 = inlined_call_operand.vmem [shape: f32[1,32], index: 2, kind: input, shape index: {}]   ;;  %s10771_s3 = inlined_call_operand.vmem [shape: f32[2,4,32,16], index: 3, kind: input, shape index: {}]   ;;  %s10772_s4 = inlined_call_operand.vmem [shape: f32[2,4,16,16], index: 4, kind: input, shape index: {}]   ;;  %s10773_s5 = inlined_call_operand.vmem [shape: f32[2,4,1,16], index: 5, kind: input, shape index: {}]   ;;  %s10774_s6 = inlined_call_operand.vmem [shape: f32[2,16,8], index: 6, kind: input, shape index: {}]   ;;  %s10775_s7 = inlined_call_operand.vmem [shape: f32[1,8], index: 7, kind: input, shape index: {}]   ;;  %s10776_s8 = inlined_call_operand.vmem [shape: f32[8,8], index: 8, kind: input, shape index: {}]   ;;  %s10777_s9 = inlined_call_operand.vmem [shape: f32[1,8], index: 9, kind: input, shape index: {}]   ;;  %s10778_s10 = inlined_call_operand.vmem [shape: f32[1,8], index: 10, kind: input, shape index: {}]   ;;  %s10779_s11 = inlined_call_operand.vmem [shape: f32[8,2,8], index: 11, kind: input, shape index: {}]   ;;  %s10780_s12 = inlined_call_operand.vmem [shape: f32[8,2,1], index: 12, kind: input, shape index: {}]   ;;  %s10781_s13 = inlined_call_operand.vmem [shape: f32[2,1], index: 13, kind: output, shape index: {0}]   ;;  %s10782_s14 = inlined_call_operand.vmem [shape: f32[2,1], index: 14, kind: output, shape index: {1}]   ;;  %s10783_s15 = inlined_call_operand.hbm [shape: f32[2,32], index: 15, kind: output, shape index: {2}]  }
   0x1   :  { %v53_v0 = vld [vmem:[%s10769_s1 + $0x18] sm:$0xff]  ;;  %v52_v1 = vld [vmem:[%s10769_s1 + $0x10] sm:$0xff]  ;;  %v48_v2 = vld [vmem:[%s10768_s0] sm:$0xff] }
   0x2   :  { %8197 = vmatprep.subr.mxu0 %v53_v0  ;;  %v51_v3 = vld [vmem:[%s10769_s1 + $0x8] sm:$0xff]  ;;  %8205 = vmatprep.mubr.msk.f32.mxu0 %vm61_vm0, %v48_v2 }
   0x3   :  { %8198 = vmatpush3.msra.mxu0 %v53_v0 }
   0x4   :  { %21 = vsyncpa [#allocation3], 0  ;;  %8199 = vmatprep.subr.mxu0 %v52_v1  ;;  %v50_v4 = vld [vmem:[%s10769_s1] sm:$0xff]  ;;  %v49_v5 = vld [vmem:[%s10768_s0 + $0x8] sm:$0xff]  ;;  %vm145_vm1 = vcmask 254976   ;;  %v9162_v47 = vmov 0.0  }
   0x5   :  { %8200 = vmatpush3.msra.mxu0 %v52_v1  ;;  %v150_v6 = vld [vmem:[%s10771_s3 + $0x18] sm:$0xff]  ;;  %v149_v8 = vld [vmem:[%s10771_s3 + $0x10] sm:$0xff]  ;;  %v148_v10 = vld [vmem:[%s10771_s3 + $0x8] sm:$0xff]  ;;  %vm9163_vm2 = vmmov 0   ;;  %vm878_vm3 = vcmask 130048   ;;  %vm6049_vm4 = vcmask 1041408  }
   0x6   :  { %8201 = vmatprep.subr.mxu0 %v51_v3  ;;  %v7728_v7 = vld [vmem:[%s10771_s3 + $0x38] sm:$0xff]  ;;  %8208 = vmatprep.subr.mxu1 %v150_v6  ;;  %v7727_v9 = vld [vmem:[%s10771_s3 + $0x30] sm:$0xff]  ;;  %v7726_v11 = vld [vmem:[%s10771_s3 + $0x28] sm:$0xff]  ;;  %vm6051_vm5 = vcmask 1043456   ;;  %vm6053_vm6 = vcmask 1045504   ;;  %vm6297_vm7 = vcmask 64512  }
   0x7   :  { %8202 = vmatpush3.msra.mxu0 %v51_v3  ;;  %8209 = vmatpush3.msra.mxu1 %v150_v6  ;;  %v147_v12 = vld [vmem:[%s10771_s3] sm:$0xff]  ;;  %v7736_v14 = vld [vmem:[%s10771_s3 + $0x58] sm:$0xff]  ;;  %v7735_v23 = vld [vmem:[%s10771_s3 + $0x50] sm:$0xff]  ;;  %vm6576_vm8 = vcmask 62468   ;;  %vm6779_vm9 = vcmask 64518   ;;  %vm6365_vm11 = vcmask 1041409  }
   0x8   :  { %8203 = vmatprep.subr.mxu0 %v50_v4  ;;  %8210 = vmatprep.subr.mxu1 %v149_v8  ;;  %v7725_v13 = vld [vmem:[%s10771_s3 + $0x20] sm:$0xff]  ;;  %v7744_v15 = vld [vmem:[%s10771_s3 + $0x78] sm:$0xff]  ;;  %v7743_v24 = vld [vmem:[%s10771_s3 + $0x70] sm:$0xff] }
   0x9   :  { %8204 = vmatpush3.msra.mxu0 %v50_v4  ;;  %8211 = vmatpush3.msra.mxu1 %v149_v8  ;;  %v7719_v16 = vld [vmem:[%s10770_s2] ss:$0 sm:$0xff]  ;;  %v7734_v25 = vld [vmem:[%s10771_s3 + $0x48] sm:$0xff]  ;;  %v7752_v29 = vld [vmem:[%s10771_s3 + $0x98] sm:$0xff] }
   0xa   :  { %8206 = vmatmul.mubr.msk.f32.vlgmr.msra.gmra.mxu0 %vm61_vm0, %v49_v5  ;;  %8219 = vmatprep.subr.mxu0 %v7728_v7  ;;  %v7742_v26 = vld [vmem:[%s10771_s3 + $0x68] sm:$0xff]  ;;  %v7733_v27 = vld [vmem:[%s10771_s3 + $0x40] sm:$0xff]  ;;  %v7760_v30 = vld [vmem:[%s10771_s3 + $0xb8] sm:$0xff] }
   0xb   :  { %8220 = vmatpush3.msra.mxu0 %v7728_v7  ;;  %8212 = vmatprep.subr.mxu1 %v148_v10  ;;  %v7741_v28 = vld [vmem:[%s10771_s3 + $0x60] sm:$0xff]  ;;  %v7751_v31 = vld [vmem:[%s10771_s3 + $0x90] sm:$0xff]  ;;  %v7750_v33 = vld [vmem:[%s10771_s3 + $0x88] sm:$0xff] }
   0xc   :  { %8221 = vmatprep.subr.mxu0 %v7727_v9  ;;  %8213 = vmatpush3.msra.mxu1 %v148_v10  ;;  %v7759_v32 = vld [vmem:[%s10771_s3 + $0xb0] sm:$0xff]  ;;  %v7758_v34 = vld [vmem:[%s10771_s3 + $0xa8] sm:$0xff]  ;;  %v7749_v35 = vld [vmem:[%s10771_s3 + $0x80] sm:$0xff] }
   0xd   :  { %8222 = vmatpush3.msra.mxu0 %v7727_v9  ;;  %8214 = vmatprep.subr.mxu1 %v147_v12  ;;  %v7757_v36 = vld [vmem:[%s10771_s3 + $0xa0] sm:$0xff]  ;;  %v7768_v37 = vld [vmem:[%s10771_s3 + $0xd8] sm:$0xff]  ;;  %v7767_v39 = vld [vmem:[%s10771_s3 + $0xd0] sm:$0xff] }
   0xe   :  { %8223 = vmatprep.subr.mxu0 %v7726_v11  ;;  %8215 = vmatpush3.msra.mxu1 %v147_v12  ;;  %v7776_v38 = vld [vmem:[%s10771_s3 + $0xf8] sm:$0xff]  ;;  %v7775_v40 = vld [vmem:[%s10771_s3 + $0xf0] sm:$0xff]  ;;  %v7766_v41 = vld [vmem:[%s10771_s3 + $0xc8] sm:$0xff] }
   0xf   :  { %8224 = vmatpush3.msra.mxu0 %v7726_v11  ;;  %8230 = vmatprep.subr.mxu1 %v7736_v14  ;;  %v7774_v42 = vld [vmem:[%s10771_s3 + $0xe8] sm:$0xff]  ;;  %v7765_v43 = vld [vmem:[%s10771_s3 + $0xc0] sm:$0xff]  ;;  %v9438_v50 = vld [vmem:[%s10772_s4 + $0x18] sm:$0xff] }
  0x10   :  { %8225 = vmatprep.subr.mxu0 %v7725_v13  ;;  %v7773_v44 = vld [vmem:[%s10771_s3 + $0xe0] sm:$0xff]  ;;  %v9402_v45 = vld [vmem:[%s10772_s4 + $0x8] sm:$0xff]  ;;  %v9452_v52 = vld [vmem:[%s10772_s4 + $0x10] sm:$0xff] }
  0x11   :  { %8226 = vmatpush3.msra.mxu0 %v7725_v13  ;;  %v9407_v46 = vld [vmem:[%s10772_s4 + $0x28] sm:$0xff]  ;;  %v9418_v48 = vld [vmem:[%s10772_s4] sm:$0xff]  ;;  %v9472_v54 = vld [vmem:[%s10772_s4 + $0x38] sm:$0xff] }
  0x12   :  { %8241 = vmatprep.subr.mxu0 %v7744_v15  ;;  %v9425_v49 = vld [vmem:[%s10772_s4 + $0x20] sm:$0xff]  ;;  %v9443_v51 = vld [vmem:[%s10772_s4 + $0x48] sm:$0xff]  ;;  %v9486_v56 = vld [vmem:[%s10772_s4 + $0x30] sm:$0xff] }
  0x13   :  { %v9459_v53 = vld [vmem:[%s10772_s4 + $0x40] sm:$0xff]  ;;  %v9477_v55 = vld [vmem:[%s10772_s4 + $0x68] sm:$0xff]  ;;  %v9503_v58 = vld [vmem:[%s10772_s4 + $0x58] sm:$0xff] }
  0x14   :  { %v9493_v57 = vld [vmem:[%s10772_s4 + $0x60] sm:$0xff]  ;;  %v9513_v59 = vld [vmem:[%s10772_s4 + $0x50] sm:$0xff]  ;;  %v9523_v60 = vld [vmem:[%s10772_s4 + $0x78] sm:$0xff] }
  0x15   :  { %v9532_v61 = vld [vmem:[%s10772_s4 + $0x70] sm:$0xff]  ;;  %v7722_v62 = vld [vmem:[%s10773_s5] ss:$0 sm:$0xff]  ;;  %v7730_v63 = vld [vmem:[%s10773_s5 + $0x1] ss:$0 sm:$0xff] }
  0x16   :  { %v7738_v6 = vld [vmem:[%s10773_s5 + $0x2] ss:$0 sm:$0xff]  ;;  %v7746_v7 = vld [vmem:[%s10773_s5 + $0x3] ss:$0 sm:$0xff] }
  0xca   :  { %v8207_v17 = vpop.f32.mrf.mxu0 }
  0xcb   :  { %v140_v18 = vadd.f32 %v8207_v17, %v7719_v16  ;;  %v7762_v17 = vld [vmem:[%s10773_s5 + $0x5] ss:$0 sm:$0xff] }
  0xcc   :  { %v134_v19 = vpop.f32.mrf.mxu0 }
  0xcd   :  { %v135_v20 = vadd.f32 %v7719_v16, %v134_v19  ;;  %v7754_v16 = vld [vmem:[%s10773_s5 + $0x4] ss:$0 sm:$0xff] }
  0xcf   :  { %8800 = vtanh.f32 %v135_v20 }
  0xd0   :  { %8802 = vtanh.f32 %v140_v18 }
  0xdc   :  { %v9300_v21 = vpop.eup %8800 }
  0xdd   :  { %v9302_v22 = vpop.eup %8802  ;;  %8216 = vmatprep.mubr.msk.f32.mxu1 %vm61_vm0, %v9300_v21  ;;  %8227 = vmatprep.mubr.msk.f32.mxu0 %vm61_vm0, %v9300_v21  ;;  %146 = vst.msk [vmem:[#allocation2] sm:$0x3] %vm145_vm1, %v9300_v21 }
  0xde   :  { %8217 = vmatmul.mubr.msk.f32.vlgmr.msra.gmra.mxu1 %vm61_vm0, %v9302_v22  ;;  %8228 = vmatmul.mubr.msk.f32.vlgmr.msra.gmra.mxu0 %vm61_vm0, %v9302_v22 }
  0xdf   :  { %8231 = vmatpush3.msra.mxu1 %v7736_v14  ;;  %8242 = vmatpush3.msra.mxu0 %v7744_v15 }
  0xe0   :  { %8232 = vmatprep.subr.mxu1 %v7735_v23  ;;  %8238 = vmatprep.mubr.msk.f32.mxu1 %vm61_vm0, %v9300_v21 }
  0xe1   :  { %8243 = vmatprep.subr.mxu0 %v7743_v24  ;;  %8249 = vmatprep.mubr.msk.f32.mxu0 %vm61_vm0, %v9300_v21 }
  0xe2   :  { %8233 = vmatpush3.msra.mxu1 %v7735_v23  ;;  %8244 = vmatpush3.msra.mxu0 %v7743_v24  ;;  %v7770_v24 = vld [vmem:[%s10773_s5 + $0x6] ss:$0 sm:$0xff] }
  0xe3   :  { %8234 = vmatprep.subr.mxu1 %v7734_v25  ;;  %8245 = vmatprep.subr.mxu0 %v7742_v26 }
  0xe4   :  { %8235 = vmatpush3.msra.mxu1 %v7734_v25  ;;  %8246 = vmatpush3.msra.mxu0 %v7742_v26  ;;  %v7778_v25 = vld [vmem:[%s10773_s5 + $0x7] ss:$0 sm:$0xff] }
  0xe5   :  { %8236 = vmatprep.subr.mxu1 %v7733_v27  ;;  %8247 = vmatprep.subr.mxu0 %v7741_v28 }
  0xe6   :  { %8237 = vmatpush3.msra.mxu1 %v7733_v27  ;;  %8248 = vmatpush3.msra.mxu0 %v7741_v28 }
  0xe7   :  { %8239 = vmatmul.mubr.msk.f32.vlgmr.msra.gmra.mxu1 %vm61_vm0, %v9302_v22  ;;  %8250 = vmatmul.mubr.msk.f32.vlgmr.msra.gmra.mxu0 %vm61_vm0, %v9302_v22 }
  0xe8   :  { %8252 = vmatprep.subr.mxu1 %v7752_v29  ;;  %8263 = vmatprep.subr.mxu0 %v7760_v30 }
  0xe9   :  { %8253 = vmatpush3.msra.mxu1 %v7752_v29  ;;  %8260 = vmatprep.mubr.msk.f32.mxu1 %vm61_vm0, %v9300_v21 }
  0xea   :  { %8264 = vmatpush3.msra.mxu0 %v7760_v30  ;;  %8271 = vmatprep.mubr.msk.f32.mxu0 %vm61_vm0, %v9300_v21 }
  0xeb   :  { %8254 = vmatprep.subr.mxu1 %v7751_v31  ;;  %8265 = vmatprep.subr.mxu0 %v7759_v32 }
  0xec   :  { %8255 = vmatpush3.msra.mxu1 %v7751_v31  ;;  %8266 = vmatpush3.msra.mxu0 %v7759_v32 }
  0xed   :  { %8256 = vmatprep.subr.mxu1 %v7750_v33  ;;  %8267 = vmatprep.subr.mxu0 %v7758_v34 }
  0xee   :  { %8257 = vmatpush3.msra.mxu1 %v7750_v33  ;;  %8268 = vmatpush3.msra.mxu0 %v7758_v34 }
  0xef   :  { %8258 = vmatprep.subr.mxu1 %v7749_v35  ;;  %8269 = vmatprep.subr.mxu0 %v7757_v36 }
  0xf0   :  { %8259 = vmatpush3.msra.mxu1 %v7749_v35  ;;  %8270 = vmatpush3.msra.mxu0 %v7757_v36 }
  0xf1   :  { %8261 = vmatmul.mubr.msk.f32.vlgmr.msra.gmra.mxu1 %vm61_vm0, %v9302_v22  ;;  %8272 = vmatmul.mubr.msk.f32.vlgmr.msra.gmra.mxu0 %vm61_vm0, %v9302_v22 }
  0xf2   :  { %8274 = vmatprep.subr.mxu1 %v7768_v37  ;;  %8285 = vmatprep.subr.mxu0 %v7776_v38 }
  0xf3   :  { %8275 = vmatpush3.msra.mxu1 %v7768_v37  ;;  %8282 = vmatprep.mubr.msk.f32.mxu1 %vm61_vm0, %v9300_v21 }
  0xf4   :  { %8286 = vmatpush3.msra.mxu0 %v7776_v38  ;;  %8293 = vmatprep.mubr.msk.f32.mxu0 %vm61_vm0, %v9300_v21 }
  0xf5   :  { %8276 = vmatprep.subr.mxu1 %v7767_v39  ;;  %8287 = vmatprep.subr.mxu0 %v7775_v40 }
  0xf6   :  { %8277 = vmatpush3.msra.mxu1 %v7767_v39  ;;  %8288 = vmatpush3.msra.mxu0 %v7775_v40 }
  0xf7   :  { %8278 = vmatprep.subr.mxu1 %v7766_v41  ;;  %8289 = vmatprep.subr.mxu0 %v7774_v42 }
  0xf8   :  { %8279 = vmatpush3.msra.mxu1 %v7766_v41  ;;  %8290 = vmatpush3.msra.mxu0 %v7774_v42 }
  0xf9   :  { %8280 = vmatprep.subr.mxu1 %v7765_v43  ;;  %8291 = vmatprep.subr.mxu0 %v7773_v44 }
  0xfa   :  { %8281 = vmatpush3.msra.mxu1 %v7765_v43  ;;  %8292 = vmatpush3.msra.mxu0 %v7773_v44 }
  0xfb   :  { %8283 = vmatmul.mubr.msk.f32.vlgmr.msra.gmra.mxu1 %vm61_vm0, %v9302_v22  ;;  %8294 = vmatmul.mubr.msk.f32.vlgmr.msra.gmra.mxu0 %vm61_vm0, %v9302_v22 }
  0xfc   :  { %8296 = vmatprep.subr.mxu1 %v9162_v47  ;;  %8310 = vmatprep.subr.mxu0 %v9162_v47 }
  0xfd   :  { %8297 = vmatpush3.msra.mxu1 %v9402_v45  ;;  %8311 = vmatpush3.msra.mxu0 %v9407_v46 }
  0xfe   :  { %8298 = vmatprep.subr.mxu1 %v9162_v47  ;;  %8312 = vmatprep.subr.mxu0 %v9162_v47 }
  0xff   :  { %8299 = vmatpush3.msra.mxu1 %v9418_v48  ;;  %8300 = vmatprep.mubr.msk.f32.mxu1 %vm9163_vm2, %v9162_v47 }
 0x100   :  { %8313 = vmatpush3.msra.mxu0 %v9425_v49  ;;  %8314 = vmatprep.mubr.msk.f32.mxu0 %vm9163_vm2, %v9162_v47 }
 0x101   :  { %8301 = vmatmul.mubr.f32.vlgmr.msra.gmra.mxu1 %v9162_v47  ;;  %8303 = vmatprep.subr.mxu1 %v9162_v47 }
 0x102   :  { %8315 = vmatmul.mubr.f32.vlgmr.msra.gmra.mxu0 %v9162_v47  ;;  %8324 = vmatprep.subr.mxu0 %v9162_v47 }
 0x103   :  { %8304 = vmatpush3.msra.mxu1 %v9438_v50  ;;  %8325 = vmatpush3.msra.mxu0 %v9443_v51 }
 0x104   :  { %8305 = vmatprep.subr.mxu1 %v9162_v47  ;;  %8326 = vmatprep.subr.mxu0 %v9162_v47 }
 0x105   :  { %8306 = vmatpush3.msra.mxu1 %v9452_v52  ;;  %8307 = vmatprep.mubr.msk.f32.mxu1 %vm9163_vm2, %v9162_v47 }
 0x106   :  { %8327 = vmatpush3.msra.mxu0 %v9459_v53  ;;  %8328 = vmatprep.mubr.msk.f32.mxu0 %vm9163_vm2, %v9162_v47 }
 0x107   :  { %8308 = vmatmul.mubr.f32.vlgmr.msra.gmra.mxu1 %v9162_v47  ;;  %8317 = vmatprep.subr.mxu1 %v9162_v47 }
 0x108   :  { %8329 = vmatmul.mubr.f32.vlgmr.msra.gmra.mxu0 %v9162_v47  ;;  %8338 = vmatprep.subr.mxu0 %v9162_v47 }
 0x109   :  { %8318 = vmatpush3.msra.mxu1 %v9472_v54  ;;  %8339 = vmatpush3.msra.mxu0 %v9477_v55 }
 0x10a   :  { %8319 = vmatprep.subr.mxu1 %v9162_v47  ;;  %8340 = vmatprep.subr.mxu0 %v9162_v47 }
 0x10b   :  { %8320 = vmatpush3.msra.mxu1 %v9486_v56  ;;  %8321 = vmatprep.mubr.msk.f32.mxu1 %vm9163_vm2, %v9162_v47 }
 0x10c   :  { %8341 = vmatpush3.msra.mxu0 %v9493_v57  ;;  %8342 = vmatprep.mubr.msk.f32.mxu0 %vm9163_vm2, %v9162_v47 }
 0x10d   :  { %8322 = vmatmul.mubr.f32.vlgmr.msra.gmra.mxu1 %v9162_v47  ;;  %8331 = vmatprep.subr.mxu1 %v9162_v47 }
 0x10e   :  { %8343 = vmatmul.mubr.f32.vlgmr.msra.gmra.mxu0 %v9162_v47  ;;  %8332 = vmatpush3.msra.mxu1 %v9503_v58 }
 0x10f   :  { %8333 = vmatprep.subr.mxu1 %v9162_v47  ;;  %8335 = vmatprep.mubr.msk.f32.mxu1 %vm9163_vm2, %v9162_v47 }
 0x110   :  { %8334 = vmatpush3.msra.mxu1 %v9513_v59  ;;  %8352 = vmatprep.subr.mxu0 %v9162_v47 }
 0x111   :  { %8336 = vmatmul.mubr.f32.vlgmr.msra.gmra.mxu1 %v9162_v47  ;;  %8345 = vmatprep.subr.mxu1 %v9162_v47 }
 0x112   :  { %8346 = vmatpush3.msra.mxu1 %v9523_v60  ;;  %8349 = vmatprep.mubr.msk.f32.mxu1 %vm9163_vm2, %v9162_v47 }
 0x113   :  { %8347 = vmatprep.subr.mxu1 %v9162_v47  ;;  %8353 = vmatpush3.msra.mxu0 %v9402_v45 }
 0x114   :  { %8348 = vmatpush3.msra.mxu1 %v9532_v61  ;;  %8354 = vmatprep.subr.mxu0 %v9162_v47 }
 0x115   :  { %8350 = vmatmul.mubr.f32.vlgmr.msra.gmra.mxu1 %v9162_v47  ;;  %8359 = vmatprep.subr.mxu1 %v9162_v47 }
 0x116   :  { %8360 = vmatpush3.msra.mxu1 %v9438_v50  ;;  %8355 = vmatpush3.msra.mxu0 %v9418_v48 }
 0x117   :  { %8361 = vmatprep.subr.mxu1 %v9162_v47  ;;  %8356 = vmatprep.mubr.msk.f32.mxu0 %vm9163_vm2, %v9162_v47 }
 0x118   :  { %8362 = vmatpush3.msra.mxu1 %v9452_v52  ;;  %8363 = vmatprep.mubr.msk.f32.mxu1 %vm9163_vm2, %v9162_v47 }
 0x119   :  { %8366 = vmatprep.subr.mxu0 %v9162_v47  ;;  %8373 = vmatprep.subr.mxu1 %v9162_v47 }
 0x19e   :  { %v8218_v0 = vpop.f32.mrf.mxu1  ;;  %v8229_v1 = vpop.f32.mrf.mxu0 }
 0x19f   :  { %v9559_v2 = vadd.f32 %v8218_v0, %v7722_v62  ;;  %v9561_v3 = vadd.f32 %v8229_v1, %v7730_v63 }
 0x1a0   :  { %v230_v4 = vpop.f32.mrf.mxu1  ;;  %v318_v5 = vpop.f32.mrf.mxu0 }
 0x1a1   :  { %v9593_v30 = vadd.f32 %v7722_v62, %v230_v4  ;;  %v9596_v37 = vadd.f32 %v7730_v63, %v318_v5 }
 0x1a7   :  { %v8240_v8 = vpop.f32.mrf.mxu1  ;;  %v8251_v9 = vpop.f32.mrf.mxu0 }
 0x1a8   :  { %v9569_v10 = vadd.f32 %v8240_v8, %v7738_v6  ;;  %v9571_v11 = vadd.f32 %v8251_v9, %v7746_v7 }
 0x1a9   :  { %v406_v12 = vpop.f32.mrf.mxu1  ;;  %v494_v13 = vpop.f32.mrf.mxu0 }
 0x1aa   :  { %v9602_v9 = vadd.f32 %v7746_v7, %v494_v13 }
 0x1b1   :  { %v8262_v14 = vpop.f32.mrf.mxu1  ;;  %v8273_v15 = vpop.f32.mrf.mxu0 }
 0x1b2   :  { %v9599_v41 = vadd.f32 %v8262_v14, %v7754_v16 }
 0x1b3   :  { %v582_v18 = vpop.f32.mrf.mxu1  ;;  %v670_v19 = vpop.f32.mrf.mxu0 }
 0x1b4   :  { %v9579_v20 = vadd.f32 %v7754_v16, %v582_v18  ;;  %v9581_v21 = vadd.f32 %v7762_v17, %v670_v19 }
 0x1bb   :  { %v8284_v22 = vpop.f32.mrf.mxu1  ;;  %v8295_v23 = vpop.f32.mrf.mxu0 }
 0x1bd   :  { %v758_v26 = vpop.f32.mrf.mxu1  ;;  %v846_v27 = vpop.f32.mrf.mxu0 }
 0x1be   :  { %v9589_v28 = vadd.f32 %v7770_v24, %v758_v26  ;;  %v9591_v29 = vadd.f32 %v7778_v25, %v846_v27  ;;  %v9605_v26 = vadd.f32 %v8273_v15, %v7762_v17 }
 0x1c1   :  { %v948_v31 = vpop.f32.mrf.mxu1 }
 0x1c2   :  { %v952_v32 = vadd.f32 %v948_v31, %v9593_v30  ;;  %v1090_v33 = vpop.f32.mrf.mxu0 }
 0x1c3   :  { %v8302_v34 = vpop.f32.mrf.mxu1 }
 0x1c4   :  { %v7795_v35 = vmul.f32 -1.442695, %v952_v32  ;;  %v8316_v36 = vpop.f32.mrf.mxu0  ;;  %v9608_v32 = vadd.f32 %v7738_v6, %v406_v12 }
 0x1c6   :  { %8804 = vpow2.f32 %v7795_v35  ;;  %v1094_v13 = vadd.f32 %v1090_v33, %v9608_v32 }
 0x1c7   :  { %v1019_v38 = vpop.f32.mrf.mxu1 }
 0x1c8   :  { %v1023_v39 = vadd.f32 %v1019_v38, %v9596_v37  ;;  %v1256_v40 = vpop.f32.mrf.mxu0 }
 0x1c9   :  { %v1261_v42 = vrot.slane %v1256_v40, 2  ;;  %v8309_v43 = vpop.f32.mrf.mxu1  ;;  %v9611_v40 = vadd.f32 %v8295_v23, %v7778_v25 }
 0x1ca   :  { %v7796_v44 = vmul.f32 -1.442695, %v1023_v39  ;;  %v8330_v62 = vpop.f32.mrf.mxu0  ;;  %v9614_v43 = vadd.f32 %v8284_v22, %v7770_v24 }
 0x1cb   :  { %v1263_v0 = vadd.f32 %v1261_v42, %v9599_v41 }
 0x1cc   :  { %8806 = vpow2.f32 %v7796_v44 }
 0x1cd   :  { %v1161_v1 = vpop.f32.mrf.mxu1  ;;  %v7798_v4 = vmul.f32 -1.442695, %v1263_v0 }
 0x1ce   :  { %v1404_v8 = vpop.f32.mrf.mxu0  ;;  %v1165_v18 = vadd.f32 %v1161_v1, %v9602_v9 }
 0x1cf   :  { %v8323_v63 = vpop.f32.mrf.mxu1  ;;  %8808 = vpow2.f32 %v7798_v4  ;;  %v1409_v42 = vrot.slane %v1404_v8, 2 }
 0x1d0   :  { %v8344_v5 = vpop.f32.mrf.mxu0  ;;  %v7797_v34 = vmul.f32 -1.442695, %v1165_v18 }
 0x1d1   :  { %v1330_v19 = vpop.f32.mrf.mxu1  ;;  %v1411_v33 = vadd.f32 %v1409_v42, %v9614_v43 }
 0x1d2   :  { %v1335_v14 = vrot.slane %v1330_v19, 2 }
 0x1d3   :  { %v8805_v16 = vpop.eup %8804  ;;  %v8337_v27 = vpop.f32.mrf.mxu1 }
 0x1d4   :  { %v1337_v31 = vadd.f32 %v1335_v14, %v9605_v26  ;;  %v1169_v36 = vadd.f32 1.0, %v8805_v16 }
 0x1d5   :  { %v1478_v35 = vpop.f32.mrf.mxu1 }
 0x1d6   :  { %v7799_v7 = vmul.f32 -1.442695, %v1337_v31  ;;  %v1483_v15 = vrot.slane %v1478_v35, 2 }
 0x1d7   :  { %v8351_v38 = vpop.f32.mrf.mxu1 }
 0x1d8   :  { %8810 = vpow2.f32 %v7799_v7  ;;  %v1485_v6 = vadd.f32 %v1483_v15, %v9611_v40 }
 0x1d9   :  { %v8807_v39 = vpop.eup %8806  ;;  %8812 = vpow2.f32 %v7797_v34 }
 0x1da   :  { %8814 = vrcp.f32 %v1169_v36  ;;  %v1175_v17 = vadd.f32 1.0, %v8807_v39  ;;  %v7800_v44 = vmul.f32 -1.442695, %v1485_v6 }
 0x1db   :  { %8816 = vtanh.f32 %v1094_v13 }
 0x1dc   :  { %8818 = vrcp.f32 %v1175_v17  ;;  %v8809_v12 = vpop.eup %8808 }
 0x1dd   :  { %v1489_v62 = vadd.f32 1.0, %v8809_v12  ;;  %8820 = vpow2.f32 %v7800_v44 }
 0x1df   :  { %8822 = vrcp.f32 %v1489_v62 }
 0x1e0   :  { %8824 = vtanh.f32 %v1411_v33 }
 0x1e5   :  { %v8811_v0 = vpop.eup %8810 }
 0x1e6   :  { %v8813_v1 = vpop.eup %8812  ;;  %v1495_v4 = vadd.f32 1.0, %v8811_v0 }
 0x1e7   :  { %v8815_v63 = vpop.eup %8814  ;;  %v1182_v5 = vadd.f32 1.0, %v8813_v1 }
 0x1e8   :  { %v8817_v23 = vpop.eup %8816  ;;  %8826 = vrcp.f32 %v1495_v4 }
 0x1e9   :  { %v8819_v25 = vpop.eup %8818  ;;  %v1186_v19 = vmul.f32 %v8817_v23, %v8815_v63  ;;  %8828 = vrcp.f32 %v1182_v5 }
 0x1ea   :  { %v1185_v18 = vmul.f32 0.0, %v8819_v25  ;;  %v8821_v22 = vpop.eup %8820 }
 0x1eb   :  { %v1502_v27 = vadd.f32 1.0, %v8821_v22 }
 0x1ec   :  { %v9617_v8 = vadd.f32 %v1186_v19, %v1185_v18  ;;  %v8823_v24 = vpop.eup %8822 }
 0x1ed   :  { %v8825_v14 = vpop.eup %8824 }
 0x1ee   :  { %8830 = vtanh.f32 %v9617_v8  ;;  %v1506_v34 = vmul.f32 %v8825_v14, %v8823_v24 }
 0x1ef   :  { %8832 = vrcp.f32 %v1502_v27 }
 0x1f5   :  { %v8827_v16 = vpop.eup %8826 }
 0x1f6   :  { %v1505_v31 = vmul.f32 0.0, %v8827_v16  ;;  %v8829_v36 = vpop.eup %8828 }
 0x1f8   :  { %v9620_v35 = vadd.f32 %v1506_v34, %v1505_v31 }
 0x1fa   :  { %8834 = vtanh.f32 %v9620_v35 }
 0x1fb   :  { %v8831_v7 = vpop.eup %8830 }
 0x1fc   :  { %v9623_v13 = vmul.f32 %v8831_v7, %v8829_v36  ;;  %v8833_v38 = vpop.eup %8832 }
 0x1fe   :  { %8357 = vmatmul.mubr.msk.f32.vlgmr.msra.gmra.mxu0 %vm878_vm3, %v9623_v13  ;;  %8364 = vmatmul.mubr.msk.f32.vlgmr.msra.gmra.mxu1 %vm878_vm3, %v9623_v13 }
 0x1ff   :  { %8367 = vmatpush3.msra.mxu0 %v9407_v46  ;;  %8374 = vmatpush3.msra.mxu1 %v9472_v54 }
 0x200   :  { %8368 = vmatprep.subr.mxu0 %v9162_v47  ;;  %8375 = vmatprep.subr.mxu1 %v9162_v47 }
 0x201   :  { %8369 = vmatpush3.msra.mxu0 %v9425_v49  ;;  %8370 = vmatprep.mubr.msk.f32.mxu0 %vm9163_vm2, %v9162_v47 }
 0x202   :  { %8376 = vmatpush3.msra.mxu1 %v9486_v56  ;;  %8377 = vmatprep.mubr.msk.f32.mxu1 %vm9163_vm2, %v9162_v47 }
 0x203   :  { %8371 = vmatmul.mubr.msk.f32.vlgmr.msra.gmra.mxu0 %vm878_vm3, %v9623_v13  ;;  %8378 = vmatmul.mubr.msk.f32.vlgmr.msra.gmra.mxu1 %vm878_vm3, %v9623_v13 }
 0x204   :  { %8380 = vmatprep.subr.mxu0 %v9162_v47  ;;  %8387 = vmatprep.subr.mxu1 %v9162_v47 }
 0x205   :  { %8381 = vmatpush3.msra.mxu0 %v9443_v51  ;;  %8388 = vmatpush3.msra.mxu1 %v9503_v58 }
 0x206   :  { %8382 = vmatprep.subr.mxu0 %v9162_v47  ;;  %8389 = vmatprep.subr.mxu1 %v9162_v47 }
 0x207   :  { %v8835_v39 = vpop.eup %8834  ;;  %8383 = vmatpush3.msra.mxu0 %v9459_v53  ;;  %8384 = vmatprep.mubr.msk.f32.mxu0 %vm9163_vm2, %v9162_v47 }
 0x208   :  { %8390 = vmatpush3.msra.mxu1 %v9513_v59  ;;  %8391 = vmatprep.mubr.msk.f32.mxu1 %vm9163_vm2, %v9162_v47  ;;  %v9655_v15 = vmul.f32 %v8835_v39, %v8833_v38 }
 0x209   :  { %8394 = vmatprep.subr.mxu0 %v9162_v47  ;;  %8401 = vmatprep.subr.mxu1 %v9162_v47 }
 0x20a   :  { %v1837_v17 = vrot.slane %v9655_v15, 6 }
 0x20c   :  { %8385 = vmatmul.mubr.msk.f32.vlgmr.msra.gmra.mxu0 %vm878_vm3, %v1837_v17  ;;  %8392 = vmatmul.mubr.msk.f32.vlgmr.msra.gmra.mxu1 %vm878_vm3, %v1837_v17 }
 0x20d   :  { %8395 = vmatpush3.msra.mxu0 %v9477_v55  ;;  %8402 = vmatpush3.msra.mxu1 %v9523_v60 }
 0x20e   :  { %8396 = vmatprep.subr.mxu0 %v9162_v47  ;;  %8403 = vmatprep.subr.mxu1 %v9162_v47 }
 0x20f   :  { %8397 = vmatpush3.msra.mxu0 %v9493_v57  ;;  %8398 = vmatprep.mubr.msk.f32.mxu0 %vm9163_vm2, %v9162_v47 }
 0x210   :  { %8404 = vmatpush3.msra.mxu1 %v9532_v61  ;;  %8405 = vmatprep.mubr.msk.f32.mxu1 %vm9163_vm2, %v9162_v47 }
 0x211   :  { %8399 = vmatmul.mubr.msk.f32.vlgmr.msra.gmra.mxu0 %vm878_vm3, %v1837_v17  ;;  %8406 = vmatmul.mubr.msk.f32.vlgmr.msra.gmra.mxu1 %vm878_vm3, %v1837_v17 }
 0x212   :  { %8408 = vmatprep.subr.mxu0 %v9162_v47  ;;  %8415 = vmatprep.subr.mxu1 %v9162_v47 }
 0x213   :  { %8409 = vmatpush3.msra.mxu0 %v9402_v45  ;;  %8416 = vmatpush3.msra.mxu1 %v9438_v50 }
 0x214   :  { %8410 = vmatprep.subr.mxu0 %v9162_v47  ;;  %8417 = vmatprep.subr.mxu1 %v9162_v47 }
 0x215   :  { %8411 = vmatpush3.msra.mxu0 %v9418_v48  ;;  %8412 = vmatprep.mubr.msk.f32.mxu0 %vm9163_vm2, %v9162_v47 }
 0x216   :  { %8418 = vmatpush3.msra.mxu1 %v9452_v52  ;;  %8419 = vmatprep.mubr.msk.f32.mxu1 %vm9163_vm2, %v9162_v47 }
 0x217   :  { %8422 = vmatprep.subr.mxu0 %v9162_v47  ;;  %8429 = vmatprep.subr.mxu1 %v9162_v47 }
 0x2be   :  { %v1579_v6 = vpop.f32.mrf.mxu0  ;;  %v1653_v12 = vpop.f32.mrf.mxu1 }
 0x2bf   :  { %v1584_v42 = vrot.slane %v1579_v6, 6  ;;  %v1658_v44 = vrot.slane %v1653_v12, 6 }
 0x2c0   :  { %v8358_v62 = vpop.f32.mrf.mxu0  ;;  %v8365_v33 = vpop.f32.mrf.mxu1 }
 0x2c1   :  { %v1586_v0 = vadd.f32 %v1584_v42, %v9593_v30  ;;  %v1660_v1 = vadd.f32 %v1658_v44, %v9596_v37 }
 0x2c3   :  { %v7805_v4 = vmul.f32 -1.442695, %v1586_v0  ;;  %v7806_v63 = vmul.f32 -1.442695, %v1660_v1  ;;  %v1727_v23 = vpop.f32.mrf.mxu0  ;;  %v1801_v25 = vpop.f32.mrf.mxu1 }
 0x2c4   :  { %v1806_v19 = vrot.slane %v1801_v25, 6  ;;  %v1732_v22 = vrot.slane %v1727_v23, 6 }
 0x2c5   :  { %8836 = vpow2.f32 %v7805_v4  ;;  %v8372_v5 = vpop.f32.mrf.mxu0  ;;  %v8379_v18 = vpop.f32.mrf.mxu1 }
 0x2c6   :  { %8838 = vpow2.f32 %v7806_v63  ;;  %v1808_v24 = vadd.f32 %v1806_v19, %v9602_v9  ;;  %v1734_v27 = vadd.f32 %v1732_v22, %v9608_v32 }
 0x2c8   :  { %v7807_v36 = vmul.f32 -1.442695, %v1808_v24  ;;  %8840 = vtanh.f32 %v1734_v27 }
 0x2ca   :  { %8842 = vpow2.f32 %v7807_v36 }
 0x2cc   :  { %v1906_v14 = vpop.f32.mrf.mxu0  ;;  %v1980_v16 = vpop.f32.mrf.mxu1 }
 0x2cd   :  { %v1911_v31 = vrot.slane %v1906_v14, 4  ;;  %v1985_v34 = vrot.slane %v1980_v16, 4 }
 0x2ce   :  { %v8386_v7 = vpop.f32.mrf.mxu0  ;;  %v8393_v38 = vpop.f32.mrf.mxu1 }
 0x2cf   :  { %v1913_v39 = vadd.f32 %v1911_v31, %v9599_v41  ;;  %v1987_v17 = vadd.f32 %v1985_v34, %v9605_v26  ;;  %v1829_v34 = vrot.slane %v9617_v8, 6 }
 0x2d1   :  { %v7812_v6 = vmul.f32 -1.442695, %v1913_v39  ;;  %v7813_v12 = vmul.f32 -1.442695, %v1987_v17  ;;  %v2054_v42 = vpop.f32.mrf.mxu0  ;;  %v2128_v44 = vpop.f32.mrf.mxu1 }
 0x2d2   :  { %v8837_v62 = vpop.eup %8836  ;;  %v2133_v23 = vrot.slane %v2128_v44, 4  ;;  %v2059_v5 = vrot.slane %v2054_v42, 4 }
 0x2d3   :  { %v8839_v33 = vpop.eup %8838  ;;  %v1812_v0 = vadd.f32 1.0, %v8837_v62  ;;  %8844 = vpow2.f32 %v7812_v6  ;;  %v8400_v1 = vpop.f32.mrf.mxu0  ;;  %v2156_v62 = vrot.slane %v9620_v35, 2 }
 0x2d4   :  { %v8407_v4 = vpop.f32.mrf.mxu1  ;;  %v1818_v63 = vadd.f32 1.0, %v8839_v33  ;;  %8846 = vpow2.f32 %v7813_v12  ;;  %v2135_v25 = vadd.f32 %v2133_v23, %v9611_v40  ;;  %v2061_v22 = vadd.f32 %v2059_v5, %v9614_v43 }
 0x2d5   :  { %8848 = vrcp.f32 %v1812_v0  ;;  %v8841_v19 = vpop.eup %8840 }
 0x2d6   :  { %8850 = vrcp.f32 %v1818_v63  ;;  %v7814_v18 = vmul.f32 -1.442695, %v2135_v25 }
 0x2d7   :  { %v8843_v24 = vpop.eup %8842 }
 0x2d8   :  { %8852 = vpow2.f32 %v7814_v18  ;;  %v1825_v39 = vadd.f32 1.0, %v8843_v24 }
 0x2d9   :  { %8854 = vtanh.f32 %v2061_v22 }
 0x2e0   :  { %v8845_v14 = vpop.eup %8844 }
 0x2e1   :  { %v8847_v16 = vpop.eup %8846  ;;  %v2139_v27 = vadd.f32 1.0, %v8845_v14 }
 0x2e2   :  { %v8849_v31 = vpop.eup %8848  ;;  %v2145_v36 = vadd.f32 1.0, %v8847_v16 }
 0x2e3   :  { %v8851_v7 = vpop.eup %8850  ;;  %v1832_v38 = vmul.f32 %v8849_v31, %v8841_v19  ;;  %8856 = vrcp.f32 %v2139_v27 }
 0x2e4   :  { %v1831_v17 = vmul.f32 %v8851_v7, %v1829_v34  ;;  %8858 = vrcp.f32 %v2145_v36 }
 0x2e5   :  { %8860 = vrcp.f32 %v1825_v39  ;;  %v8853_v12 = vpop.eup %8852 }
 0x2e6   :  { %v9697_v6 = vadd.f32 %v1832_v38, %v1831_v17  ;;  %v8855_v42 = vpop.eup %8854  ;;  %v2152_v0 = vadd.f32 1.0, %v8853_v12 }
 0x2e8   :  { %8862 = vtanh.f32 %v9697_v6 }
 0x2e9   :  { %8864 = vrcp.f32 %v2152_v0 }
 0x2f0   :  { %v8857_v44 = vpop.eup %8856 }
 0x2f1   :  { %v8859_v33 = vpop.eup %8858  ;;  %v2159_v8 = vmul.f32 %v8857_v44, %v8855_v42 }
 0x2f2   :  { %v2158_v1 = vmul.f32 %v8859_v33, %v2156_v62  ;;  %v8861_v4 = vpop.eup %8860 }
 0x2f4   :  { %v9701_v63 = vadd.f32 %v2159_v8, %v2158_v1 }
 0x2f5   :  { %v8863_v23 = vpop.eup %8862 }
 0x2f6   :  { %8866 = vtanh.f32 %v9701_v63  ;;  %v9704_v25 = vmul.f32 %v8863_v23, %v8861_v4  ;;  %v8865_v35 = vpop.eup %8864 }
 0x2f8   :  { %v2164_v5 = vrot.slane %v9704_v25, 2 }
 0x2fa   :  { %8413 = vmatmul.mubr.msk.f32.vlgmr.msra.gmra.mxu0 %vm878_vm3, %v2164_v5  ;;  %8420 = vmatmul.mubr.msk.f32.vlgmr.msra.gmra.mxu1 %vm878_vm3, %v2164_v5 }
 0x2fb   :  { %8423 = vmatpush3.msra.mxu0 %v9407_v46  ;;  %8430 = vmatpush3.msra.mxu1 %v9472_v54 }
 0x2fc   :  { %8424 = vmatprep.subr.mxu0 %v9162_v47  ;;  %8431 = vmatprep.subr.mxu1 %v9162_v47 }
 0x2fd   :  { %8425 = vmatpush3.msra.mxu0 %v9425_v49  ;;  %8426 = vmatprep.mubr.msk.f32.mxu0 %vm9163_vm2, %v9162_v47 }
 0x2fe   :  { %8432 = vmatpush3.msra.mxu1 %v9486_v56  ;;  %8433 = vmatprep.mubr.msk.f32.mxu1 %vm9163_vm2, %v9162_v47 }
 0x2ff   :  { %8427 = vmatmul.mubr.msk.f32.vlgmr.msra.gmra.mxu0 %vm878_vm3, %v2164_v5  ;;  %8434 = vmatmul.mubr.msk.f32.vlgmr.msra.gmra.mxu1 %vm878_vm3, %v2164_v5 }
 0x300   :  { %8436 = vmatprep.subr.mxu0 %v9162_v47  ;;  %8443 = vmatprep.subr.mxu1 %v9162_v47 }
 0x301   :  { %8437 = vmatpush3.msra.mxu0 %v9443_v51  ;;  %8444 = vmatpush3.msra.mxu1 %v9503_v58 }
 0x302   :  { %8438 = vmatprep.subr.mxu0 %v9162_v47  ;;  %8445 = vmatprep.subr.mxu1 %v9162_v47 }
 0x303   :  { %v8867_v18 = vpop.eup %8866  ;;  %8439 = vmatpush3.msra.mxu0 %v9459_v53  ;;  %8440 = vmatprep.mubr.msk.f32.mxu0 %vm9163_vm2, %v9162_v47 }
 0x304   :  { %8446 = vmatpush3.msra.mxu1 %v9513_v59  ;;  %8447 = vmatprep.mubr.msk.f32.mxu1 %vm9163_vm2, %v9162_v47  ;;  %v9733_v19 = vmul.f32 %v8867_v18, %v8865_v35 }
 0x305   :  { %8450 = vmatprep.subr.mxu0 %v9162_v47  ;;  %8457 = vmatprep.subr.mxu1 %v9162_v47 }
 0x306   :  { %v2491_v22 = vrot.slane %v9733_v19, 4 }
 0x308   :  { %8441 = vmatmul.mubr.msk.f32.vlgmr.msra.gmra.mxu0 %vm878_vm3, %v2491_v22  ;;  %8448 = vmatmul.mubr.msk.f32.vlgmr.msra.gmra.mxu1 %vm878_vm3, %v2491_v22 }
 0x309   :  { %8451 = vmatpush3.msra.mxu0 %v9477_v55  ;;  %8458 = vmatpush3.msra.mxu1 %v9523_v60 }
 0x30a   :  { %8452 = vmatprep.subr.mxu0 %v9162_v47  ;;  %8459 = vmatprep.subr.mxu1 %v9162_v47 }
 0x30b   :  { %8453 = vmatpush3.msra.mxu0 %v9493_v57  ;;  %8454 = vmatprep.mubr.msk.f32.mxu0 %vm9163_vm2, %v9162_v47 }
 0x30c   :  { %8460 = vmatpush3.msra.mxu1 %v9532_v61  ;;  %8461 = vmatprep.mubr.msk.f32.mxu1 %vm9163_vm2, %v9162_v47 }
 0x30d   :  { %8455 = vmatmul.mubr.msk.f32.vlgmr.msra.gmra.mxu0 %vm878_vm3, %v2491_v22  ;;  %8462 = vmatmul.mubr.msk.f32.vlgmr.msra.gmra.mxu1 %vm878_vm3, %v2491_v22 }
 0x30e   :  { %8464 = vmatprep.subr.mxu0 %v9162_v47  ;;  %8471 = vmatprep.subr.mxu1 %v9162_v47 }
 0x30f   :  { %8465 = vmatpush3.msra.mxu0 %v9402_v45  ;;  %8472 = vmatpush3.msra.mxu1 %v9438_v50 }
 0x310   :  { %8466 = vmatprep.subr.mxu0 %v9162_v47  ;;  %8473 = vmatprep.subr.mxu1 %v9162_v47 }
 0x311   :  { %8467 = vmatpush3.msra.mxu0 %v9418_v48  ;;  %8468 = vmatprep.mubr.msk.f32.mxu0 %vm9163_vm2, %v9162_v47 }
 0x312   :  { %8474 = vmatpush3.msra.mxu1 %v9452_v52  ;;  %8475 = vmatprep.mubr.msk.f32.mxu1 %vm9163_vm2, %v9162_v47 }
 0x313   :  { %8478 = vmatprep.subr.mxu0 %v9162_v47  ;;  %8485 = vmatprep.subr.mxu1 %v9162_v47 }
 0x3ba   :  { %v2233_v45 = vpop.f32.mrf.mxu0  ;;  %v2307_v24 = vpop.f32.mrf.mxu1 }
 0x3bb   :  { %v2238_v14 = vrot.slane %v2233_v45, 4  ;;  %v2312_v16 = vrot.slane %v2307_v24, 4 }
 0x3bc   :  { %v8414_v27 = vpop.f32.mrf.mxu0  ;;  %v8421_v31 = vpop.f32.mrf.mxu1 }
 0x3bd   :  { %v2240_v48 = vadd.f32 %v2238_v14, %v9593_v30  ;;  %v2314_v34 = vadd.f32 %v2312_v16, %v9596_v37 }
 0x3bf   :  { %v7819_v36 = vmul.f32 -1.442695, %v2240_v48  ;;  %v7820_v7 = vmul.f32 -1.442695, %v2314_v34  ;;  %v2381_v38 = vpop.f32.mrf.mxu0  ;;  %v2455_v39 = vpop.f32.mrf.mxu1 }
 0x3c0   :  { %v2460_v42 = vrot.slane %v2455_v39, 4  ;;  %v2386_v44 = vrot.slane %v2381_v38, 4 }
 0x3c1   :  { %8868 = vpow2.f32 %v7819_v36  ;;  %v8428_v17 = vpop.f32.mrf.mxu0  ;;  %v8435_v12 = vpop.f32.mrf.mxu1 }
 0x3c2   :  { %8870 = vpow2.f32 %v7820_v7  ;;  %v2462_v62 = vadd.f32 %v2460_v42, %v9602_v9  ;;  %v2388_v0 = vadd.f32 %v2386_v44, %v9608_v32 }
 0x3c4   :  { %v7821_v23 = vmul.f32 -1.442695, %v2462_v62  ;;  %8872 = vtanh.f32 %v2388_v0 }
 0x3c6   :  { %8874 = vpow2.f32 %v7821_v23 }
 0x3c8   :  { %v2560_v33 = vpop.f32.mrf.mxu0  ;;  %v2634_v8 = vpop.f32.mrf.mxu1 }
 0x3c9   :  { %v2565_v1 = vrot.slane %v2560_v33, 6  ;;  %v2639_v4 = vrot.slane %v2634_v8, 6 }
 0x3ca   :  { %v8442_v5 = vpop.f32.mrf.mxu0  ;;  %v8449_v35 = vpop.f32.mrf.mxu1 }
 0x3cb   :  { %v2567_v18 = vadd.f32 %v2565_v1, %v9599_v41  ;;  %v2641_v22 = vadd.f32 %v2639_v4, %v9605_v26  ;;  %v2483_v4 = vrot.slane %v9697_v6, 6 }
 0x3cd   :  { %v7826_v45 = vmul.f32 -1.442695, %v2567_v18  ;;  %v7827_v24 = vmul.f32 -1.442695, %v2641_v22  ;;  %v2708_v14 = vpop.f32.mrf.mxu0  ;;  %v2782_v16 = vpop.f32.mrf.mxu1 }
 0x3ce   :  { %v8869_v27 = vpop.eup %8868  ;;  %v2787_v38 = vrot.slane %v2782_v16, 6  ;;  %v2713_v17 = vrot.slane %v2708_v14, 6 }
 0x3cf   :  { %v8871_v31 = vpop.eup %8870  ;;  %v2466_v48 = vadd.f32 1.0, %v8869_v27  ;;  %8876 = vpow2.f32 %v7826_v45  ;;  %v8456_v34 = vpop.f32.mrf.mxu0  ;;  %v2810_v27 = vrot.slane %v9701_v63, 2 }
 0x3d0   :  { %v8463_v36 = vpop.f32.mrf.mxu1  ;;  %v2472_v7 = vadd.f32 1.0, %v8871_v31  ;;  %8878 = vpow2.f32 %v7827_v24  ;;  %v2789_v39 = vadd.f32 %v2787_v38, %v9611_v40  ;;  %v2715_v44 = vadd.f32 %v2713_v17, %v9614_v43 }
 0x3d1   :  { %8880 = vrcp.f32 %v2466_v48  ;;  %v8873_v42 = vpop.eup %8872  ;;  %v6050_v17 = vsel %vm6049_vm4, %v9623_v13, %v9704_v25 }
 0x3d2   :  { %8882 = vrcp.f32 %v2472_v7  ;;  %v7828_v12 = vmul.f32 -1.442695, %v2789_v39 }
 0x3d3   :  { %v8875_v62 = vpop.eup %8874 }
 0x3d4   :  { %8884 = vpow2.f32 %v7828_v12  ;;  %v2479_v18 = vadd.f32 1.0, %v8875_v62 }
 0x3d5   :  { %8886 = vtanh.f32 %v2715_v44 }
 0x3dc   :  { %v8877_v33 = vpop.eup %8876 }
 0x3dd   :  { %v8879_v8 = vpop.eup %8878  ;;  %v2793_v0 = vadd.f32 1.0, %v8877_v33 }
 0x3de   :  { %v8881_v1 = vpop.eup %8880  ;;  %v2799_v23 = vadd.f32 1.0, %v8879_v8 }
 0x3df   :  { %v8883_v5 = vpop.eup %8882  ;;  %v2486_v35 = vmul.f32 %v8881_v1, %v8873_v42  ;;  %8888 = vrcp.f32 %v2793_v0 }
 0x3e0   :  { %v2485_v22 = vmul.f32 %v8883_v5, %v2483_v4  ;;  %8890 = vrcp.f32 %v2799_v23 }
 0x3e1   :  { %8892 = vrcp.f32 %v2479_v18  ;;  %v8885_v24 = vpop.eup %8884 }
 0x3e2   :  { %v9775_v45 = vadd.f32 %v2486_v35, %v2485_v22  ;;  %v8887_v14 = vpop.eup %8886  ;;  %v2806_v48 = vadd.f32 1.0, %v8885_v24 }
 0x3e4   :  { %8894 = vtanh.f32 %v9775_v45 }
 0x3e5   :  { %8896 = vrcp.f32 %v2806_v48 }
 0x3ec   :  { %v8889_v16 = vpop.eup %8888 }
 0x3ed   :  { %v8891_v31 = vpop.eup %8890  ;;  %v2813_v6 = vmul.f32 %v8889_v16, %v8887_v14 }
 0x3ee   :  { %v2812_v34 = vmul.f32 %v8891_v31, %v2810_v27  ;;  %v8893_v36 = vpop.eup %8892 }
 0x3f0   :  { %v9779_v7 = vadd.f32 %v2813_v6, %v2812_v34 }
 0x3f1   :  { %v8895_v38 = vpop.eup %8894 }
 0x3f2   :  { %8898 = vtanh.f32 %v9779_v7  ;;  %v2489_v39 = vmul.f32 %v8895_v38, %v8893_v36 }
 0x3f4   :  { %v2818_v12 = vrot.slane %v2489_v39, 4  ;;  %v9786_v63 = vsel %vm6051_vm5, %v6050_v17, %v2489_v39 }
 0x3f6   :  { %8469 = vmatmul.mubr.msk.f32.vlgmr.msra.gmra.mxu0 %vm878_vm3, %v2818_v12  ;;  %8476 = vmatmul.mubr.msk.f32.vlgmr.msra.gmra.mxu1 %vm878_vm3, %v2818_v12 }
 0x3f7   :  { %8479 = vmatpush3.msra.mxu0 %v9407_v46  ;;  %8486 = vmatpush3.msra.mxu1 %v9472_v54  ;;  %v8897_v46 = vpop.eup %8896 }
 0x3f8   :  { %8480 = vmatprep.subr.mxu0 %v9162_v47  ;;  %8487 = vmatprep.subr.mxu1 %v9162_v47 }
 0x3f9   :  { %8481 = vmatpush3.msra.mxu0 %v9425_v49  ;;  %8482 = vmatprep.mubr.msk.f32.mxu0 %vm9163_vm2, %v9162_v47 }
 0x3fa   :  { %8488 = vmatpush3.msra.mxu1 %v9486_v56  ;;  %8489 = vmatprep.mubr.msk.f32.mxu1 %vm9163_vm2, %v9162_v47 }
 0x3fb   :  { %8483 = vmatmul.mubr.msk.f32.vlgmr.msra.gmra.mxu0 %vm878_vm3, %v2818_v12  ;;  %8490 = vmatmul.mubr.msk.f32.vlgmr.msra.gmra.mxu1 %vm878_vm3, %v2818_v12 }
 0x3fc   :  { %8492 = vmatprep.subr.mxu0 %v9162_v47  ;;  %8499 = vmatprep.subr.mxu1 %v9162_v47 }
 0x3fd   :  { %8493 = vmatpush3.msra.mxu0 %v9443_v51  ;;  %8500 = vmatpush3.msra.mxu1 %v9503_v58 }
 0x3fe   :  { %8494 = vmatprep.subr.mxu0 %v9162_v47  ;;  %8501 = vmatprep.subr.mxu1 %v9162_v47 }
 0x3ff   :  { %v8899_v49 = vpop.eup %8898  ;;  %8495 = vmatpush3.msra.mxu0 %v9459_v53  ;;  %8496 = vmatprep.mubr.msk.f32.mxu0 %vm9163_vm2, %v9162_v47  ;;  %v9838_v53 = vld [vmem:[%s10772_s4 + $0x8] sm:$0xff] }
 0x400   :  { %8502 = vmatpush3.msra.mxu1 %v9513_v59  ;;  %8503 = vmatprep.mubr.msk.f32.mxu1 %vm9163_vm2, %v9162_v47  ;;  %v9814_v54 = vmul.f32 %v8899_v49, %v8897_v46 }
 0x401   :  { %8506 = vmatprep.subr.mxu0 %v9162_v47  ;;  %8513 = vmatprep.subr.mxu1 %v9162_v47 }
 0x402   :  { %v3145_v51 = vrot.slane %v9814_v54, 2 }
 0x404   :  { %8497 = vmatmul.mubr.msk.f32.vlgmr.msra.gmra.mxu0 %vm878_vm3, %v3145_v51  ;;  %8504 = vmatmul.mubr.msk.f32.vlgmr.msra.gmra.mxu1 %vm878_vm3, %v3145_v51 }
 0x405   :  { %8507 = vmatpush3.msra.mxu0 %v9477_v55  ;;  %8514 = vmatpush3.msra.mxu1 %v9523_v60  ;;  %v9847_v55 = vld [vmem:[%s10772_s4] sm:$0xff] }
 0x406   :  { %8508 = vmatprep.subr.mxu0 %v9162_v47  ;;  %8515 = vmatprep.subr.mxu1 %v9162_v47 }
 0x407   :  { %8509 = vmatpush3.msra.mxu0 %v9493_v57  ;;  %8510 = vmatprep.mubr.msk.f32.mxu0 %vm9163_vm2, %v9162_v47 }
 0x408   :  { %8516 = vmatpush3.msra.mxu1 %v9532_v61  ;;  %8517 = vmatprep.mubr.msk.f32.mxu1 %vm9163_vm2, %v9162_v47 }
 0x409   :  { %8511 = vmatmul.mubr.msk.f32.vlgmr.msra.gmra.mxu0 %vm878_vm3, %v3145_v51  ;;  %8518 = vmatmul.mubr.msk.f32.vlgmr.msra.gmra.mxu1 %vm878_vm3, %v3145_v51 }
 0x40a   :  { %8520 = vmatprep.subr.mxu0 %v9162_v47  ;;  %8527 = vmatprep.subr.mxu1 %v9162_v47 }
 0x40b   :  { %8521 = vmatpush3.msra.mxu0 %v9838_v53  ;;  %8528 = vmatpush3.msra.mxu1 %v9438_v50 }
 0x40c   :  { %8522 = vmatprep.subr.mxu0 %v9162_v47  ;;  %8529 = vmatprep.subr.mxu1 %v9162_v47 }
 0x40d   :  { %8523 = vmatpush3.msra.mxu0 %v9847_v55  ;;  %8524 = vmatprep.mubr.msk.f32.mxu0 %vm9163_vm2, %v9162_v47 }
 0x40e   :  { %8530 = vmatpush3.msra.mxu1 %v9452_v52  ;;  %8531 = vmatprep.mubr.msk.f32.mxu1 %vm9163_vm2, %v9162_v47 }
 0x40f   :  { %8534 = vmatprep.subr.mxu0 %v9162_v47  ;;  %8541 = vmatprep.subr.mxu1 %v9162_v47 }
 0x4b6   :  { %v2887_v50 = vpop.f32.mrf.mxu0  ;;  %v2961_v56 = vpop.f32.mrf.mxu1 }
 0x4b7   :  { %v2892_v57 = vrot.slane %v2887_v50, 2  ;;  %v2966_v58 = vrot.slane %v2961_v56, 2  ;;  %v3137_v50 = vrot.slane %v9775_v45, 6 }
 0x4b8   :  { %v8470_v59 = vpop.f32.mrf.mxu0  ;;  %v8477_v60 = vpop.f32.mrf.mxu1 }
 0x4b9   :  { %v2894_v61 = vadd.f32 %v2892_v57, %v9593_v30  ;;  %v2968_v13 = vadd.f32 %v2966_v58, %v9596_v37 }
 0x4bb   :  { %v7833_v25 = vmul.f32 -1.442695, %v2894_v61  ;;  %v7834_v42 = vmul.f32 -1.442695, %v2968_v13  ;;  %v3035_v52 = vpop.f32.mrf.mxu0  ;;  %v3109_v44 = vpop.f32.mrf.mxu1  ;;  %v3452_v13 = vrot.slane %v9779_v7, 2  ;;  %v9882_v7 = vld [vmem:[%s10772_s4 + $0x28] sm:$0xff] }
 0x4bc   :  { %v3114_v8 = vrot.slane %v3109_v44, 2  ;;  %v3040_v1 = vrot.slane %v3035_v52, 2 }
 0x4bd   :  { %8900 = vpow2.f32 %v7833_v25  ;;  %v8484_v62 = vpop.f32.mrf.mxu0  ;;  %v8491_v33 = vpop.f32.mrf.mxu1 }
 0x4be   :  { %8902 = vpow2.f32 %v7834_v42  ;;  %v3116_v0 = vadd.f32 %v3114_v8, %v9602_v9  ;;  %v3042_v14 = vadd.f32 %v3040_v1, %v9608_v32 }
 0x4c0   :  { %v7835_v18 = vmul.f32 -1.442695, %v3116_v0 }
 0x4c4   :  { %v3214_v4 = vpop.f32.mrf.mxu0  ;;  %v3285_v23 = vpop.f32.mrf.mxu1 }
 0x4c5   :  { %v3218_v5 = vadd.f32 %v3214_v4, %v9599_v41  ;;  %v3289_v30 = vadd.f32 %v3285_v23, %v9605_v26  ;;  %v9888_v4 = vld [vmem:[%s10772_s4 + $0x38] sm:$0xff]  ;;  %v9904_v23 = vld [vmem:[%s10772_s4 + $0x30] sm:$0xff] }
 0x4c6   :  { %v8498_v35 = vpop.f32.mrf.mxu0  ;;  %v8505_v37 = vpop.f32.mrf.mxu1 }
 0x4c7   :  { %v7840_v22 = vmul.f32 -1.442695, %v3218_v5  ;;  %v7841_v24 = vmul.f32 -1.442695, %v3289_v30  ;;  %v9916_v35 = vld [vmem:[%s10772_s4 + $0x48] sm:$0xff]  ;;  %v9922_v37 = vld [vmem:[%s10772_s4 + $0x58] sm:$0xff] }
 0x4c9   :  { %8904 = vpow2.f32 %v7840_v22  ;;  %v3356_v16 = vpop.f32.mrf.mxu0  ;;  %v3427_v27 = vpop.f32.mrf.mxu1  ;;  %v9932_v22 = vld [vmem:[%s10772_s4 + $0x40] sm:$0xff] }
 0x4ca   :  { %v8901_v31 = vpop.eup %8900  ;;  %8906 = vpow2.f32 %v7841_v24  ;;  %v3431_v26 = vadd.f32 %v3427_v27, %v9611_v40  ;;  %v3360_v38 = vadd.f32 %v3356_v16, %v9614_v43  ;;  %v9940_v24 = vld [vmem:[%s10772_s4 + $0x50] sm:$0xff]  ;;  %v9960_v16 = vld [vmem:[%s10772_s4 + $0x78] sm:$0xff]  ;;  %v9968_v27 = vld [vmem:[%s10772_s4 + $0x60] sm:$0xff] }
 0x4cb   :  { %v8903_v9 = vpop.eup %8902  ;;  %v3120_v6 = vadd.f32 1.0, %v8901_v31  ;;  %8908 = vpow2.f32 %v7835_v18  ;;  %v8512_v48 = vpop.f32.mrf.mxu0  ;;  %v9976_v31 = vld [vmem:[%s10772_s4 + $0x70] sm:$0xff] }
 0x4cc   :  { %v8519_v34 = vpop.f32.mrf.mxu1  ;;  %v3126_v41 = vadd.f32 1.0, %v8903_v9  ;;  %8910 = vtanh.f32 %v3042_v14  ;;  %v7842_v36 = vmul.f32 -1.442695, %v3431_v26  ;;  %v9954_v14 = vld [vmem:[%s10772_s4 + $0x68] sm:$0xff]  ;;  %v9991_v9 = vld [vmem:[%s10772_s4 + $0x18] sm:$0xff] }
 0x4cd   :  { %8912 = vrcp.f32 %v3120_v6  ;;  %v10002_v6 = vld [vmem:[%s10772_s4 + $0x10] sm:$0xff] }
 0x4ce   :  { %8914 = vrcp.f32 %v3126_v41 }
 0x4cf   :  { %8916 = vpow2.f32 %v7842_v36 }
 0x4d0   :  { %8918 = vtanh.f32 %v3360_v38 }
 0x4d6   :  { %v8905_v32 = vpop.eup %8904 }
 0x4d7   :  { %v8907_v39 = vpop.eup %8906  ;;  %v3435_v17 = vadd.f32 1.0, %v8905_v32 }
 0x4d8   :  { %v8909_v12 = vpop.eup %8908  ;;  %v3441_v46 = vadd.f32 1.0, %v8907_v39 }
 0x4d9   :  { %v8911_v49 = vpop.eup %8910  ;;  %8920 = vrcp.f32 %v3435_v17  ;;  %v3133_v58 = vadd.f32 1.0, %v8909_v12 }
 0x4da   :  { %v8913_v51 = vpop.eup %8912  ;;  %8922 = vrcp.f32 %v3441_v46 }
 0x4db   :  { %v8915_v56 = vpop.eup %8914  ;;  %v3140_v57 = vmul.f32 %v8913_v51, %v8911_v49  ;;  %8924 = vrcp.f32 %v3133_v58 }
 0x4dc   :  { %v3139_v40 = vmul.f32 %v8915_v56, %v3137_v50  ;;  %v8917_v43 = vpop.eup %8916 }
 0x4dd   :  { %v8919_v60 = vpop.eup %8918  ;;  %v3448_v52 = vadd.f32 1.0, %v8917_v43 }
 0x4de   :  { %v9866_v59 = vadd.f32 %v3140_v57, %v3139_v40 }
 0x4e0   :  { %8926 = vtanh.f32 %v9866_v59 }
 0x4e1   :  { %8928 = vrcp.f32 %v3448_v52 }
 0x4e6   :  { %v8921_v61 = vpop.eup %8920 }
 0x4e7   :  { %v8923_v25 = vpop.eup %8922  ;;  %v3455_v42 = vmul.f32 %v8921_v61, %v8919_v60 }
 0x4e8   :  { %v3454_v44 = vmul.f32 %v8923_v25, %v3452_v13  ;;  %v8925_v62 = vpop.eup %8924 }
 0x4ea   :  { %v9870_v45 = vadd.f32 %v3455_v42, %v3454_v44 }
 0x4ec   :  { %8930 = vtanh.f32 %v9870_v45 }
 0x4ed   :  { %v8927_v33 = vpop.eup %8926 }
 0x4ee   :  { %v3143_v8 = vmul.f32 %v8927_v33, %v8925_v62  ;;  %v8929_v5 = vpop.eup %8928 }
 0x4f0   :  { %v3460_v0 = vrot.slane %v3143_v8, 6  ;;  %v9875_v1 = vsel %vm6053_vm6, %v9786_v63, %v3143_v8  ;;  %v9896_v63 = vld [vmem:[%s10772_s4 + $0x20] sm:$0xff] }
 0x4f2   :  { %8525 = vmatmul.mubr.msk.f32.vlgmr.msra.gmra.mxu0 %vm878_vm3, %v3460_v0  ;;  %8532 = vmatmul.mubr.msk.f32.vlgmr.msra.gmra.mxu1 %vm878_vm3, %v3460_v0 }
 0x4f3   :  { %8535 = vmatpush3.msra.mxu0 %v9882_v7  ;;  %8542 = vmatpush3.msra.mxu1 %v9888_v4 }
 0x4f4   :  { %8536 = vmatprep.subr.mxu0 %v9162_v47  ;;  %8543 = vmatprep.subr.mxu1 %v9162_v47 }
 0x4f5   :  { %8537 = vmatpush3.msra.mxu0 %v9896_v63  ;;  %8538 = vmatprep.mubr.msk.f32.mxu0 %vm9163_vm2, %v9162_v47 }
 0x4f6   :  { %8544 = vmatpush3.msra.mxu1 %v9904_v23  ;;  %8545 = vmatprep.mubr.msk.f32.mxu1 %vm9163_vm2, %v9162_v47 }
 0x4f7   :  { %8539 = vmatmul.mubr.msk.f32.vlgmr.msra.gmra.mxu0 %vm878_vm3, %v3460_v0  ;;  %8546 = vmatmul.mubr.msk.f32.vlgmr.msra.gmra.mxu1 %vm878_vm3, %v3460_v0 }
 0x4f8   :  { %8548 = vmatprep.subr.mxu0 %v9162_v47  ;;  %8555 = vmatprep.subr.mxu1 %v9162_v47 }
 0x4f9   :  { %v8931_v30 = vpop.eup %8930  ;;  %8549 = vmatpush3.msra.mxu0 %v9916_v35  ;;  %8556 = vmatpush3.msra.mxu1 %v9922_v37 }
 0x4fa   :  { %8550 = vmatprep.subr.mxu0 %v9162_v47  ;;  %8557 = vmatprep.subr.mxu1 %v9162_v47  ;;  %v9927_v18 = vmul.f32 %v8931_v30, %v8929_v5 }
 0x4fb   :  { %8551 = vmatpush3.msra.mxu0 %v9932_v22  ;;  %8552 = vmatprep.mubr.msk.f32.mxu0 %vm9163_vm2, %v9162_v47 }
 0x4fc   :  { %8558 = vmatpush3.msra.mxu1 %v9940_v24  ;;  %8559 = vmatprep.mubr.msk.f32.mxu1 %vm9163_vm2, %v9162_v47 }
 0x4fd   :  { %8553 = vmatmul.mubr.msk.f32.vlgmr.msra.gmra.mxu0 %vm878_vm3, %v9927_v18  ;;  %8560 = vmatmul.mubr.msk.f32.vlgmr.msra.gmra.mxu1 %vm878_vm3, %v9927_v18 }
 0x4fe   :  { %8562 = vmatprep.subr.mxu0 %v9162_v47  ;;  %8569 = vmatprep.subr.mxu1 %v9162_v47 }
 0x4ff   :  { %8563 = vmatpush3.msra.mxu0 %v9954_v14  ;;  %8570 = vmatpush3.msra.mxu1 %v9960_v16 }
 0x500   :  { %8564 = vmatprep.subr.mxu0 %v9162_v47  ;;  %8571 = vmatprep.subr.mxu1 %v9162_v47 }
 0x501   :  { %8565 = vmatpush3.msra.mxu0 %v9968_v27  ;;  %8566 = vmatprep.mubr.msk.f32.mxu0 %vm9163_vm2, %v9162_v47 }
 0x502   :  { %8572 = vmatpush3.msra.mxu1 %v9976_v31  ;;  %8573 = vmatprep.mubr.msk.f32.mxu1 %vm9163_vm2, %v9162_v47 }
 0x503   :  { %8567 = vmatmul.mubr.msk.f32.vlgmr.msra.gmra.mxu0 %vm878_vm3, %v9927_v18  ;;  %8574 = vmatmul.mubr.msk.f32.vlgmr.msra.gmra.mxu1 %vm878_vm3, %v9927_v18 }
 0x504   :  { %8576 = vmatprep.subr.mxu0 %v9162_v47  ;;  %8583 = vmatprep.subr.mxu1 %v9162_v47 }
 0x505   :  { %8577 = vmatpush3.msra.mxu0 %v9838_v53  ;;  %8584 = vmatpush3.msra.mxu1 %v9991_v9 }
 0x506   :  { %8578 = vmatprep.subr.mxu0 %v9162_v47  ;;  %8585 = vmatprep.subr.mxu1 %v9162_v47 }
 0x507   :  { %8579 = vmatpush3.msra.mxu0 %v9847_v55  ;;  %8580 = vmatprep.mubr.msk.f32.mxu0 %vm9163_vm2, %v9162_v47 }
 0x508   :  { %8586 = vmatpush3.msra.mxu1 %v10002_v6  ;;  %8587 = vmatprep.mubr.msk.f32.mxu1 %vm9163_vm2, %v9162_v47 }
 0x509   :  { %8590 = vmatprep.subr.mxu0 %v9162_v47  ;;  %8597 = vmatprep.subr.mxu1 %v9162_v47 }
 0x5b2   :  { %v3529_v48 = vpop.f32.mrf.mxu0  ;;  %v3600_v34 = vpop.f32.mrf.mxu1 }
 0x5b3   :  { %v3533_v41 = vadd.f32 %v3529_v48, %v9559_v2  ;;  %v3604_v26 = vadd.f32 %v3600_v34, %v9561_v3 }
 0x5b4   :  { %v8526_v36 = vpop.f32.mrf.mxu0  ;;  %v8533_v38 = vpop.f32.mrf.mxu1 }
 0x5b5   :  { %v7847_v32 = vmul.f32 -1.442695, %v3533_v41  ;;  %v7848_v39 = vmul.f32 -1.442695, %v3604_v26 }
 0x5b7   :  { %8932 = vpow2.f32 %v7847_v32  ;;  %v3671_v17 = vpop.f32.mrf.mxu0  ;;  %v3742_v12 = vpop.f32.mrf.mxu1 }
 0x5b8   :  { %8934 = vpow2.f32 %v7848_v39  ;;  %v3746_v51 = vadd.f32 %v3742_v12, %v9571_v11  ;;  %v3675_v25 = vadd.f32 %v3671_v17, %v9569_v10 }
 0x5b9   :  { %v8540_v46 = vpop.f32.mrf.mxu0  ;;  %v8547_v49 = vpop.f32.mrf.mxu1 }
 0x5ba   :  { %v7849_v40 = vmul.f32 -1.442695, %v3746_v51 }
 0x5bc   :  { %8936 = vpow2.f32 %v7849_v40 }
 0x5bd   :  { %v3843_v50 = vpop.f32.mrf.mxu0  ;;  %v3917_v56 = vpop.f32.mrf.mxu1 }
 0x5be   :  { %v3848_v57 = vrot.slane %v3843_v50, 2  ;;  %v3922_v58 = vrot.slane %v3917_v56, 2  ;;  %v3767_v50 = vrot.slane %v9866_v59, 6 }
 0x5bf   :  { %v8554_v43 = vpop.f32.mrf.mxu0  ;;  %v8561_v60 = vpop.f32.mrf.mxu1 }
 0x5c0   :  { %v3850_v61 = vadd.f32 %v3848_v57, %v9579_v20  ;;  %v3924_v13 = vadd.f32 %v3922_v58, %v9581_v21 }
 0x5c2   :  { %v7854_v42 = vmul.f32 -1.442695, %v3850_v61  ;;  %v7855_v52 = vmul.f32 -1.442695, %v3924_v13 }
 0x5c3   :  { %v3991_v44 = vpop.f32.mrf.mxu0  ;;  %v4065_v62 = vpop.f32.mrf.mxu1 }
 0x5c4   :  { %v8933_v33 = vpop.eup %8932  ;;  %8938 = vpow2.f32 %v7854_v42  ;;  %v4070_v34 = vrot.slane %v4065_v62, 2  ;;  %v3996_v26 = vrot.slane %v3991_v44, 2 }
 0x5c5   :  { %v8935_v8 = vpop.eup %8934  ;;  %v3750_v0 = vadd.f32 1.0, %v8933_v33  ;;  %8940 = vpow2.f32 %v7855_v52  ;;  %v8568_v5 = vpop.f32.mrf.mxu0 }
 0x5c6   :  { %v8575_v30 = vpop.f32.mrf.mxu1  ;;  %v3756_v48 = vadd.f32 1.0, %v8935_v8  ;;  %8942 = vtanh.f32 %v3675_v25  ;;  %v4072_v41 = vadd.f32 %v4070_v34, %v9591_v29  ;;  %v3998_v38 = vadd.f32 %v3996_v26, %v9589_v28 }
 0x5c7   :  { %8944 = vrcp.f32 %v3750_v0  ;;  %v4093_v25 = vrot.slane %v9870_v45, 2 }
 0x5c8   :  { %8946 = vrcp.f32 %v3756_v48  ;;  %v7856_v36 = vmul.f32 -1.442695, %v4072_v41 }
 0x5c9   :  { %v8937_v32 = vpop.eup %8936 }
 0x5ca   :  { %8948 = vpow2.f32 %v7856_v36  ;;  %v3763_v58 = vadd.f32 1.0, %v8937_v32 }
 0x5cb   :  { %8950 = vtanh.f32 %v3998_v38 }
 0x5d1   :  { %v8939_v39 = vpop.eup %8938 }
 0x5d2   :  { %v8941_v17 = vpop.eup %8940  ;;  %v4076_v12 = vadd.f32 1.0, %v8939_v39 }
 0x5d3   :  { %v8943_v46 = vpop.eup %8942  ;;  %v4082_v49 = vadd.f32 1.0, %v8941_v17 }
 0x5d4   :  { %v8945_v51 = vpop.eup %8944  ;;  %8952 = vrcp.f32 %v4076_v12 }
 0x5d5   :  { %v8947_v56 = vpop.eup %8946  ;;  %v3770_v57 = vmul.f32 %v8945_v51, %v8943_v46  ;;  %8954 = vrcp.f32 %v4082_v49 }
 0x5d6   :  { %v3769_v40 = vmul.f32 %v8947_v56, %v3767_v50  ;;  %8956 = vrcp.f32 %v3763_v58 }
 0x5d7   :  { %v8949_v60 = vpop.eup %8948 }
 0x5d8   :  { %v10018_v43 = vadd.f32 %v3770_v57, %v3769_v40  ;;  %v8951_v61 = vpop.eup %8950  ;;  %v4089_v44 = vadd.f32 1.0, %v8949_v60 }
 0x5da   :  { %8958 = vtanh.f32 %v10018_v43 }
 0x5db   :  { %8960 = vrcp.f32 %v4089_v44 }
 0x5e1   :  { %v8953_v13 = vpop.eup %8952 }
 0x5e2   :  { %v8955_v42 = vpop.eup %8954  ;;  %v4096_v52 = vmul.f32 %v8953_v13, %v8951_v61 }
 0x5e3   :  { %v4095_v59 = vmul.f32 %v8955_v42, %v4093_v25  ;;  %v8957_v33 = vpop.eup %8956 }
 0x5e5   :  { %v10022_v62 = vadd.f32 %v4096_v52, %v4095_v59 }
 0x5e7   :  { %v8959_v8 = vpop.eup %8958  ;;  %8962 = vtanh.f32 %v10022_v62 }
 0x5e8   :  { %v10025_v0 = vmul.f32 %v8959_v8, %v8957_v33  ;;  %v8961_v45 = vpop.eup %8960 }
 0x5ea   :  { %8581 = vmatmul.mubr.msk.f32.vlgmr.msra.gmra.mxu0 %vm878_vm3, %v10025_v0  ;;  %8588 = vmatmul.mubr.msk.f32.vlgmr.msra.gmra.mxu1 %vm878_vm3, %v10025_v0 }
 0x5eb   :  { %8591 = vmatpush3.msra.mxu0 %v9882_v7  ;;  %8598 = vmatpush3.msra.mxu1 %v9888_v4 }
 0x5ec   :  { %8592 = vmatprep.subr.mxu0 %v9162_v47  ;;  %8599 = vmatprep.subr.mxu1 %v9162_v47 }
 0x5ed   :  { %8593 = vmatpush3.msra.mxu0 %v9896_v63  ;;  %8594 = vmatprep.mubr.msk.f32.mxu0 %vm9163_vm2, %v9162_v47 }
 0x5ee   :  { %8600 = vmatpush3.msra.mxu1 %v9904_v23  ;;  %8601 = vmatprep.mubr.msk.f32.mxu1 %vm9163_vm2, %v9162_v47 }
 0x5ef   :  { %8595 = vmatmul.mubr.msk.f32.vlgmr.msra.gmra.mxu0 %vm878_vm3, %v10025_v0  ;;  %8602 = vmatmul.mubr.msk.f32.vlgmr.msra.gmra.mxu1 %vm878_vm3, %v10025_v0 }
 0x5f0   :  { %8604 = vmatprep.subr.mxu0 %v9162_v47  ;;  %8611 = vmatprep.subr.mxu1 %v9162_v47 }
 0x5f1   :  { %8605 = vmatpush3.msra.mxu0 %v9916_v35  ;;  %8612 = vmatpush3.msra.mxu1 %v9922_v37 }
 0x5f2   :  { %8606 = vmatprep.subr.mxu0 %v9162_v47  ;;  %8613 = vmatprep.subr.mxu1 %v9162_v47 }
 0x5f3   :  { %8607 = vmatpush3.msra.mxu0 %v9932_v22  ;;  %8608 = vmatprep.mubr.msk.f32.mxu0 %vm9163_vm2, %v9162_v47 }
 0x5f4   :  { %v8963_v5 = vpop.eup %8962  ;;  %8614 = vmatpush3.msra.mxu1 %v9940_v24  ;;  %8615 = vmatprep.mubr.msk.f32.mxu1 %vm9163_vm2, %v9162_v47 }
 0x5f5   :  { %v10057_v30 = vmul.f32 %v8963_v5, %v8961_v45  ;;  %8618 = vmatprep.subr.mxu0 %v9162_v47  ;;  %8625 = vmatprep.subr.mxu1 %v9162_v47 }
 0x5f7   :  { %v4427_v48 = vrot.slane %v10057_v30, 6 }
 0x5f9   :  { %8609 = vmatmul.mubr.msk.f32.vlgmr.msra.gmra.mxu0 %vm878_vm3, %v4427_v48  ;;  %8616 = vmatmul.mubr.msk.f32.vlgmr.msra.gmra.mxu1 %vm878_vm3, %v4427_v48 }
 0x5fa   :  { %8619 = vmatpush3.msra.mxu0 %v9954_v14  ;;  %8626 = vmatpush3.msra.mxu1 %v9960_v16 }
 0x5fb   :  { %8620 = vmatprep.subr.mxu0 %v9162_v47  ;;  %8627 = vmatprep.subr.mxu1 %v9162_v47 }
 0x5fc   :  { %8621 = vmatpush3.msra.mxu0 %v9968_v27  ;;  %8622 = vmatprep.mubr.msk.f32.mxu0 %vm9163_vm2, %v9162_v47 }
 0x5fd   :  { %8628 = vmatpush3.msra.mxu1 %v9976_v31  ;;  %8629 = vmatprep.mubr.msk.f32.mxu1 %vm9163_vm2, %v9162_v47 }
 0x5fe   :  { %8623 = vmatmul.mubr.msk.f32.vlgmr.msra.gmra.mxu0 %vm878_vm3, %v4427_v48  ;;  %8630 = vmatmul.mubr.msk.f32.vlgmr.msra.gmra.mxu1 %vm878_vm3, %v4427_v48 }
 0x5ff   :  { %8632 = vmatprep.subr.mxu0 %v9162_v47  ;;  %8639 = vmatprep.subr.mxu1 %v9162_v47 }
 0x600   :  { %8633 = vmatpush3.msra.mxu0 %v9838_v53  ;;  %8640 = vmatpush3.msra.mxu1 %v9991_v9 }
 0x601   :  { %8634 = vmatprep.subr.mxu0 %v9162_v47  ;;  %8641 = vmatprep.subr.mxu1 %v9162_v47 }
 0x602   :  { %8635 = vmatpush3.msra.mxu0 %v9847_v55  ;;  %8636 = vmatprep.mubr.msk.f32.mxu0 %vm9163_vm2, %v9162_v47 }
 0x603   :  { %8642 = vmatpush3.msra.mxu1 %v10002_v6  ;;  %8643 = vmatprep.mubr.msk.f32.mxu1 %vm9163_vm2, %v9162_v47 }
 0x604   :  { %8646 = vmatprep.subr.mxu0 %v9162_v47  ;;  %8653 = vmatprep.subr.mxu1 %v9162_v47 }
 0x6aa   :  { %v4169_v34 = vpop.f32.mrf.mxu0  ;;  %v4243_v41 = vpop.f32.mrf.mxu1 }
 0x6ab   :  { %v4174_v26 = vrot.slane %v4169_v34, 6  ;;  %v4248_v36 = vrot.slane %v4243_v41, 6 }
 0x6ac   :  { %v8582_v38 = vpop.f32.mrf.mxu0  ;;  %v8589_v32 = vpop.f32.mrf.mxu1 }
 0x6ad   :  { %v4176_v39 = vadd.f32 %v4174_v26, %v9559_v2  ;;  %v4250_v17 = vadd.f32 %v4248_v36, %v9561_v3 }
 0x6af   :  { %v7861_v12 = vmul.f32 -1.442695, %v4176_v39  ;;  %v7862_v46 = vmul.f32 -1.442695, %v4250_v17  ;;  %v4317_v49 = vpop.f32.mrf.mxu0  ;;  %v4391_v51 = vpop.f32.mrf.mxu1 }
 0x6b0   :  { %v4396_v57 = vrot.slane %v4391_v51, 6  ;;  %v4322_v40 = vrot.slane %v4317_v49, 6 }
 0x6b1   :  { %8964 = vpow2.f32 %v7861_v12  ;;  %v8596_v50 = vpop.f32.mrf.mxu0  ;;  %v8603_v56 = vpop.f32.mrf.mxu1 }
 0x6b2   :  { %8966 = vpow2.f32 %v7862_v46  ;;  %v4398_v58 = vadd.f32 %v4396_v57, %v9571_v11  ;;  %v4324_v52 = vadd.f32 %v4322_v40, %v9569_v10  ;;  %v4419_v40 = vrot.slane %v10018_v43, 6 }
 0x6b4   :  { %v7863_v13 = vmul.f32 -1.442695, %v4398_v58 }
 0x6b6   :  { %8968 = vpow2.f32 %v7863_v13 }
 0x6b7   :  { %8970 = vtanh.f32 %v4324_v52 }
 0x6b9   :  { %v4496_v60 = vpop.f32.mrf.mxu0  ;;  %v4570_v61 = vpop.f32.mrf.mxu1 }
 0x6ba   :  { %v4501_v25 = vrot.slane %v4496_v60, 4  ;;  %v4575_v42 = vrot.slane %v4570_v61, 4 }
 0x6bb   :  { %v8610_v44 = vpop.f32.mrf.mxu0  ;;  %v8617_v59 = vpop.f32.mrf.mxu1 }
 0x6bc   :  { %v4503_v33 = vadd.f32 %v4501_v25, %v9579_v20  ;;  %v4577_v8 = vadd.f32 %v4575_v42, %v9581_v21 }
 0x6be   :  { %v8965_v45 = vpop.eup %8964  ;;  %v7868_v5 = vmul.f32 -1.442695, %v4503_v33  ;;  %v4644_v48 = vpop.f32.mrf.mxu0  ;;  %v7869_v36 = vmul.f32 -1.442695, %v4577_v8 }
 0x6bf   :  { %v4718_v34 = vpop.f32.mrf.mxu1  ;;  %v8967_v41 = vpop.eup %8966  ;;  %v4402_v26 = vadd.f32 1.0, %v8965_v45  ;;  %v4649_v46 = vrot.slane %v4644_v48, 4 }
 0x6c0   :  { %v4408_v38 = vadd.f32 1.0, %v8967_v41  ;;  %8972 = vpow2.f32 %v7868_v5  ;;  %v8624_v32 = vpop.f32.mrf.mxu0  ;;  %v4723_v17 = vrot.slane %v4718_v34, 4  ;;  %v4746_v5 = vrot.slane %v10022_v62, 2 }
 0x6c1   :  { %v8631_v39 = vpop.f32.mrf.mxu1  ;;  %8974 = vrcp.f32 %v4402_v26  ;;  %v4651_v57 = vadd.f32 %v4649_v46, %v9589_v28 }
 0x6c2   :  { %8976 = vrcp.f32 %v4408_v38  ;;  %v4725_v12 = vadd.f32 %v4723_v17, %v9591_v29 }
 0x6c3   :  { %8978 = vpow2.f32 %v7869_v36  ;;  %v8969_v49 = vpop.eup %8968 }
 0x6c4   :  { %v7870_v51 = vmul.f32 -1.442695, %v4725_v12  ;;  %v8971_v50 = vpop.eup %8970  ;;  %v4415_v60 = vadd.f32 1.0, %v8969_v49 }
 0x6c6   :  { %8980 = vpow2.f32 %v7870_v51 }
 0x6cd   :  { %v8973_v56 = vpop.eup %8972 }
 0x6ce   :  { %v8975_v58 = vpop.eup %8974  ;;  %v4729_v61 = vadd.f32 1.0, %v8973_v56 }
 0x6cf   :  { %v8977_v13 = vpop.eup %8976  ;;  %v4422_v25 = vmul.f32 %v8975_v58, %v8971_v50 }
 0x6d0   :  { %v8979_v42 = vpop.eup %8978  ;;  %v4421_v52 = vmul.f32 %v8977_v13, %v4419_v40  ;;  %8982 = vrcp.f32 %v4729_v61 }
 0x6d1   :  { %v4735_v44 = vadd.f32 1.0, %v8979_v42  ;;  %8984 = vtanh.f32 %v4651_v57 }
 0x6d2   :  { %v10099_v59 = vadd.f32 %v4422_v25, %v4421_v52  ;;  %8986 = vrcp.f32 %v4415_v60 }
 0x6d3   :  { %8988 = vrcp.f32 %v4735_v44  ;;  %v8981_v33 = vpop.eup %8980 }
 0x6d4   :  { %8990 = vtanh.f32 %v10099_v59  ;;  %v4742_v41 = vadd.f32 1.0, %v8981_v33 }
 0x6d6   :  { %8992 = vrcp.f32 %v4742_v41 }
 0x6dd   :  { %v8983_v8 = vpop.eup %8982 }
 0x6de   :  { %v8985_v45 = vpop.eup %8984 }
 0x6df   :  { %v8987_v43 = vpop.eup %8986  ;;  %v4749_v48 = vmul.f32 %v8985_v45, %v8983_v8 }
 0x6e0   :  { %v8989_v34 = vpop.eup %8988 }
 0x6e1   :  { %v8991_v26 = vpop.eup %8990  ;;  %v4748_v36 = vmul.f32 %v8989_v34, %v4746_v5 }
 0x6e2   :  { %v10103_v38 = vmul.f32 %v8991_v26, %v8987_v43 }
 0x6e3   :  { %v10105_v32 = vadd.f32 %v4749_v48, %v4748_v36  ;;  %v8993_v62 = vpop.eup %8992 }
 0x6e4   :  { %v4754_v39 = vrot.slane %v10103_v38, 2 }
 0x6e5   :  { %8994 = vtanh.f32 %v10105_v32 }
 0x6e6   :  { %8637 = vmatmul.mubr.msk.f32.vlgmr.msra.gmra.mxu0 %vm878_vm3, %v4754_v39  ;;  %8644 = vmatmul.mubr.msk.f32.vlgmr.msra.gmra.mxu1 %vm878_vm3, %v4754_v39 }
 0x6e7   :  { %8647 = vmatpush3.msra.mxu0 %v9882_v7  ;;  %8654 = vmatpush3.msra.mxu1 %v9888_v4 }
 0x6e8   :  { %8648 = vmatprep.subr.mxu0 %v9162_v47  ;;  %8655 = vmatprep.subr.mxu1 %v9162_v47 }
 0x6e9   :  { %8649 = vmatpush3.msra.mxu0 %v9896_v63  ;;  %8650 = vmatprep.mubr.msk.f32.mxu0 %vm9163_vm2, %v9162_v47 }
 0x6ea   :  { %8656 = vmatpush3.msra.mxu1 %v9904_v23  ;;  %8657 = vmatprep.mubr.msk.f32.mxu1 %vm9163_vm2, %v9162_v47 }
 0x6eb   :  { %8651 = vmatmul.mubr.msk.f32.vlgmr.msra.gmra.mxu0 %vm878_vm3, %v4754_v39  ;;  %8658 = vmatmul.mubr.msk.f32.vlgmr.msra.gmra.mxu1 %vm878_vm3, %v4754_v39 }
 0x6ec   :  { %8660 = vmatprep.subr.mxu0 %v9162_v47  ;;  %8667 = vmatprep.subr.mxu1 %v9162_v47 }
 0x6ed   :  { %8661 = vmatpush3.msra.mxu0 %v9916_v35  ;;  %8668 = vmatpush3.msra.mxu1 %v9922_v37 }
 0x6ee   :  { %8662 = vmatprep.subr.mxu0 %v9162_v47  ;;  %8669 = vmatprep.subr.mxu1 %v9162_v47 }
 0x6ef   :  { %8663 = vmatpush3.msra.mxu0 %v9932_v22  ;;  %8664 = vmatprep.mubr.msk.f32.mxu0 %vm9163_vm2, %v9162_v47 }
 0x6f0   :  { %8670 = vmatpush3.msra.mxu1 %v9940_v24  ;;  %8671 = vmatprep.mubr.msk.f32.mxu1 %vm9163_vm2, %v9162_v47 }
 0x6f1   :  { %8674 = vmatprep.subr.mxu0 %v9162_v47  ;;  %8681 = vmatprep.subr.mxu1 %v9162_v47 }
 0x6f2   :  { %v8995_v17 = vpop.eup %8994 }
 0x6f3   :  { %v10137_v12 = vmul.f32 %v8995_v17, %v8993_v62 }
 0x6f5   :  { %v5081_v46 = vrot.slane %v10137_v12, 4 }
 0x6f7   :  { %8665 = vmatmul.mubr.msk.f32.vlgmr.msra.gmra.mxu0 %vm878_vm3, %v5081_v46  ;;  %8672 = vmatmul.mubr.msk.f32.vlgmr.msra.gmra.mxu1 %vm878_vm3, %v5081_v46 }
 0x6f8   :  { %8675 = vmatpush3.msra.mxu0 %v9954_v14  ;;  %8682 = vmatpush3.msra.mxu1 %v9960_v16 }
 0x6f9   :  { %8676 = vmatprep.subr.mxu0 %v9162_v47  ;;  %8683 = vmatprep.subr.mxu1 %v9162_v47 }
 0x6fa   :  { %8677 = vmatpush3.msra.mxu0 %v9968_v27  ;;  %8678 = vmatprep.mubr.msk.f32.mxu0 %vm9163_vm2, %v9162_v47 }
 0x6fb   :  { %8684 = vmatpush3.msra.mxu1 %v9976_v31  ;;  %8685 = vmatprep.mubr.msk.f32.mxu1 %vm9163_vm2, %v9162_v47 }
 0x6fc   :  { %8679 = vmatmul.mubr.msk.f32.vlgmr.msra.gmra.mxu0 %vm878_vm3, %v5081_v46  ;;  %8686 = vmatmul.mubr.msk.f32.vlgmr.msra.gmra.mxu1 %vm878_vm3, %v5081_v46 }
 0x6fd   :  { %8688 = vmatprep.subr.mxu0 %v9162_v47  ;;  %8695 = vmatprep.subr.mxu1 %v9162_v47 }
 0x6fe   :  { %8689 = vmatpush3.msra.mxu0 %v9838_v53  ;;  %8696 = vmatpush3.msra.mxu1 %v9991_v9 }
 0x6ff   :  { %8690 = vmatprep.subr.mxu0 %v9162_v47  ;;  %8697 = vmatprep.subr.mxu1 %v9162_v47 }
 0x700   :  { %8691 = vmatpush3.msra.mxu0 %v9847_v55  ;;  %8692 = vmatprep.mubr.msk.f32.mxu0 %vm9163_vm2, %v9162_v47 }
 0x701   :  { %8698 = vmatpush3.msra.mxu1 %v10002_v6  ;;  %8699 = vmatprep.mubr.msk.f32.mxu1 %vm9163_vm2, %v9162_v47 }
 0x702   :  { %8702 = vmatprep.subr.mxu0 %v9162_v47  ;;  %8709 = vmatprep.subr.mxu1 %v9162_v47 }
 0x7a6   :  { %v4823_v53 = vpop.f32.mrf.mxu0  ;;  %v4897_v9 = vpop.f32.mrf.mxu1 }
 0x7a7   :  { %v4828_v49 = vrot.slane %v4823_v53, 4  ;;  %v4902_v51 = vrot.slane %v4897_v9, 4 }
 0x7a8   :  { %v8638_v50 = vpop.f32.mrf.mxu0  ;;  %v8645_v56 = vpop.f32.mrf.mxu1 }
 0x7a9   :  { %v4830_v55 = vadd.f32 %v4828_v49, %v9559_v2  ;;  %v4904_v57 = vadd.f32 %v4902_v51, %v9561_v3 }
 0x7ab   :  { %v7875_v58 = vmul.f32 -1.442695, %v4830_v55  ;;  %v7876_v40 = vmul.f32 -1.442695, %v4904_v57  ;;  %v4971_v6 = vpop.f32.mrf.mxu0  ;;  %v5045_v60 = vpop.f32.mrf.mxu1 }
 0x7ac   :  { %v5050_v61 = vrot.slane %v5045_v60, 4  ;;  %v4976_v52 = vrot.slane %v4971_v6, 4 }
 0x7ad   :  { %8996 = vpow2.f32 %v7875_v58  ;;  %v8652_v13 = vpop.f32.mrf.mxu0  ;;  %v8659_v25 = vpop.f32.mrf.mxu1 }
 0x7ae   :  { %8998 = vpow2.f32 %v7876_v40  ;;  %v5052_v42 = vadd.f32 %v5050_v61, %v9571_v11  ;;  %v4978_v45 = vadd.f32 %v4976_v52, %v9569_v10  ;;  %v5073_v13 = vrot.slane %v10099_v59, 6 }
 0x7b0   :  { %v7877_v44 = vmul.f32 -1.442695, %v5052_v42 }
 0x7b2   :  { %9000 = vpow2.f32 %v7877_v44 }
 0x7b3   :  { %9002 = vtanh.f32 %v4978_v45 }
 0x7b7   :  { %v5150_v33 = vpop.f32.mrf.mxu0  ;;  %v5224_v8 = vpop.f32.mrf.mxu1 }
 0x7b8   :  { %v5155_v43 = vrot.slane %v5150_v33, 6  ;;  %v5229_v5 = vrot.slane %v5224_v8, 6 }
 0x7b9   :  { %v8666_v48 = vpop.f32.mrf.mxu0  ;;  %v8673_v34 = vpop.f32.mrf.mxu1 }
 0x7ba   :  { %v8997_v41 = vpop.eup %8996  ;;  %v5157_v26 = vadd.f32 %v5155_v43, %v9579_v20  ;;  %v5231_v36 = vadd.f32 %v5229_v5, %v9581_v21 }
 0x7bb   :  { %v8999_v39 = vpop.eup %8998  ;;  %v5056_v62 = vadd.f32 1.0, %v8997_v41 }
 0x7bc   :  { %v5062_v17 = vadd.f32 1.0, %v8999_v39  ;;  %v7882_v46 = vmul.f32 -1.442695, %v5157_v26  ;;  %v7883_v53 = vmul.f32 -1.442695, %v5231_v36  ;;  %v5298_v9 = vpop.f32.mrf.mxu0  ;;  %v5372_v49 = vpop.f32.mrf.mxu1  ;;  %v5400_v36 = vrot.slane %v10105_v32, 2 }
 0x7bd   :  { %9004 = vrcp.f32 %v5056_v62  ;;  %v5377_v56 = vrot.slane %v5372_v49, 6  ;;  %v5303_v55 = vrot.slane %v5298_v9, 6  ;;  %v6055_v9 = vsel %vm6049_vm4, %v10025_v0, %v10103_v38 }
 0x7be   :  { %9006 = vrcp.f32 %v5062_v17  ;;  %v8680_v51 = vpop.f32.mrf.mxu0  ;;  %v8687_v50 = vpop.f32.mrf.mxu1 }
 0x7bf   :  { %9008 = vpow2.f32 %v7882_v46  ;;  %v9001_v57 = vpop.eup %9000  ;;  %v5379_v58 = vadd.f32 %v5377_v56, %v9591_v29  ;;  %v5305_v40 = vadd.f32 %v5303_v55, %v9589_v28 }
 0x7c0   :  { %9010 = vpow2.f32 %v7883_v53  ;;  %v9003_v6 = vpop.eup %9002  ;;  %v5069_v60 = vadd.f32 1.0, %v9001_v57 }
 0x7c1   :  { %v7884_v25 = vmul.f32 -1.442695, %v5379_v58  ;;  %9012 = vtanh.f32 %v5305_v40 }
 0x7c2   :  { %9014 = vrcp.f32 %v5069_v60 }
 0x7c3   :  { %9016 = vpow2.f32 %v7884_v25 }
 0x7ca   :  { %v9005_v61 = vpop.eup %9004 }
 0x7cb   :  { %v9007_v42 = vpop.eup %9006  ;;  %v5076_v52 = vmul.f32 %v9005_v61, %v9003_v6 }
 0x7cc   :  { %v9009_v44 = vpop.eup %9008  ;;  %v5075_v33 = vmul.f32 %v9007_v42, %v5073_v13 }
 0x7cd   :  { %v9011_v8 = vpop.eup %9010  ;;  %v5383_v45 = vadd.f32 1.0, %v9009_v44 }
 0x7ce   :  { %v10177_v43 = vadd.f32 %v5076_v52, %v5075_v33  ;;  %v5389_v5 = vadd.f32 1.0, %v9011_v8  ;;  %v9013_v48 = vpop.eup %9012 }
 0x7cf   :  { %9018 = vrcp.f32 %v5383_v45  ;;  %v9015_v34 = vpop.eup %9014 }
 0x7d0   :  { %9020 = vtanh.f32 %v10177_v43  ;;  %v9017_v59 = vpop.eup %9016 }
 0x7d1   :  { %9022 = vrcp.f32 %v5389_v5  ;;  %v5396_v17 = vadd.f32 1.0, %v9017_v59 }
 0x7d3   :  { %9024 = vrcp.f32 %v5396_v17 }
 0x7dc   :  { %v9019_v41 = vpop.eup %9018 }
 0x7dd   :  { %v9021_v26 = vpop.eup %9020  ;;  %v5403_v39 = vmul.f32 %v9019_v41, %v9013_v48 }
 0x7de   :  { %v9023_v62 = vpop.eup %9022  ;;  %v5079_v46 = vmul.f32 %v9021_v26, %v9015_v34 }
 0x7df   :  { %v5402_v53 = vmul.f32 %v9023_v62, %v5400_v36 }
 0x7e0   :  { %v5408_v49 = vrot.slane %v5079_v46, 4  ;;  %v10185_v51 = vsel %vm6051_vm5, %v6055_v9, %v5079_v46 }
 0x7e1   :  { %v10187_v50 = vadd.f32 %v5403_v39, %v5402_v53  ;;  %v5727_v53 = vrot.slane %v10177_v43, 6 }
 0x7e2   :  { %8693 = vmatmul.mubr.msk.f32.vlgmr.msra.gmra.mxu0 %vm878_vm3, %v5408_v49  ;;  %8700 = vmatmul.mubr.msk.f32.vlgmr.msra.gmra.mxu1 %vm878_vm3, %v5408_v49 }
 0x7e3   :  { %9026 = vtanh.f32 %v10187_v50  ;;  %8703 = vmatpush3.msra.mxu0 %v9882_v7  ;;  %8710 = vmatpush3.msra.mxu1 %v9888_v4  ;;  %v9025_v7 = vpop.eup %9024 }
 0x7e4   :  { %8704 = vmatprep.subr.mxu0 %v9162_v47  ;;  %8711 = vmatprep.subr.mxu1 %v9162_v47 }
 0x7e5   :  { %8705 = vmatpush3.msra.mxu0 %v9896_v63  ;;  %8706 = vmatprep.mubr.msk.f32.mxu0 %vm9163_vm2, %v9162_v47 }
 0x7e6   :  { %8712 = vmatpush3.msra.mxu1 %v9904_v23  ;;  %8713 = vmatprep.mubr.msk.f32.mxu1 %vm9163_vm2, %v9162_v47 }
 0x7e7   :  { %8707 = vmatmul.mubr.msk.f32.vlgmr.msra.gmra.mxu0 %vm878_vm3, %v5408_v49  ;;  %8714 = vmatmul.mubr.msk.f32.vlgmr.msra.gmra.mxu1 %vm878_vm3, %v5408_v49 }
 0x7e8   :  { %8716 = vmatprep.subr.mxu0 %v9162_v47  ;;  %8723 = vmatprep.subr.mxu1 %v9162_v47 }
 0x7e9   :  { %8717 = vmatpush3.msra.mxu0 %v9916_v35  ;;  %8724 = vmatpush3.msra.mxu1 %v9922_v37  ;;  %v6065_v35 = vld [vmem:[%s10774_s6 + $0x8] sm:$0xff]  ;;  %v6064_v37 = vld [vmem:[%s10774_s6] sm:$0xff] }
 0x7ea   :  { %8718 = vmatprep.subr.mxu0 %v9162_v47  ;;  %8725 = vmatprep.subr.mxu1 %v9162_v47 }
 0x7eb   :  { %8719 = vmatpush3.msra.mxu0 %v9932_v22  ;;  %8720 = vmatprep.mubr.msk.f32.mxu0 %vm9163_vm2, %v9162_v47  ;;  %v7900_v22 = vld [vmem:[%s10774_s6 + $0x18] sm:$0xff] }
 0x7ec   :  { %8726 = vmatpush3.msra.mxu1 %v9940_v24  ;;  %8727 = vmatprep.mubr.msk.f32.mxu1 %vm9163_vm2, %v9162_v47  ;;  %v7899_v24 = vld [vmem:[%s10774_s6 + $0x10] sm:$0xff] }
 0x7ed   :  { %8730 = vmatprep.subr.mxu0 %v9162_v47  ;;  %8737 = vmatprep.subr.mxu1 %v9162_v47 }
 0x7f0   :  { %v9027_v4 = vpop.eup %9026 }
 0x7f1   :  { %v10218_v63 = vmul.f32 %v9027_v4, %v9025_v7 }
 0x7f3   :  { %v5735_v23 = vrot.slane %v10218_v63, 2 }
 0x7f5   :  { %8721 = vmatmul.mubr.msk.f32.vlgmr.msra.gmra.mxu0 %vm878_vm3, %v5735_v23  ;;  %8728 = vmatmul.mubr.msk.f32.vlgmr.msra.gmra.mxu1 %vm878_vm3, %v5735_v23 }
 0x7f6   :  { %8731 = vmatpush3.msra.mxu0 %v9954_v14  ;;  %8738 = vmatpush3.msra.mxu1 %v9960_v16 }
 0x7f7   :  { %8732 = vmatprep.subr.mxu0 %v9162_v47  ;;  %8739 = vmatprep.subr.mxu1 %v9162_v47 }
 0x7f8   :  { %8733 = vmatpush3.msra.mxu0 %v9968_v27  ;;  %8734 = vmatprep.mubr.msk.f32.mxu0 %vm9163_vm2, %v9162_v47 }
 0x7f9   :  { %8740 = vmatpush3.msra.mxu1 %v9976_v31  ;;  %8741 = vmatprep.mubr.msk.f32.mxu1 %vm9163_vm2, %v9162_v47 }
 0x7fa   :  { %8735 = vmatmul.mubr.msk.f32.vlgmr.msra.gmra.mxu0 %vm878_vm3, %v5735_v23  ;;  %8742 = vmatmul.mubr.msk.f32.vlgmr.msra.gmra.mxu1 %vm878_vm3, %v5735_v23 }
 0x7fb   :  { %8755 = vmatprep.mubr.msk.f32.mxu1 %vm878_vm3, %v9875_v1  ;;  %8751 = vmatprep.subr.mxu1 %v6065_v35 }
 0x7fc   :  { %8744 = vmatprep.subr.mxu0 %v7900_v22  ;;  %8752 = vmatpush3.msra.mxu1 %v6065_v35 }
 0x7fd   :  { %8745 = vmatpush3.msra.mxu0 %v7900_v22  ;;  %8753 = vmatprep.subr.mxu1 %v6064_v37 }
 0x7fe   :  { %8746 = vmatprep.subr.mxu0 %v7899_v24  ;;  %8754 = vmatpush3.msra.mxu1 %v6064_v37 }
 0x7ff   :  { %8747 = vmatpush3.msra.mxu0 %v7899_v24  ;;  %8763 = vmatprep.subr.mxu1 %v9162_v47 }
 0x800   :  { %8758 = vmatprep.subr.mxu0 %v9162_v47 }
 0x8a2   :  { %v5477_v1 = vpop.f32.mrf.mxu0  ;;  %v5551_v14 = vpop.f32.mrf.mxu1 }
 0x8a3   :  { %v5482_v16 = vrot.slane %v5477_v1, 2  ;;  %v5556_v27 = vrot.slane %v5551_v14, 2 }
 0x8a4   :  { %v8694_v31 = vpop.f32.mrf.mxu0  ;;  %v8701_v0 = vpop.f32.mrf.mxu1 }
 0x8a5   :  { %v5484_v38 = vadd.f32 %v5482_v16, %v9559_v2  ;;  %v5558_v32 = vadd.f32 %v5556_v27, %v9561_v3  ;;  %v6042_v16 = vrot.slane %v10187_v50, 2  ;;  %v6061_v50 = vsel %vm6049_vm4, %v9927_v18, %v9814_v54  ;;  %v10300_v54 = vld [vmem:[%s10779_s11 + $0x2] sm:$0x3]  ;;  %v10315_v18 = vld [vmem:[%s10779_s11 + $0x6] sm:$0x3] }
 0x8a7   :  { %v7889_v56 = vmul.f32 -1.442695, %v5484_v38  ;;  %v7890_v55 = vmul.f32 -1.442695, %v5558_v32  ;;  %v5625_v57 = vpop.f32.mrf.mxu0  ;;  %v5699_v58 = vpop.f32.mrf.mxu1 }
 0x8a8   :  { %v5704_v40 = vrot.slane %v5699_v58, 2  ;;  %v5630_v13 = vrot.slane %v5625_v57, 2 }
 0x8a9   :  { %9028 = vpow2.f32 %v7889_v56  ;;  %v8708_v6 = vpop.f32.mrf.mxu0  ;;  %v8715_v60 = vpop.f32.mrf.mxu1 }
 0x8aa   :  { %9030 = vpow2.f32 %v7890_v55  ;;  %v5706_v61 = vadd.f32 %v5704_v40, %v9571_v11  ;;  %v5632_v42 = vadd.f32 %v5630_v13, %v9569_v10 }
 0x8ac   :  { %v7891_v25 = vmul.f32 -1.442695, %v5706_v61 }
 0x8ae   :  { %9032 = vpow2.f32 %v7891_v25  ;;  %v10355_v25 = vld [vmem:[%s10779_s11 + $0xe] sm:$0x3] }
 0x8af   :  { %9034 = vtanh.f32 %v5632_v42  ;;  %v6266_v42 = vlaneseq }
 0x8b5   :  { %v5804_v52 = vpop.f32.mrf.mxu0  ;;  %v5875_v2 = vpop.f32.mrf.mxu1 }
 0x8b6   :  { %v9029_v44 = vpop.eup %9028  ;;  %v5808_v3 = vadd.f32 %v5804_v52, %v9579_v20  ;;  %v5879_v33 = vadd.f32 %v5875_v2, %v9581_v21  ;;  %v9164_v52 = vmov 1966171168  }
 0x8b7   :  { %v9031_v8 = vpop.eup %9030  ;;  %v5710_v45 = vadd.f32 1.0, %v9029_v44  ;;  %v8722_v5 = vpop.f32.mrf.mxu0  ;;  %v6264_v2 = vunpack.c.l.s4 %v9164_v52  ;;  %v10360_v44 = vshrl.u32 %v6266_v42, 7 }
 0x8b8   :  { %v8729_v48 = vpop.f32.mrf.mxu1  ;;  %v5716_v34 = vadd.f32 1.0, %v9031_v8  ;;  %v7896_v59 = vmul.f32 -1.442695, %v5808_v3  ;;  %v7897_v11 = vmul.f32 -1.442695, %v5879_v33 }
 0x8b9   :  { %9036 = vrcp.f32 %v5710_v45  ;;  %v6265_v45 = vunpack.c.0.s8 %v6264_v2  ;;  %v6325_v5 = vsub.s32 2, %v10360_v44 }
 0x8ba   :  { %9038 = vrcp.f32 %v5716_v34  ;;  %v5946_v41 = vpop.f32.mrf.mxu0  ;;  %v6017_v10 = vpop.f32.mrf.mxu1 }
 0x8bb   :  { %9040 = vpow2.f32 %v7896_v59  ;;  %v9033_v39 = vpop.eup %9032  ;;  %v6021_v20 = vadd.f32 %v6017_v10, %v9591_v29  ;;  %v5950_v21 = vadd.f32 %v5946_v41, %v9589_v28  ;;  %v6332_v59 = vsub.s32 3, %v10360_v44 }
 0x8bc   :  { %9042 = vpow2.f32 %v7897_v11  ;;  %v8736_v26 = vpop.f32.mrf.mxu0  ;;  %v8743_v36 = vpop.f32.mrf.mxu1  ;;  %v5723_v17 = vadd.f32 1.0, %v9033_v39  ;;  %v6538_v11 = vsub.s32 5, %v10360_v44  ;;  %v6531_v41 = vsub.s32 4, %v10360_v44  ;;  %v7906_v39 = vld [vmem:[%s10777_s9] ss:$0 sm:$0xff] }
 0x8bd   :  { %v9035_v62 = vpop.eup %9034  ;;  %v7898_v9 = vmul.f32 -1.442695, %v6021_v20  ;;  %9044 = vtanh.f32 %v5950_v21  ;;  %v6734_v10 = vsub.s32 6, %v10360_v44  ;;  %v6741_v20 = vsub.s32 7, %v10360_v44 }
 0x8be   :  { %9046 = vrcp.f32 %v5723_v17 }
 0x8bf   :  { %9048 = vpow2.f32 %v7898_v9 }
 0x8c6   :  { %v9037_v46 = vpop.eup %9036 }
 0x8c7   :  { %v9039_v49 = vpop.eup %9038  ;;  %v5730_v7 = vmul.f32 %v9037_v46, %v9035_v62  ;;  %v10379_v62 = vsub.s32 %v6265_v45, %v10360_v44 }
 0x8c8   :  { %v9041_v4 = vpop.eup %9040  ;;  %v5729_v23 = vmul.f32 %v9039_v49, %v5727_v53 }
 0x8c9   :  { %v9043_v35 = vpop.eup %9042  ;;  %v6025_v37 = vadd.f32 1.0, %v9041_v4 }
 0x8ca   :  { %v5731_v22 = vadd.f32 %v5730_v7, %v5729_v23  ;;  %v6031_v24 = vadd.f32 1.0, %v9043_v35  ;;  %v9045_v28 = vpop.eup %9044 }
 0x8cb   :  { %9050 = vrcp.f32 %v6025_v37  ;;  %v9047_v29 = vpop.eup %9046  ;;  %v7575_v37 = vrot.slane %v10355_v25, 2 }
 0x8cc   :  { %9052 = vtanh.f32 %v5731_v22  ;;  %v9049_v1 = vpop.eup %9048 }
 0x8cd   :  { %9054 = vrcp.f32 %v6031_v24  ;;  %v6038_v0 = vadd.f32 1.0, %v9049_v1 }
 0x8cf   :  { %9056 = vrcp.f32 %v6038_v0 }
 0x8d8   :  { %v9051_v14 = vpop.eup %9050 }
 0x8d9   :  { %v9053_v43 = vpop.eup %9052  ;;  %v6045_v27 = vmul.f32 %v9051_v14, %v9045_v28  ;;  %v10417_v28 = vsub.s32 0, %v10360_v44 }
 0x8da   :  { %v9055_v31 = vpop.eup %9054  ;;  %v5733_v38 = vmul.f32 %v9053_v43, %v9047_v29 }
 0x8db   :  { %v6044_v32 = vmul.f32 %v9055_v31, %v6042_v16 }
 0x8dc   :  { %v6057_v56 = vsel %vm6053_vm6, %v10185_v51, %v5733_v38  ;;  %v9057_v57 = vpop.eup %9056  ;;  %v6062_v51 = vsel %vm6051_vm5, %v6061_v50, %v9733_v19  ;;  %v10286_v19 = vld [vmem:[%s10776_s8] sm:$0xff] }
 0x8dd   :  { %v6046_v55 = vadd.f32 %v6045_v27, %v6044_v32  ;;  %8756 = vmatmul.mubr.msk.f32.vlgmr.msra.gmra.mxu1 %vm878_vm3, %v6057_v56  ;;  %v6063_v13 = vsel %vm6053_vm6, %v6062_v51, %v9655_v15  ;;  %v10295_v15 = vld [vmem:[%s10779_s11 + $0x4] sm:$0x3] }
 0x8de   :  { %8765 = vmatprep.mubr.msk.f32.mxu1 %vm9163_vm2, %v9162_v47  ;;  %8764 = vmatpush3.msra.mxu1 %v10286_v19 }
 0x8df   :  { %9058 = vtanh.f32 %v6046_v55  ;;  %8773 = vmatprep.subr.mxu1 %v9162_v47 }
 0x8e1   :  { %8766 = vmatmul.mubr.msk.f32.vlgmr.msra.gmra.mxu1 %vm6297_vm7, %v10295_v15 }
 0x8e2   :  { %8774 = vmatpush3.msra.mxu1 %v10286_v19  ;;  %8775 = vmatprep.mubr.msk.f32.mxu1 %vm9163_vm2, %v9162_v47 }
 0x8e3   :  { %8783 = vmatprep.subr.mxu1 %v9162_v47 }
 0x8ec   :  { %v9059_v58 = vpop.eup %9058 }
 0x8ed   :  { %v6048_v40 = vmul.f32 %v9059_v58, %v9057_v57 }
 0x8ef   :  { %v6058_v6 = vsel %vm6049_vm4, %v6048_v40, %v10218_v63  ;;  %v10342_v63 = vld [vmem:[%s10779_s11 + $0xc] sm:$0x3] }
 0x8f0   :  { %v6059_v60 = vsel %vm6051_vm5, %v6058_v6, %v10137_v12  ;;  %v10337_v12 = vld [vmem:[%s10779_s11 + $0xa] sm:$0x3]  ;;  %v7373_v46 = vrot.slane %v10342_v63, 4 }
 0x8f1   :  { %v6060_v61 = vsel %vm6053_vm6, %v6059_v60, %v10057_v30  ;;  %v10320_v30 = vld [vmem:[%s10779_s11 + $0x8] sm:$0x3] }
 0x8f2   :  { %8748 = vmatprep.mubr.msk.f32.mxu0 %vm878_vm3, %v6060_v61  ;;  %8776 = vmatmul.mubr.msk.f32.vlgmr.msra.gmra.mxu1 %vm6297_vm7, %v10320_v30 }
 0x8f3   :  { %8749 = vmatmul.mubr.msk.f32.vlgmr.msra.gmra.mxu0 %vm878_vm3, %v6063_v13  ;;  %8784 = vmatpush3.msra.mxu1 %v10286_v19 }
 0x8f4   :  { %8760 = vmatprep.mubr.msk.f32.mxu0 %vm9163_vm2, %v9162_v47  ;;  %8759 = vmatpush3.msra.mxu0 %v10286_v19 }
 0x8f5   :  { %8768 = vmatprep.subr.mxu0 %v9162_v47  ;;  %8785 = vmatprep.mubr.msk.f32.mxu1 %vm9163_vm2, %v9162_v47 }
 0x8f6   :  { %8786 = vmatmul.mubr.msk.f32.vlgmr.msra.gmra.mxu1 %vm6297_vm7, %v10342_v63 }
 0x8f7   :  { %8761 = vmatmul.mubr.msk.f32.vlgmr.msra.gmra.mxu0 %vm6297_vm7, %v10300_v54 }
 0x8f8   :  { %8769 = vmatpush3.msra.mxu0 %v10286_v19  ;;  %8770 = vmatprep.mubr.msk.f32.mxu0 %vm9163_vm2, %v9162_v47 }
 0x8f9   :  { %8778 = vmatprep.subr.mxu0 %v9162_v47 }
 0x8fb   :  { %8771 = vmatmul.mubr.msk.f32.vlgmr.msra.gmra.mxu0 %vm6297_vm7, %v10315_v18 }
 0x8fc   :  { %8779 = vmatpush3.msra.mxu0 %v10286_v19  ;;  %8780 = vmatprep.mubr.msk.f32.mxu0 %vm9163_vm2, %v9162_v47 }
 0x8fd   :  { %8788 = vmatprep.subr.mxu0 %v9162_v47 }
 0x8ff   :  { %8781 = vmatmul.mubr.msk.f32.vlgmr.msra.gmra.mxu0 %vm6297_vm7, %v10337_v12 }
 0x900   :  { %8789 = vmatpush3.msra.mxu0 %v10286_v19  ;;  %8790 = vmatprep.mubr.msk.f32.mxu0 %vm9163_vm2, %v9162_v47  ;;  %v7905_v47 = vld [vmem:[%s10775_s7] ss:$0 sm:$0xff] }
 0x903   :  { %8791 = vmatmul.mubr.msk.f32.vlgmr.msra.gmra.mxu0 %vm6297_vm7, %v10355_v25 }
 0x99d   :  { %v8757_v3 = vpop.f32.mrf.mxu1 }
 0x99f   :  { %v6222_v48 = vpop.f32.mrf.mxu1 }
 0x9b3   :  { %v8750_v33 = vpop.f32.mrf.mxu0 }
 0x9b4   :  { %v6228_v8 = vadd.f32 %v8757_v3, %v8750_v33  ;;  %v9165_v3 = vmov 0   ;;  %v10442_v33 = vld [vmem:[%s10780_s12 + $0x2] sm:$0x3] }
 0x9b5   :  { %v6141_v34 = vpop.f32.mrf.mxu0  ;;  %8798 = vset.pattern.permute.xlu1 %v9165_v3  ;;  %8799 = vset.pattern.permute.xlu0 %v9165_v3  ;;  %vm6341_vm10 = vcmp.gt.f32.partialorder %v10442_v33, 0.0 }
 0x9b6   :  { %v10370_v26 = vadd.f32 %v7905_v47, %v6228_v8  ;;  %v6223_v36 = vadd.f32 %v6222_v48, %v6141_v34 }
 0x9b8   :  { %v10376_v21 = vadd.f32 %v7905_v47, %v6223_v36  ;;  %v10382_v17 = vrot.slane %v10370_v26, %v6325_v5  ;;  %v10386_v53 = vrot.slane %v10370_v26, %v6332_v59  ;;  %v10391_v9 = vrot.slane %v10370_v26, %v6538_v11 }
 0x9b9   :  { %v10396_v49 = vrot.slane %v10370_v26, %v6531_v41  ;;  %v10401_v7 = vrot.slane %v10370_v26, %v6734_v10  ;;  %v10409_v23 = vrot.slane %v10370_v26, %v6741_v20  ;;  %v7375_v22 = vmul.f32 %v7373_v46, %v10370_v26 }
 0x9ba   :  { %v10404_v4 = vadd.f32 %v7906_v39, %v10376_v21  ;;  %v7577_v16 = vmul.f32 %v7575_v37, %v10370_v26  ;;  %v6326_v55 = vrot.slane %v10376_v21, %v6325_v5  ;;  %v6333_v2 = vrot.slane %v10376_v21, %v6332_v59 }
 0x9bb   :  { %v10422_v43 = vsel %vm6576_vm8, %v7375_v22, 0.0  ;;  %v6342_v47 = vsel %vm6341_vm10, 1, %v9165_v3  ;;  %vm6253_vm10 = vcmask 58368  }
 0x9bc   :  { %v6269_v35 = vrot.slane %v10404_v4, %v10379_v62  ;;  %v10428_v0 = vsel %vm6779_vm9, %v7577_v16, 0.0 }
 0x9be   :  { %v6277_v24 = vrot.slane %v6269_v35, %v10379_v62  ;;  %v6270_v29 = vcombine.high %v6269_v35, %v6269_v35 }
 0x9c0   :  { %v6288_v1 = vrot.slane %v6277_v24, %v10417_v28  ;;  %v6284_v14 = vrot.slane %v6270_v29, %v10379_v62  ;;  %v10446_v24 = vpop.f32.mrf.mxu1 }
 0x9c2   :  { %v6295_v27 = vadd.f32 %v6288_v1, %v10286_v19  ;;  %v6292_v31 = vrot.slane %v6284_v14, %v10417_v28  ;;  %v8767_v29 = vpop.f32.mrf.mxu1  ;;  %v6356_v1 = vand.u32 127, %v6266_v42 }
 0x9c4   :  { %v6298_v38 = vsel %vm6297_vm7, %v6295_v27, -inf  ;;  %v6296_v32 = vadd.f32 %v6292_v31, %v10286_v19  ;;  %v10450_v16 = vsub.s32 %v6356_v1, %v10360_v44 }
 0x9c5   :  { %6299 = vmax.xlane.f32.xlu0 %v6298_v38 }
 0x9c6   :  { %v6301_v56 = vsel %vm6297_vm7, %v6296_v32, -inf }
 0x9c9   :  { %6302 = vmax.xlane.f32.xlu0 %v6301_v56 }
 0x9df   :  { %6328 = vbcast.lane.b32.xlu0 %v6326_v55, 256 }
 0x9e3   :  { %6344 = vperm.xlu0 %8799, %v6342_v47  }
 0xa4e   :  { %v6300_v57 = vpop.xlane.xlu0 %6299 }
 0xa4f   :  { %v6304_v58 = vsub.f32 %v6295_v27, %v6300_v57 }
 0xa51   :  { %v6306_v50 = vmul.f32 1.442695, %v6304_v58 }
 0xa52   :  { %v6303_v40 = vpop.xlane.xlu0 %6302 }
 0xa53   :  { %9060 = vpow2.f32 %v6306_v50  ;;  %v6305_v6 = vsub.f32 %v6296_v32, %v6303_v40 }
 0xa55   :  { %v6308_v51 = vmul.f32 1.442695, %v6305_v6 }
 0xa56   :  { %v6329_v36 = vpop.permute.xlu0 %6328 }
 0xa57   :  { %9062 = vpow2.f32 %v6308_v51 }
 0xa5e   :  { %v10452_v27 = vpop.permute.xlu0 %6344 }
 0xa5f   :  { %vm6346_vm12 = vcmp.eq.s32.totalorder %v10452_v27, 1 }
 0xa60   :  { %v9061_v60 = vpop.eup %9060 }
 0xa61   :  { %v6310_v61 = vsel %vm6297_vm7, %v9061_v60, 0.0 }
 0xa62   :  { %6311 = vadd.xlane.f32.xlu1 %v6310_v61 }
 0xa64   :  { %v9063_v13 = vpop.eup %9062 }
 0xa65   :  { %v6313_v52 = vsel %vm6297_vm7, %v9063_v13, 0.0 }
 0xa66   :  { %6314 = vadd.xlane.f32.xlu1 %v6313_v52 }
 0xa77   :  { %6335 = vbcast.lane.b32.xlu1 %v6333_v2, 256 }
 0xaeb   :  { %v6312_v8 = vpop.xlane.xlu1 %6311 }
 0xaec   :  { %9064 = vlog2.f32 %v6312_v8 }
 0xaef   :  { %v6315_v45 = vpop.xlane.xlu1 %6314 }
 0xaf0   :  { %9066 = vlog2.f32 %v6315_v45 }
 0xaf3   :  { %v6336_v37 = vpop.permute.xlu1 %6335 }
 0xaf9   :  { %v9065_v5 = vpop.eup %9064 }
 0xafa   :  { %v6317_v48 = vmul.f32 0.6931472, %v9065_v5 }
 0xafc   :  { %v6320_v34 = vadd.f32 %v6317_v48, %v6300_v57 }
 0xafd   :  { %v9067_v59 = vpop.eup %9066 }
 0xafe   :  { %v6319_v39 = vmul.f32 0.6931472, %v9067_v59  ;;  %v6339_v46 = vadd.f32 %v6329_v36, %v6320_v34 }
 0xb00   :  { %v6321_v35 = vadd.f32 %v6319_v39, %v6303_v40  ;;  %6350 = vperm.xlu1 %8798, %v6339_v46   ;;  %v6539_v39 = vrot.slane %v10376_v21, %v6538_v11  ;;  %v10481_v46 = vld [vmem:[%s10780_s12 + $0x4] sm:$0x3] }
 0xb01   :  { %vm6547_vm13 = vcmp.gt.f32.partialorder %v10481_v46, 0.0 }
 0xb02   :  { %v6340_v22 = vadd.f32 %v6336_v37, %v6321_v35  ;;  %v6532_v35 = vrot.slane %v10376_v21, %v6531_v41  ;;  %v10487_v37 = vpop.f32.mrf.mxu0  ;;  %v6548_v29 = vsel %vm6547_vm13, 1, %v9165_v3 }
 0xb04   :  { %6353 = vperm.xlu1 %8798, %v6340_v22   ;;  %v8762_v22 = vpop.f32.mrf.mxu0 }
 0xb05   :  { %v6735_v22 = vrot.slane %v10376_v21, %v6734_v10  ;;  %v6742_v10 = vrot.slane %v10376_v21, %v6741_v20 }
 0xb06   :  { %v10490_v1 = vpop.f32.mrf.mxu0 }
 0xb08   :  { %v8772_v11 = vpop.f32.mrf.mxu0 }
 0xb7b   :  { %v6351_v14 = vpop.permute.xlu1 %6350 }
 0xb7c   :  { %v6360_v38 = vrot.slane %v6351_v14, %v10450_v16 }
 0xb7f   :  { %v6354_v31 = vpop.permute.xlu1 %6353 }
 0xb80   :  { %v6364_v32 = vrot.slane %v6354_v31, %v10450_v16 }
 0xb82   :  { %v6366_v56 = vsel %vm6365_vm11, %v6364_v32, %v6360_v38 }
 0xb83   :  { %v10461_v42 = vsel %vm6346_vm12, %v6366_v56, %v10404_v4 }
 0xb84   :  { %v6477_v55 = vrot.slane %v10461_v42, %v10379_v62 }
 0xb86   :  { %v6478_v57 = vcombine.high %v6477_v55, %v6477_v55  ;;  %v6485_v58 = vrot.slane %v6477_v55, %v10379_v62 }
 0xb88   :  { %v6496_v50 = vrot.slane %v6485_v58, %v10417_v28  ;;  %v6492_v40 = vrot.slane %v6478_v57, %v10379_v62 }
 0xb8a   :  { %v6503_v6 = vadd.f32 %v6496_v50, %v10286_v19  ;;  %v6500_v51 = vrot.slane %v6492_v40, %v10417_v28 }
 0xb8c   :  { %v6505_v60 = vsel %vm6297_vm7, %v6503_v6, -inf  ;;  %v6504_v61 = vadd.f32 %v6500_v51, %v10286_v19 }
 0xb8d   :  { %6506 = vmax.xlane.f32.xlu1 %v6505_v60 }
 0xb8e   :  { %v6508_v13 = vsel %vm6297_vm7, %v6504_v61, -inf }
 0xb8f   :  { %6509 = vmax.xlane.f32.xlu0 %v6508_v13 }
 0xc16   :  { %v6507_v52 = vpop.xlane.xlu1 %6506 }
 0xc17   :  { %v6511_v2 = vsub.f32 %v6503_v6, %v6507_v52 }
 0xc18   :  { %v6510_v47 = vpop.xlane.xlu0 %6509 }
 0xc19   :  { %v6513_v8 = vmul.f32 1.442695, %v6511_v2  ;;  %v6512_v45 = vsub.f32 %v6504_v61, %v6510_v47 }
 0xc1b   :  { %9068 = vpow2.f32 %v6513_v8  ;;  %v6515_v5 = vmul.f32 1.442695, %v6512_v45 }
 0xc1d   :  { %9070 = vpow2.f32 %v6515_v5 }
 0xc28   :  { %v9069_v48 = vpop.eup %9068 }
 0xc29   :  { %v6517_v34 = vsel %vm6297_vm7, %v9069_v48, 0.0 }
 0xc2a   :  { %v9071_v59 = vpop.eup %9070  ;;  %6518 = vadd.xlane.f32.xlu0 %v6517_v34 }
 0xc2b   :  { %v6520_v36 = vsel %vm6297_vm7, %v9071_v59, 0.0 }
 0xc2c   :  { %6521 = vadd.xlane.f32.xlu1 %v6520_v36 }
 0xc3d   :  { %6541 = vbcast.lane.b32.xlu1 %v6539_v39, 256 }
 0xc40   :  { %6534 = vbcast.lane.b32.xlu0 %v6532_v35, 256 }
 0xc44   :  { %6550 = vperm.xlu0 %8799, %v6548_v29  }
 0xcb3   :  { %v6519_v14 = vpop.xlane.xlu0 %6518 }
 0xcb4   :  { %9072 = vlog2.f32 %v6519_v14 }
 0xcb5   :  { %v6522_v31 = vpop.xlane.xlu1 %6521 }
 0xcb6   :  { %9074 = vlog2.f32 %v6522_v31 }
 0xcb7   :  { %v6535_v57 = vpop.permute.xlu0 %6534 }
 0xcb9   :  { %v6542_v40 = vpop.permute.xlu1 %6541 }
 0xcbf   :  { %v10492_v60 = vpop.permute.xlu0 %6550 }
 0xcc0   :  { %vm6552_vm14 = vcmp.eq.s32.totalorder %v10492_v60, 1 }
 0xcc1   :  { %v9073_v38 = vpop.eup %9072 }
 0xcc2   :  { %v6524_v32 = vmul.f32 0.6931472, %v9073_v38 }
 0xcc3   :  { %v9075_v56 = vpop.eup %9074 }
 0xcc4   :  { %v6526_v41 = vmul.f32 0.6931472, %v9075_v56  ;;  %v6527_v55 = vadd.f32 %v6524_v32, %v6507_v52 }
 0xcc6   :  { %v6545_v58 = vadd.f32 %v6535_v57, %v6527_v55  ;;  %v6528_v50 = vadd.f32 %v6526_v41, %v6510_v47 }
 0xcc8   :  { %6556 = vperm.xlu1 %8798, %v6545_v58   ;;  %v6546_v6 = vadd.f32 %v6542_v40, %v6528_v50 }
 0xccc   :  { %6559 = vperm.xlu1 %8798, %v6546_v6  }
 0xd43   :  { %v6557_v51 = vpop.permute.xlu1 %6556 }
 0xd44   :  { %v6564_v13 = vrot.slane %v6557_v51, %v10450_v16 }
 0xd47   :  { %v6560_v61 = vpop.permute.xlu1 %6559 }
 0xd48   :  { %v6568_v2 = vrot.slane %v6560_v61, %v10450_v16 }
 0xd4a   :  { %v6569_v8 = vsel %vm6365_vm11, %v6568_v2, %v6564_v13 }
 0xd4b   :  { %v6571_v52 = vsel %vm6552_vm14, %v6569_v8, %v10461_v42 }
 0xd4c   :  { %v6680_v47 = vrot.slane %v6571_v52, %v10379_v62 }
 0xd4e   :  { %v6688_v45 = vrot.slane %v6680_v47, %v10379_v62  ;;  %v6681_v5 = vcombine.high %v6680_v47, %v6680_v47  ;;  %v10521_v47 = vld [vmem:[%s10780_s12 + $0x6] sm:$0x3] }
 0xd4f   :  { %vm6750_vm15 = vcmp.gt.f32.partialorder %v10521_v47, 0.0 }
 0xd50   :  { %v6699_v48 = vrot.slane %v6688_v45, %v10417_v28  ;;  %v6695_v34 = vrot.slane %v6681_v5, %v10379_v62 }
 0xd52   :  { %v6706_v59 = vadd.f32 %v6699_v48, %v10286_v19  ;;  %v6703_v36 = vrot.slane %v6695_v34, %v10417_v28  ;;  %v6751_v48 = vsel %vm6750_vm15, 1, %v9165_v3  ;;  %v10525_v34 = vpop.f32.mrf.mxu1 }
 0xd54   :  { %v6708_v39 = vsel %vm6297_vm7, %v6706_v59, -inf  ;;  %v6707_v35 = vadd.f32 %v6703_v36, %v10286_v19 }
 0xd55   :  { %6709 = vmax.xlane.f32.xlu1 %v6708_v39 }
 0xd56   :  { %v6711_v42 = vsel %vm6297_vm7, %v6707_v35, -inf }
 0xd57   :  { %6712 = vmax.xlane.f32.xlu0 %v6711_v42 }
 0xd66   :  { %6737 = vbcast.lane.b32.xlu1 %v6735_v22, 256 }
 0xdde   :  { %v6710_v29 = vpop.xlane.xlu1 %6709 }
 0xddf   :  { %v6714_v11 = vsub.f32 %v6706_v59, %v6710_v29  ;;  %v8777_v59 = vpop.f32.mrf.mxu1 }
 0xde0   :  { %v6713_v14 = vpop.xlane.xlu0 %6712 }
 0xde1   :  { %v6716_v31 = vmul.f32 1.442695, %v6714_v11  ;;  %v6715_v38 = vsub.f32 %v6707_v35, %v6713_v14 }
 0xde2   :  { %v6738_v13 = vpop.permute.xlu1 %6737 }
 0xde3   :  { %9076 = vpow2.f32 %v6716_v31  ;;  %v6718_v32 = vmul.f32 1.442695, %v6715_v38 }
 0xde5   :  { %9078 = vpow2.f32 %v6718_v32 }
 0xdf0   :  { %v9077_v56 = vpop.eup %9076 }
 0xdf1   :  { %v6720_v41 = vsel %vm6297_vm7, %v9077_v56, 0.0 }
 0xdf2   :  { %v9079_v55 = vpop.eup %9078  ;;  %6721 = vadd.xlane.f32.xlu0 %v6720_v41 }
 0xdf3   :  { %v6723_v57 = vsel %vm6297_vm7, %v9079_v55, 0.0 }
 0xdf6   :  { %6724 = vadd.xlane.f32.xlu0 %v6723_v57 }
 0xe0c   :  { %6744 = vbcast.lane.b32.xlu0 %v6742_v10, 256 }
 0xe7b   :  { %v6722_v58 = vpop.xlane.xlu0 %6721 }
 0xe7c   :  { %9080 = vlog2.f32 %v6722_v58  ;;  %v6945_v58 = vsub.s32 1, %v10360_v44  ;;  %v10551_v44 = vld [vmem:[%s10780_s12 + $0x8] sm:$0x3] }
 0xe7d   :  { %vm6954_vm1 = vcmp.gt.f32.partialorder %v10551_v44, 0.0 }
 0xe7e   :  { %v6955_v59 = vsel %vm6954_vm1, 1, %v9165_v3 }
 0xe7f   :  { %v6725_v50 = vpop.xlane.xlu0 %6724 }
 0xe80   :  { %9082 = vlog2.f32 %v6725_v50  ;;  %v6946_v50 = vrot.slane %v10370_v26, %v6945_v58 }
 0xe83   :  { %v6745_v20 = vpop.permute.xlu0 %6744 }
 0xe89   :  { %v9081_v40 = vpop.eup %9080 }
 0xe8a   :  { %v6727_v6 = vmul.f32 0.6931472, %v9081_v40 }
 0xe8c   :  { %v6730_v51 = vadd.f32 %v6727_v6, %v6710_v29 }
 0xe8d   :  { %v9083_v61 = vpop.eup %9082 }
 0xe8e   :  { %v6729_v2 = vmul.f32 0.6931472, %v9083_v61  ;;  %v6748_v8 = vadd.f32 %v6738_v13, %v6730_v51 }
 0xe90   :  { %v6731_v45 = vadd.f32 %v6729_v2, %v6713_v14  ;;  %6759 = vperm.xlu1 %8798, %v6748_v8  }
 0xe92   :  { %v6749_v5 = vadd.f32 %v6745_v20, %v6731_v45 }
 0xe94   :  { %6762 = vperm.xlu1 %8798, %v6749_v5  }
 0xe98   :  { %6753 = vperm.xlu1 %8798, %v6751_v48   ;;  %v6939_v48 = vrot.slane %v10370_v26, %v10417_v28 }
 0xf0b   :  { %v6760_v36 = vpop.permute.xlu1 %6759 }
 0xf0c   :  { %v6767_v42 = vrot.slane %v6760_v36, %v10450_v16  ;;  %v10557_v36 = vpop.f32.mrf.mxu0 }
 0xf0f   :  { %v6763_v39 = vpop.permute.xlu1 %6762 }
 0xf10   :  { %v6771_v35 = vrot.slane %v6763_v39, %v10450_v16  ;;  %v8782_v39 = vpop.f32.mrf.mxu0 }
 0xf12   :  { %v6772_v29 = vsel %vm6365_vm11, %v6771_v35, %v6767_v42 }
 0xf13   :  { %v10529_v22 = vpop.permute.xlu1 %6753 }
 0xf14   :  { %vm6755_vm0 = vcmp.eq.s32.totalorder %v10529_v22, 1 }
 0xf15   :  { %v6774_v11 = vsel %vm6755_vm0, %v6772_v29, %v6571_v52 }
 0xf16   :  { %v6883_v14 = vrot.slane %v6774_v11, %v10379_v62 }
 0xf18   :  { %v6884_v31 = vcombine.high %v6883_v14, %v6883_v14  ;;  %v6891_v38 = vrot.slane %v6883_v14, %v10379_v62 }
 0xf1a   :  { %v6902_v32 = vrot.slane %v6891_v38, %v10417_v28  ;;  %v6898_v56 = vrot.slane %v6884_v31, %v10379_v62 }
 0xf1c   :  { %v6909_v41 = vadd.f32 %v6902_v32, %v10286_v19  ;;  %v6906_v55 = vrot.slane %v6898_v56, %v10417_v28 }
 0xf1e   :  { %v6911_v57 = vsel %vm6297_vm7, %v6909_v41, -inf  ;;  %v6910_v10 = vadd.f32 %v6906_v55, %v10286_v19 }
 0xf1f   :  { %6912 = vmax.xlane.f32.xlu0 %v6911_v57 }
 0xf20   :  { %v6914_v52 = vsel %vm6297_vm7, %v6910_v10, -inf }
 0xf21   :  { %6915 = vmax.xlane.f32.xlu1 %v6914_v52 }
 0xf32   :  { %6948 = vbcast.lane.b32.xlu1 %v6946_v50, 256 }
 0xfa8   :  { %v6913_v40 = vpop.xlane.xlu0 %6912 }
 0xfa9   :  { %v6917_v6 = vsub.f32 %v6909_v41, %v6913_v40 }
 0xfaa   :  { %v6916_v51 = vpop.xlane.xlu1 %6915 }
 0xfab   :  { %v6919_v61 = vmul.f32 1.442695, %v6917_v6  ;;  %v6918_v13 = vsub.f32 %v6910_v10, %v6916_v51 }
 0xfad   :  { %9084 = vpow2.f32 %v6919_v61  ;;  %v6921_v2 = vmul.f32 1.442695, %v6918_v13 }
 0xfae   :  { %v6949_v57 = vpop.permute.xlu1 %6948 }
 0xfaf   :  { %9086 = vpow2.f32 %v6921_v2 }
 0xfba   :  { %v9085_v8 = vpop.eup %9084 }
 0xfbb   :  { %v6923_v45 = vsel %vm6297_vm7, %v9085_v8, 0.0 }
 0xfbc   :  { %v9087_v20 = vpop.eup %9086  ;;  %6924 = vadd.xlane.f32.xlu0 %v6923_v45 }
 0xfbd   :  { %v6926_v5 = vsel %vm6297_vm7, %v9087_v20, 0.0 }
 0xfc0   :  { %6927 = vadd.xlane.f32.xlu0 %v6926_v5 }
 0xfd6   :  { %6941 = vbcast.lane.b32.xlu0 %v6939_v48, 256 }
 0xfda   :  { %6957 = vperm.xlu0 %8799, %v6955_v59  }
0x1045   :  { %v6925_v35 = vpop.xlane.xlu0 %6924 }
0x1046   :  { %9088 = vlog2.f32 %v6925_v35 }
0x1049   :  { %v6928_v42 = vpop.xlane.xlu0 %6927 }
0x104a   :  { %9090 = vlog2.f32 %v6928_v42 }
0x104d   :  { %v6942_v32 = vpop.permute.xlu0 %6941 }
0x1053   :  { %v9089_v29 = vpop.eup %9088 }
0x1054   :  { %v6930_v14 = vmul.f32 0.6931472, %v9089_v29 }
0x1055   :  { %v10559_v58 = vpop.permute.xlu0 %6957 }
0x1056   :  { %v6933_v31 = vadd.f32 %v6930_v14, %v6913_v40  ;;  %vm6959_vm2 = vcmp.eq.s32.totalorder %v10559_v58, 1 }
0x1057   :  { %v9091_v38 = vpop.eup %9090 }
0x1058   :  { %v6932_v56 = vmul.f32 0.6931472, %v9091_v38  ;;  %v6952_v41 = vadd.f32 %v6942_v32, %v6933_v31 }
0x105a   :  { %6963 = vperm.xlu1 %8798, %v6952_v41   ;;  %v6934_v55 = vadd.f32 %v6932_v56, %v6916_v51 }
0x105c   :  { %v6953_v10 = vadd.f32 %v6949_v57, %v6934_v55 }
0x105e   :  { %6966 = vperm.xlu1 %8798, %v6953_v10  }
0x10d5   :  { %v6964_v52 = vpop.permute.xlu1 %6963 }
0x10d6   :  { %v6971_v6 = vrot.slane %v6964_v52, %v10450_v16 }
0x10d9   :  { %v6967_v50 = vpop.permute.xlu1 %6966 }
0x10da   :  { %v6975_v61 = vrot.slane %v6967_v50, %v10450_v16 }
0x10dc   :  { %v6976_v40 = vsel %vm6365_vm11, %v6975_v61, %v6971_v6 }
0x10dd   :  { %v10567_v13 = vsel %vm6959_vm2, %v6976_v40, %v6774_v11 }
0x10de   :  { %v7075_v51 = vrot.slane %v10567_v13, %v10379_v62 }
0x10e0   :  { %v7083_v2 = vrot.slane %v7075_v51, %v10379_v62  ;;  %v7076_v8 = vcombine.high %v7075_v51, %v7075_v51 }
0x10e2   :  { %v7094_v45 = vrot.slane %v7083_v2, %v10417_v28  ;;  %v7090_v20 = vrot.slane %v7076_v8, %v10379_v62  ;;  %v10586_v2 = vld [vmem:[%s10780_s12 + $0xa] sm:$0x3] }
0x10e3   :  { %vm7145_vm3 = vcmp.gt.f32.partialorder %v10586_v2, 0.0 }
0x10e4   :  { %v7101_v5 = vadd.f32 %v7094_v45, %v10286_v19  ;;  %v7098_v48 = vrot.slane %v7090_v20, %v10417_v28  ;;  %v7146_v20 = vsel %vm7145_vm3, 1, %v9165_v3 }
0x10e6   :  { %v7103_v59 = vsel %vm6297_vm7, %v7101_v5, -inf  ;;  %v7102_v39 = vadd.f32 %v7098_v48, %v10286_v19 }
0x10e7   :  { %7104 = vmax.xlane.f32.xlu1 %v7103_v59 }
0x10e8   :  { %v7106_v11 = vsel %vm6297_vm7, %v7102_v39, -inf }
0x10e9   :  { %7107 = vmax.xlane.f32.xlu0 %v7106_v11  ;;  %v10595_v11 = vld [vmem:[%s10779_s11] sm:$0x3] }
0x10f8   :  { %7132 = vbcast.lane.b32.xlu1 %v10382_v17, 256 }
0x1170   :  { %v7105_v35 = vpop.xlane.xlu1 %7104 }
0x1171   :  { %v7109_v42 = vsub.f32 %v7101_v5, %v7105_v35  ;;  %v10590_v5 = vpop.f32.mrf.mxu1 }
0x1172   :  { %v7108_v29 = vpop.xlane.xlu0 %7107 }
0x1173   :  { %v7111_v14 = vmul.f32 1.442695, %v7109_v42  ;;  %v7110_v31 = vsub.f32 %v7102_v39, %v7108_v29  ;;  %v8787_v48 = vpop.f32.mrf.mxu1  ;;  %v10602_v42 = vsel %vm6346_vm12, %v10300_v54, %v10595_v11 }
0x1174   :  { %v7133_v61 = vpop.permute.xlu1 %7132 }
0x1175   :  { %9092 = vpow2.f32 %v7111_v14  ;;  %v7113_v38 = vmul.f32 1.442695, %v7110_v31 }
0x1177   :  { %9094 = vpow2.f32 %v7113_v38 }
0x1182   :  { %v9093_v32 = vpop.eup %9092 }
0x1183   :  { %v7115_v56 = vsel %vm6297_vm7, %v9093_v32, 0.0 }
0x1184   :  { %v9095_v41 = vpop.eup %9094  ;;  %7116 = vadd.xlane.f32.xlu0 %v7115_v56 }
0x1185   :  { %v7118_v55 = vsel %vm6297_vm7, %v9095_v41, 0.0 }
0x1188   :  { %7119 = vadd.xlane.f32.xlu0 %v7118_v55 }
0x119e   :  { %7139 = vbcast.lane.b32.xlu0 %v10386_v53, 256 }
0x120d   :  { %v7117_v57 = vpop.xlane.xlu0 %7116 }
0x120e   :  { %9096 = vlog2.f32 %v7117_v57 }
0x1211   :  { %v7120_v17 = vpop.xlane.xlu0 %7119 }
0x1212   :  { %9098 = vlog2.f32 %v7120_v17 }
0x1215   :  { %v7140_v45 = vpop.permute.xlu0 %7139 }
0x121b   :  { %v9097_v10 = vpop.eup %9096 }
0x121c   :  { %v7122_v52 = vmul.f32 0.6931472, %v9097_v10 }
0x121e   :  { %v7125_v50 = vadd.f32 %v7122_v52, %v7105_v35 }
0x121f   :  { %v9099_v6 = vpop.eup %9098 }
0x1220   :  { %v7124_v40 = vmul.f32 0.6931472, %v9099_v6  ;;  %v7143_v51 = vadd.f32 %v7133_v61, %v7125_v50 }
0x1222   :  { %v7126_v8 = vadd.f32 %v7124_v40, %v7108_v29  ;;  %7154 = vperm.xlu1 %8798, %v7143_v51   ;;  %v10608_v29 = vsel %vm6552_vm14, %v10295_v15, %v10602_v42 }
0x1223   :  { %v10615_v31 = vsel %vm6755_vm0, %v10315_v18, %v10608_v29 }
0x1224   :  { %v7144_v53 = vadd.f32 %v7140_v45, %v7126_v8  ;;  %v10621_v54 = vsel %vm6959_vm2, %v10320_v30, %v10615_v31 }
0x1226   :  { %7157 = vperm.xlu1 %8798, %v7144_v53  }
0x122a   :  { %7148 = vperm.xlu1 %8798, %v7146_v20   ;;  %v10649_v20 = vpop.f32.mrf.mxu0 }
0x122c   :  { %v8792_v48 = vpop.f32.mrf.mxu0 }
0x129d   :  { %v7155_v59 = vpop.permute.xlu1 %7154 }
0x129e   :  { %v7162_v14 = vrot.slane %v7155_v59, %v10450_v16 }
0x12a1   :  { %v7158_v39 = vpop.permute.xlu1 %7157 }
0x12a2   :  { %v7166_v35 = vrot.slane %v7158_v39, %v10450_v16 }
0x12a4   :  { %v7167_v27 = vsel %vm6365_vm11, %v7166_v35, %v7162_v14 }
0x12a5   :  { %v7149_v38 = vpop.permute.xlu1 %7148 }
0x12a6   :  { %vm7150_vm4 = vcmp.eq.s32.totalorder %v7149_v38, 1 }
0x12a7   :  { %v7169_v15 = vsel %vm7150_vm4, %v7167_v27, %v10567_v13  ;;  %v10627_v60 = vsel %vm7150_vm4, %v10337_v12, %v10621_v54 }
0x12a8   :  { %v7277_v22 = vrot.slane %v7169_v15, %v10379_v62 }
0x12aa   :  { %v7278_v32 = vcombine.high %v7277_v22, %v7277_v22  ;;  %v7285_v56 = vrot.slane %v7277_v22, %v10379_v62 }
0x12ac   :  { %v7296_v41 = vrot.slane %v7285_v56, %v10417_v28  ;;  %v7292_v58 = vrot.slane %v7278_v32, %v10379_v62 }
0x12ae   :  { %v7303_v30 = vadd.f32 %v7296_v41, %v10286_v19  ;;  %v7300_v55 = vrot.slane %v7292_v58, %v10417_v28 }
0x12b0   :  { %v7305_v57 = vsel %vm6297_vm7, %v7303_v30, -inf  ;;  %v7304_v13 = vadd.f32 %v7300_v55, %v10286_v19 }
0x12b1   :  { %7306 = vmax.xlane.f32.xlu0 %v7305_v57 }
0x12b2   :  { %v7308_v12 = vsel %vm6297_vm7, %v7304_v13, -inf }
0x12b3   :  { %7309 = vmax.xlane.f32.xlu1 %v7308_v12 }
0x12c4   :  { %7341 = vbcast.lane.b32.xlu1 %v10391_v9, 256  ;;  %v10644_v9 = vld [vmem:[%s10780_s12 + $0xc] sm:$0x3] }
0x12c5   :  { %vm7347_vm5 = vcmp.gt.f32.partialorder %v10644_v9, 0.0 }
0x12c6   :  { %v7348_v53 = vsel %vm7347_vm5, 1, %v9165_v3 }
0x133a   :  { %v7307_v17 = vpop.xlane.xlu0 %7306 }
0x133b   :  { %v7311_v10 = vsub.f32 %v7303_v30, %v7307_v17 }
0x133c   :  { %v7310_v52 = vpop.xlane.xlu1 %7309 }
0x133d   :  { %v7313_v50 = vmul.f32 1.442695, %v7311_v10  ;;  %v7312_v6 = vsub.f32 %v7304_v13, %v7310_v52 }
0x133f   :  { %9100 = vpow2.f32 %v7313_v50  ;;  %v7315_v61 = vmul.f32 1.442695, %v7312_v6 }
0x1341   :  { %9102 = vpow2.f32 %v7315_v61 }
0x134c   :  { %v9101_v40 = vpop.eup %9100 }
0x134d   :  { %v7317_v51 = vsel %vm6297_vm7, %v9101_v40, 0.0 }
0x134e   :  { %v9103_v8 = vpop.eup %9102  ;;  %7318 = vadd.xlane.f32.xlu0 %v7317_v51 }
0x134f   :  { %v7320_v45 = vsel %vm6297_vm7, %v9103_v8, 0.0 }
0x1352   :  { %7321 = vadd.xlane.f32.xlu0 %v7320_v45 }
0x1368   :  { %7334 = vbcast.lane.b32.xlu0 %v10396_v49, 256  ;;  %v7342_v49 = vpop.permute.xlu1 %7341 }
0x136c   :  { %7350 = vperm.xlu0 %8799, %v7348_v53  }
0x13d7   :  { %v7319_v59 = vpop.xlane.xlu0 %7318 }
0x13d8   :  { %9104 = vlog2.f32 %v7319_v59 }
0x13db   :  { %v7322_v39 = vpop.xlane.xlu0 %7321 }
0x13dc   :  { %9106 = vlog2.f32 %v7322_v39 }
0x13df   :  { %v7335_v22 = vpop.permute.xlu0 %7334 }
0x13e5   :  { %v9105_v35 = vpop.eup %9104 }
0x13e6   :  { %v7324_v14 = vmul.f32 0.6931472, %v9105_v35 }
0x13e7   :  { %v10651_v55 = vpop.permute.xlu0 %7350 }
0x13e8   :  { %v7327_v38 = vadd.f32 %v7324_v14, %v7307_v17  ;;  %vm7352_vm6 = vcmp.eq.s32.totalorder %v10651_v55, 1 }
0x13e9   :  { %v9107_v27 = vpop.eup %9106 }
0x13ea   :  { %v7326_v32 = vmul.f32 0.6931472, %v9107_v27  ;;  %v7345_v56 = vadd.f32 %v7335_v22, %v7327_v38 }
0x13ec   :  { %7356 = vperm.xlu1 %8798, %v7345_v56   ;;  %v7328_v41 = vadd.f32 %v7326_v32, %v7310_v52 }
0x13ee   :  { %v7346_v58 = vadd.f32 %v7342_v49, %v7328_v41 }
0x13f0   :  { %7359 = vperm.xlu1 %8798, %v7346_v58  }
0x1467   :  { %v7357_v30 = vpop.permute.xlu1 %7356 }
0x1468   :  { %v7364_v13 = vrot.slane %v7357_v30, %v10450_v16 }
0x146b   :  { %v7360_v57 = vpop.permute.xlu1 %7359 }
0x146c   :  { %v7368_v12 = vrot.slane %v7360_v57, %v10450_v16 }
0x146e   :  { %v7369_v17 = vsel %vm6365_vm11, %v7368_v12, %v7364_v13  ;;  %v10678_v13 = vld [vmem:[%s10780_s12 + $0xe] sm:$0x3] }
0x146f   :  { %v10659_v10 = vsel %vm7352_vm6, %v7369_v17, %v7169_v15 }
0x1470   :  { %v7479_v52 = vrot.slane %v10659_v10, %v10379_v62 }
0x1472   :  { %v7487_v50 = vrot.slane %v7479_v52, %v10379_v62  ;;  %v7480_v6 = vcombine.high %v7479_v52, %v7479_v52 }
0x1474   :  { %v7498_v61 = vrot.slane %v7487_v50, %v10417_v28  ;;  %v7494_v40 = vrot.slane %v7480_v6, %v10379_v62  ;;  %v6449_v50 = vmul.f32 %v10487_v37, %v10595_v11  ;;  %v7056_v37 = vmul.f32 %v10525_v34, %v10615_v31 }
0x1476   :  { %v7505_v51 = vadd.f32 %v7498_v61, %v10286_v19  ;;  %v7502_v8 = vrot.slane %v7494_v40, %v10417_v28  ;;  %v6450_v6 = vsel %vm6253_vm10, %v6449_v50, 0.0  ;;  %v6855_v61 = vmul.f32 %v10490_v1, %v10608_v29 }
0x1477   :  { %v6776_v40 = vrot.slane %v10315_v18, 2  ;;  %v7451_v18 = vmul.f32 %v10590_v5, %v10627_v60  ;;  %v7057_v1 = vsel %vm6253_vm10, %v7056_v37, 0.0  ;;  %v7467_v29 = vsel %vm7352_vm6, %v10342_v63, %v10627_v60  ;;  %v7928_v63 = vld [vmem:[%s10778_s10] ss:$0 sm:$0xff] }
0x1478   :  { %v7507_v45 = vsel %vm6297_vm7, %v7505_v51, -inf  ;;  %v7506_v53 = vadd.f32 %v7502_v8, %v10286_v19 }
0x1479   :  { %7508 = vmax.xlane.f32.xlu1 %v7507_v45  ;;  %v6778_v8 = vmul.f32 %v6776_v40, %v10376_v21 }
0x147a   :  { %v7510_v15 = vsel %vm6297_vm7, %v7506_v53, -inf }
0x147b   :  { %7511 = vmax.xlane.f32.xlu0 %v7510_v15  ;;  %v6780_v45 = vsel %vm6779_vm9, %v6778_v8, 0.0 }
0x148a   :  { %7536 = vbcast.lane.b32.xlu1 %v10401_v7, 256 }
0x1502   :  { %v7509_v48 = vpop.xlane.xlu1 %7508 }
0x1503   :  { %v7513_v59 = vsub.f32 %v7505_v51, %v7509_v48  ;;  %v6856_v51 = vsel %vm6253_vm10, %v6855_v61, 0.0 }
0x1504   :  { %v7512_v39 = vpop.xlane.xlu0 %7511 }
0x1505   :  { %v7515_v35 = vmul.f32 1.442695, %v7513_v59  ;;  %v7514_v14 = vsub.f32 %v7506_v53, %v7512_v39 }
0x1506   :  { %v7537_v58 = vpop.permute.xlu1 %7536 }
0x1507   :  { %9108 = vpow2.f32 %v7515_v35  ;;  %v7517_v62 = vmul.f32 1.442695, %v7514_v14 }
0x1509   :  { %9110 = vpow2.f32 %v7517_v62 }
0x1514   :  { %v9109_v38 = vpop.eup %9108 }
0x1515   :  { %v7519_v28 = vsel %vm6297_vm7, %v9109_v38, 0.0 }
0x1516   :  { %v9111_v27 = vpop.eup %9110  ;;  %7520 = vadd.xlane.f32.xlu0 %v7519_v28 }
0x1517   :  { %v7522_v19 = vsel %vm6297_vm7, %v9111_v27, 0.0  ;;  %vm7549_vm7 = vcmp.gt.f32.partialorder %v10678_v13, 0.0  ;;  %v6652_v27 = vmul.f32 %v10446_v24, %v10602_v42  ;;  %v9138_v42 = vld [vmem:[%s10779_s11 + $0x8] sm:$0x3] }
0x1518   :  { %v7550_v52 = vsel %vm7549_vm7, 1, %v9165_v3  ;;  %v7249_v3 = vmul.f32 %v10557_v36, %v10621_v54  ;;  %v7653_v36 = vmul.f32 %v10649_v20, %v7467_v29  ;;  %v7452_v54 = vsel %vm6253_vm10, %v7451_v18, 0.0  ;;  %v9136_v20 = vld [vmem:[%s10779_s11 + $0x2] sm:$0x3] }
0x1519   :  { %v6370_v55 = vrot.slane %v9136_v20, 6 }
0x151a   :  { %7523 = vadd.xlane.f32.xlu0 %v7522_v19  ;;  %v7250_v53 = vsel %vm6253_vm10, %v7249_v3, 0.0  ;;  %v7654_v34 = vsel %vm6253_vm10, %v7653_v36, 0.0 }
0x151b   :  { %v6372_v28 = vmul.f32 %v6370_v55, %v10376_v21 }
0x1530   :  { %7543 = vbcast.lane.b32.xlu0 %v10409_v23, 256 }
0x159f   :  { %v7521_v22 = vpop.xlane.xlu0 %7520 }
0x15a0   :  { %9112 = vlog2.f32 %v7521_v22  ;;  %v6653_v22 = vsel %vm6253_vm10, %v6652_v27, 0.0 }
0x15a3   :  { %v7524_v7 = vpop.xlane.xlu0 %7523 }
0x15a4   :  { %9114 = vlog2.f32 %v7524_v7 }
0x15a7   :  { %v7544_v17 = vpop.permute.xlu0 %7543 }
0x15ad   :  { %v9113_v32 = vpop.eup %9112 }
0x15ae   :  { %v7526_v56 = vmul.f32 0.6931472, %v9113_v32 }
0x15b0   :  { %v7529_v41 = vadd.f32 %v7526_v56, %v7509_v48  ;;  %v6252_v56 = vmul.f32 %v10404_v4, %v10595_v11 }
0x15b1   :  { %v9115_v49 = vpop.eup %9114 }
0x15b2   :  { %v7528_v30 = vmul.f32 0.6931472, %v9115_v49  ;;  %v7547_v57 = vadd.f32 %v7537_v58, %v7529_v41  ;;  %v6254_v24 = vsel %vm6253_vm10, %v6252_v56, 0.0  ;;  %v6979_v41 = vmul.f32 %v9138_v42, %v10370_v26  ;;  %v9139_v49 = vld [vmem:[%s10779_s11 + $0xa] sm:$0x3] }
0x15b4   :  { %v7530_v12 = vadd.f32 %v7528_v30, %v7512_v39  ;;  %7558 = vperm.xlu1 %8798, %v7547_v57   ;;  %v6980_v58 = vsel %vm6253_vm10, %v6979_v41, 0.0 }
0x15b6   :  { %v7548_v23 = vadd.f32 %v7544_v17, %v7530_v12 }
0x15b8   :  { %7561 = vperm.xlu1 %8798, %v7548_v23  }
0x15bc   :  { %7552 = vperm.xlu1 %8798, %v7550_v52  }
0x15e0   :  { %6451 = vadd.xlane.f32.xlu1 %v6450_v6 }
0x15e4   :  { %6857 = vadd.xlane.f32.xlu1 %v6856_v51 }
0x15e8   :  { %6781 = vadd.xlane.f32.xlu1 %v6780_v45 }
0x15ec   :  { %7251 = vadd.xlane.f32.xlu1 %v7250_v53 }
0x15f0   :  { %7058 = vadd.xlane.f32.xlu1 %v7057_v1 }
0x15f4   :  { %7453 = vadd.xlane.f32.xlu1 %v7452_v54 }
0x15f8   :  { %7655 = vadd.xlane.f32.xlu1 %v7654_v34 }
0x162f   :  { %v7559_v31 = vpop.permute.xlu1 %7558 }
0x1630   :  { %v7566_v48 = vrot.slane %v7559_v31, %v10450_v16 }
0x1633   :  { %v7562_v15 = vpop.permute.xlu1 %7561 }
0x1634   :  { %v7570_v5 = vrot.slane %v7562_v15, %v10450_v16 }
0x1636   :  { %v7571_v60 = vsel %vm6365_vm11, %v7570_v5, %v7566_v48  ;;  %vm6373_vm11 = vcmask 60418  }
0x1637   :  { %v7553_v59 = vpop.permute.xlu1 %7552  ;;  %v6374_v19 = vsel %vm6373_vm11, %v6372_v28, 0.0 }
0x1638   :  { %vm7554_vm9 = vcmp.eq.s32.totalorder %v7553_v59, 1 }
0x1639   :  { %v7573_v39 = vsel %vm7554_vm9, %v7571_v60, %v10659_v10  ;;  %v7669_v35 = vsel %vm7554_vm9, %v10355_v25, %v7467_v29  ;;  %v9137_v25 = vld [vmem:[%s10779_s11 + $0x4] sm:$0x3]  ;;  %s9166_s11 = smov [#allocation2]  }
0x163a   :  { %v7691_v14 = vmul.f32 %v7928_v63, %v7669_v35  ;;  %v7676_v62 = vadd.f32 %v7928_v63, %v7573_v39  ;;  %v6573_v10 = vrot.slane %v9137_v25, 4  ;;  %s7707_s7 = sshll.u32 %s9166_s11, 4  ;;  %s7708_s7 = int_to_ptr.vmem [resolvable:$true] %s7707_s7 }
0x163b   :  { %s9140_s9 = scalar_lea.vmem %s7708_s7, 32  ;;  %p9145_p1 = scmp.lt.s32.totalorder %s7708_s7, %s7708_s7 }
0x163c   :  { %v7692_v16 = vsel %vm6253_vm10, %v7691_v14, 0.0  ;;  %v7677_v38 = vsel %vm6253_vm10, %v7676_v62, -inf  ;;  %v6575_v7 = vmul.f32 %v6573_v10, %v10376_v21  ;;  %v7171_v21 = vrot.slane %v9139_v49, 6  ;;  %p9141_p0 = scmp.ne.s32.totalorder %s7708_s7, %s9140_s9  ;;  %p9146_p2 = scmp.lt.s32.totalorder %s9140_s9, %s9140_s9 }
0x163d   :  { %7693 = vadd.xlane.f32.xlu1 %v7692_v16  ;;  %7678 = vmax.xlane.f32.xlu0 %v7677_v38 }
0x163e   :  { %v6577_v32 = vsel %vm6576_vm8, %v6575_v7, 0.0  ;;  %v7173_v30 = vmul.f32 %v7171_v21, %v10370_v26  ;;  %p9147_p3 = por %p9146_p2, %p9145_p1 }
0x1640   :  { %v7174_v4 = vsel %vm6373_vm11, %v7173_v30, 0.0  ;;  %p9148_p4 = pnand %p9147_p3, %p9141_p0 }
0x1641   :  { %6375 = vadd.xlane.f32.xlu0 %v6374_v19 }
0x1645   :  { %6654 = vadd.xlane.f32.xlu0 %v6653_v22 }
0x1649   :  { %6578 = vadd.xlane.f32.xlu0 %v6577_v32 }
0x164d   :  { %6255 = vadd.xlane.f32.xlu0 %v6254_v24 }
0x1651   :  { %6981 = vadd.xlane.f32.xlu0 %v6980_v58 }
0x1655   :  { %7175 = vadd.xlane.f32.xlu0 %v7174_v4 }
0x16c6   :  { %v10742_v11 = vpop.xlane.xlu0 %7678 }
0x16c7   :  { %v7680_v57 = vsub.f32 %v7676_v62, %v10742_v11 }
0x16c9   :  { %v7681_v12 = vmul.f32 1.442695, %v7680_v57 }
0x16cb   :  { %9116 = vpow2.f32 %v7681_v12 }
0x16d8   :  { %v9117_v17 = vpop.eup %9116 }
0x16d9   :  { %v7683_v23 = vsel %vm6253_vm10, %v9117_v17, 0.0 }
0x16da   :  { %7684 = vadd.xlane.f32.xlu0 %v7683_v23 }
0x16de   :  { %7377 = vadd.xlane.f32.xlu0 %v10422_v43 }
0x16e2   :  { %7579 = vadd.xlane.f32.xlu0 %v10428_v0 }
0x16e3   :  { %9151 = shalt.err (!%p9148_p4)
}
0x16e4   :  { %7710 = dma.vmem_to_hbm [thread:$0]  %s7708_s7, 32, %s10783_s15, [#allocation3]   ;;  %v6376_v26 = vpop.xlane.xlu0 %6375  ;;  %v6452_v52 = vpop.xlane.xlu1 %6451  ;;  %v6458_v8 = vrot.slane %v10442_v33, 6  ;;  %v6244_v37 = vld [vmem:[%s10780_s12] sm:$0x3]  ;;  %v6661_v1 = vrot.slane %v10481_v46, 4 }
0x16e5   :  { %v6454_v61 = vrot.slane %v6452_v52, 6  ;;  %v6864_v31 = vrot.slane %v10521_v47, 2  ;;  %v7258_v39 = vrot.slane %v10586_v2, 6  ;;  %v7460_v47 = vrot.slane %v10644_v9, 4 }
0x16e6   :  { %v7662_v2 = vrot.slane %v10678_v13, 2  ;;  %vm7689_vm8 = vcmask 1024  }
0x16e7   :  { %v6456_v3 = vadd.f32 %v6454_v61, %v6376_v26 }
0x16e8   :  { %v6655_v50 = vpop.xlane.xlu0 %6654  ;;  %v6858_v43 = vpop.xlane.xlu1 %6857 }
0x16e9   :  { %v6657_v45 = vrot.slane %v6655_v50, 4  ;;  %v6460_v18 = vmul.f32 %v6458_v8, %v6456_v3  ;;  %v6860_v54 = vrot.slane %v6858_v43, 2 }
0x16eb   :  { %v6462_v5 = vrot.slane %v6460_v18, 2 }
0x16ec   :  { %v6579_v6 = vpop.xlane.xlu0 %6578  ;;  %v6782_v0 = vpop.xlane.xlu1 %6781 }
0x16ed   :  { %v6659_v29 = vadd.f32 %v6657_v45, %v6579_v6  ;;  %v6862_v15 = vadd.f32 %v6860_v54, %v6782_v0 }
0x16ef   :  { %v6663_v48 = vmul.f32 %v6661_v1, %v6659_v29  ;;  %v6866_v20 = vmul.f32 %v6864_v31, %v6862_v15 }
0x16f0   :  { %v6256_v40 = vpop.xlane.xlu0 %6255  ;;  %v7252_v51 = vpop.xlane.xlu1 %7251 }
0x16f1   :  { %v6257_v34 = vmul.f32 %v6256_v40, %v6244_v37  ;;  %v7254_v59 = vrot.slane %v7252_v51, 6  ;;  %v6665_v55 = vrot.slane %v6663_v48, 4  ;;  %v6868_v16 = vrot.slane %v6866_v20, 6 }
0x16f3   :  { %v6464_v63 = vadd.f32 %v6462_v5, %v6257_v34 }
0x16f4   :  { %v6982_v53 = vpop.xlane.xlu0 %6981  ;;  %v7059_v36 = vpop.xlane.xlu1 %7058 }
0x16f5   :  { %v6667_v46 = vadd.f32 %v6665_v55, %v6464_v63  ;;  %v7060_v62 = vadd.f32 %v7059_v36, %v6982_v53 }
0x16f7   :  { %v6870_v25 = vadd.f32 %v6868_v16, %v6667_v46  ;;  %v7061_v10 = vmul.f32 %v10551_v44, %v7060_v62 }
0x16f8   :  { %v7176_v33 = vpop.xlane.xlu0 %7175  ;;  %v7454_v60 = vpop.xlane.xlu1 %7453 }
0x16f9   :  { %v7256_v35 = vadd.f32 %v7254_v59, %v7176_v33  ;;  %v7456_v38 = vrot.slane %v7454_v60, 4  ;;  %v7062_v42 = vadd.f32 %v7061_v10, %v6870_v25 }
0x16fb   :  { %v7260_v28 = vmul.f32 %v7258_v39, %v7256_v35 }
0x16fc   :  { %v7656_v27 = vpop.xlane.xlu1 %7655 }
0x16fd   :  { %v7658_v7 = vrot.slane %v7656_v27, 2  ;;  %v7262_v32 = vrot.slane %v7260_v28, 2 }
0x16ff   :  { %v7264_v21 = vadd.f32 %v7262_v32, %v7062_v42 }
0x1700   :  { %v7694_v17 = vpop.xlane.xlu1 %7693 }
0x1763   :  { %v7685_v14 = vpop.xlane.xlu0 %7684 }
0x1764   :  { %9118 = vlog2.f32 %v7685_v14 }
0x1767   :  { %v7378_v19 = vpop.xlane.xlu0 %7377 }
0x1768   :  { %v7458_v22 = vadd.f32 %v7456_v38, %v7378_v19 }
0x176a   :  { %v7462_v56 = vmul.f32 %v7460_v47, %v7458_v22 }
0x176b   :  { %v7580_v24 = vpop.xlane.xlu0 %7579 }
0x176c   :  { %v7464_v41 = vrot.slane %v7462_v56, 4  ;;  %v7660_v49 = vadd.f32 %v7658_v7, %v7580_v24 }
0x176e   :  { %v7664_v58 = vmul.f32 %v7662_v2, %v7660_v49  ;;  %v7466_v30 = vadd.f32 %v7464_v41, %v7264_v21 }
0x1770   :  { %v7666_v4 = vrot.slane %v7664_v58, 6 }
0x1771   :  { %v9119_v9 = vpop.eup %9118 }
0x1772   :  { %v7687_v57 = vmul.f32 0.6931472, %v9119_v9  ;;  %v7668_v12 = vadd.f32 %v7666_v4, %v7466_v30 }
0x1774   :  { %v7688_v44 = vadd.f32 %v7687_v57, %v10742_v11  ;;  %v7695_v23 = vadd.f32 %v7694_v17, %v7668_v12 }
0x1776   :  { %7690 = vst.msk [vmem:[%s10781_s13] sm:$0x3] %vm7689_vm8, %v7688_v44  ;;  %7696 = vst.msk [vmem:[%s10782_s14] sm:$0x3] %vm7689_vm8, %v7695_v23 }
0x1777   :  { %9160 = dma.done.wait [#allocation3], 32  }
0x1778   :  { %9161 = vsyncadd [#allocation3], 4294967264 }
0x1779   :  { %7718 = vsyncpa [#allocation3], 1 }

</bundles_post_ra>
